<compile_context>
chip_gen: v6e
topology: v6e:2x2x1
jax: 0.10.0
libtpu: 0.0.40
codegen_flags: <defaults>
</compile_context>

<pallas_src>
import jax
import jax.numpy as jnp
import numpy as np
from jax.experimental import pallas as pl
from jax.experimental.pallas import tpu as pltpu


# ---------------------------------------------------------------------------
# Static mesh topology / geometry constants
# ---------------------------------------------------------------------------
_FACES_NP = np.array(
    [[0, 1, 2], [0, 2, 3], [4, 5, 6], [4, 6, 7],
     [0, 1, 5], [0, 5, 4], [2, 3, 7], [2, 7, 6],
     [7, 3, 0], [4, 7, 0], [1, 2, 6], [1, 6, 5]], dtype=np.int32)

_BASE_CORNERS_NP = np.array(
    [[-0.5, -0.5, -0.5],
     [ 0.5, -0.5, -0.5],
     [ 0.5,  0.5, -0.5],
     [-0.5,  0.5, -0.5],
     [-0.5, -0.5,  0.5],
     [ 0.5, -0.5,  0.5],
     [ 0.5,  0.5,  0.5],
     [-0.5,  0.5,  0.5]], dtype=np.float32)   # used by the pure-JAX reference

# corner sign pattern (matches _BASE_CORNERS_NP row order)
_CORNER_SIGNS = ((-1, -1, -1), (1, -1, -1), (1, 1, -1), (-1, 1, -1),
                 (-1, -1, 1), (1, -1, 1), (1, 1, 1), (-1, 1, 1))

_LANES = 128    # boxes per vector sub-tile (one vreg lane width)
_TILE_B = 512   # boxes per grid step (blocked DMA tile); multiple of _LANES


# ---------------------------------------------------------------------------
# Kernel: one tile of TILE_B boxes per grid step.
#   params_ref : (9, TILE_B)  f32 VMEM  rows = [x, y, z, a, b, c, w, d, h]
#   verts_ref  : (24, TILE_B) f32 VMEM  row v*3 + j = coordinate j of vertex v
# ---------------------------------------------------------------------------
def _fridge_kernel(params_ref, verts_ref):
    tile_b = verts_ref.shape[1]
    n_sub = tile_b // _LANES

    for t in range(n_sub):                  # static Python loop -> fully unrolled
        lanes = pl.ds(t * _LANES, _LANES)   # static start: zero-cost slicing

        def prm(k, lanes=lanes):
            return params_ref[k:k + 1, lanes]          # (1, 128) f32 vector

        x, y, z = prm(0), prm(1), prm(2)
        a, b, c = prm(3), prm(4), prm(5)
        w, d, h = prm(6), prm(7), prm(8)

        # vectorized EUP trig over 128 boxes
        ca, sa = jnp.cos(a), jnp.sin(a)
        cb, sb = jnp.cos(b), jnp.sin(b)
        cc, sc = jnp.cos(c), jnp.sin(c)
        sbsc, sbcc = sb * sc, sb * cc

        # R = Rz(a) @ Ry(b) @ Rx(c) (pytorch3d 'ZYX'); fold 0.5 * (w, d, h) of
        # each local axis straight into its rotation row so the corners reduce
        # to pure sign-selects (adds / subs) below.
        hw, hd, hh = 0.5 * w, 0.5 * d, 0.5 * h
        axis_x = (hw * (ca * cb),
                  hw * (ca * sbsc - sa * cc),
                  hw * (ca * sbcc + sa * sc))
        axis_y = (hd * (sa * cb),
                  hd * (sa * sbsc + ca * cc),
                  hd * (sa * sbcc - ca * sc))
        axis_z = (hh * (-sb),
                  hh * (cb * sc),
                  hh * (cb * cc))
        trans = (x, y, z)

        rows, row_base = [], 0
        for sx, sy, sz in _CORNER_SIGNS:
            for j in range(3):
                v = trans[j]
                v = (v + axis_x[j]) if sx > 0 else (v - axis_x[j])
                v = (v + axis_y[j]) if sy > 0 else (v - axis_y[j])
                v = (v + axis_z[j]) if sz > 0 else (v - axis_z[j])
                rows.append(v)
            # flush vreg-aligned (8, 128) chunks to bound live registers
            if len(rows) >= 8:
                verts_ref[pl.ds(row_base, 8), lanes] = jnp.concatenate(rows[:8], axis=0)
                rows = rows[8:]
                row_base += 8


# ---------------------------------------------------------------------------
# Wrappers
# ---------------------------------------------------------------------------
def fridge_forward_batched(params, *, tile_b=_TILE_B):
    """params: (B, 9) float32 = [x, y, z, a, b, c, w, d, h] per box.

    Returns (verts (B, 8, 3) float32, faces (12, 3) int32).
    """
    if tile_b % _LANES != 0 or tile_b <= 0:
        raise ValueError("tile_b must be a positive multiple of 128")
    params = jnp.asarray(params, jnp.float32)
    B = params.shape[0]
    b_pad = ((B + tile_b - 1) // tile_b) * tile_b

    # lane-major layout: (9, B_pad); padded boxes are zeros (harmless trig)
    params_t = jnp.zeros((9, b_pad), jnp.float32).at[:, :B].set(params.T)

    out = pl.pallas_call(
        _fridge_kernel,
        grid=(b_pad // tile_b,),
        in_specs=[pl.BlockSpec((9, tile_b), lambda i: (0, i))],
        out_specs=pl.BlockSpec((24, tile_b), lambda i: (0, i)),
        out_shape=jax.ShapeDtypeStruct((24, b_pad), jnp.float32),
        compiler_params=pltpu.CompilerParams(
            dimension_semantics=("parallel",),   # v7x: split batch tiles over both TCs
        ),
    )(params_t)

    verts = out[:, :B].T.reshape(B, 8, 3)
    faces = jnp.asarray(_FACES_NP)
    return verts, faces


def fridge_forward(params):
    """Single-box forward (matches the nn.Module): params (9,) -> (verts (8,3), faces (12,3))."""
    verts, faces = fridge_forward_batched(jnp.reshape(params, (1, 9)), tile_b=_LANES)
    return verts[0], faces


# ---------------------------------------------------------------------------
# Pure-JAX reference (mirrors the pytorch3d Transform3d semantics).
# ---------------------------------------------------------------------------
def _axis_rotation(axis, angle):
    c, s = jnp.cos(angle), jnp.sin(angle)
    one, zero = jnp.ones_like(angle), jnp.zeros_like(angle)
    if axis == "X":
        rows = (one, zero, zero, zero, c, -s, zero, s, c)
    elif axis == "Y":
        rows = (c, zero, s, zero, one, zero, -s, zero, c)
    else:  # "Z"
        rows = (c, -s, zero, s, c, zero, zero, zero, one)
    return jnp.stack(rows).reshape(3, 3)


def fridge_forward_ref(params):
    params = params.astype(jnp.float32)
    x, y, z, a, b, c, w, d, h = [params[i] for i in range(9)]
    rot = (_axis_rotation("Z", a) @ _axis_rotation("Y", b) @ _axis_rotation("X", c))
    base = jnp.asarray(_BASE_CORNERS_NP)
    return (base * jnp.stack([w, d, h])) @ rot + jnp.stack([x, y, z])


if __name__ == "__main__":
    key = jax.random.PRNGKey(0)
    k1, k2 = jax.random.split(key)
    base = jnp.array([0.5, -0.3, 0.9, 0.1, -0.05, 0.2, 0.6, 0.6, 1.8],
                     dtype=jnp.float32)

    # --- small batch (module-scale example) ---
    B = 4
    params = base + jax.random.normal(k1, (B, 9), dtype=jnp.float32) * 0.05
    verts, faces = jax.jit(fridge_forward_batched)(params)
    verts = jax.block_until_ready(verts)
    faces = jax.block_until_ready(faces)
    verts_ref = jax.vmap(fridge_forward_ref)(params)
    np.testing.assert_allclose(np.asarray(verts), np.asarray(verts_ref),
                               rtol=1e-5, atol=1e-5)
    assert verts.shape == (B, 8, 3) and faces.shape == (12, 3)

    # --- larger batch: exercises padding + multi-step "parallel" grid ---
    B2 = 600
    params2 = base + jax.random.normal(k2, (B2, 9), dtype=jnp.float32) * 0.05
    verts2, _ = jax.jit(fridge_forward_batched)(params2)
    verts2 = jax.block_until_ready(verts2)
    verts2_ref = jax.vmap(fridge_forward_ref)(params2)
    np.testing.assert_allclose(np.asarray(verts2), np.asarray(verts2_ref),
                               rtol=1e-5, atol=1e-5)

    # --- single-box path (matches the original module's forward()) ---
    v1, f1 = jax.jit(fridge_forward)(params[0])
    v1 = jax.block_until_ready(v1)
    np.testing.assert_allclose(np.asarray(v1),
                               np.asarray(fridge_forward_ref(params[0])),
                               rtol=1e-5, atol=1e-5)
    assert v1.shape == (8, 3) and f1.shape == (12, 3)

    print("KERNEL_OK")
</pallas_src>

<mosaic_0001>
module attributes {stable_mosaic.version = 11 : i64} {
  func.func @_fridge_kernel(%arg0: i32, %arg1: memref<9x512xf32, #tpu.memory_space<vmem>>, %arg2: memref<24x512xf32, #tpu.memory_space<vmem>>) attributes {dimension_semantics = [#tpu.dimension_semantics<parallel>], iteration_bounds = array<i64: 1>, scalar_prefetch = 0 : i64, scratch_operands = 0 : i64, tpu.core_type = #tpu.core_type<tc>, window_params = [{transform_indices = @transform_0, window_bounds = array<i64: 9, 512>}, {transform_indices = @transform_1, window_bounds = array<i64: 24, 512>}]} {
    %c0 = arith.constant 0 : index
    %c0_0 = arith.constant 0 : index
    %0 = vector.load %arg1[%c0, %c0_0] : memref<9x512xf32, #tpu.memory_space<vmem>>, vector<1x128xf32>
    %c1 = arith.constant 1 : index
    %c0_1 = arith.constant 0 : index
    %1 = vector.load %arg1[%c1, %c0_1] : memref<9x512xf32, #tpu.memory_space<vmem>>, vector<1x128xf32>
    %c2 = arith.constant 2 : index
    %c0_2 = arith.constant 0 : index
    %2 = vector.load %arg1[%c2, %c0_2] : memref<9x512xf32, #tpu.memory_space<vmem>>, vector<1x128xf32>
    %c3 = arith.constant 3 : index
    %c0_3 = arith.constant 0 : index
    %3 = vector.load %arg1[%c3, %c0_3] : memref<9x512xf32, #tpu.memory_space<vmem>>, vector<1x128xf32>
    %c4 = arith.constant 4 : index
    %c0_4 = arith.constant 0 : index
    %4 = vector.load %arg1[%c4, %c0_4] : memref<9x512xf32, #tpu.memory_space<vmem>>, vector<1x128xf32>
    %c5 = arith.constant 5 : index
    %c0_5 = arith.constant 0 : index
    %5 = vector.load %arg1[%c5, %c0_5] : memref<9x512xf32, #tpu.memory_space<vmem>>, vector<1x128xf32>
    %c6 = arith.constant 6 : index
    %c0_6 = arith.constant 0 : index
    %6 = vector.load %arg1[%c6, %c0_6] : memref<9x512xf32, #tpu.memory_space<vmem>>, vector<1x128xf32>
    %c7 = arith.constant 7 : index
    %c0_7 = arith.constant 0 : index
    %7 = vector.load %arg1[%c7, %c0_7] : memref<9x512xf32, #tpu.memory_space<vmem>>, vector<1x128xf32>
    %c8 = arith.constant 8 : index
    %c0_8 = arith.constant 0 : index
    %8 = vector.load %arg1[%c8, %c0_8] : memref<9x512xf32, #tpu.memory_space<vmem>>, vector<1x128xf32>
    %9 = math.cos %3 : vector<1x128xf32>
    %10 = math.sin %3 : vector<1x128xf32>
    %11 = math.cos %4 : vector<1x128xf32>
    %12 = math.sin %4 : vector<1x128xf32>
    %13 = math.cos %5 : vector<1x128xf32>
    %14 = math.sin %5 : vector<1x128xf32>
    %15 = arith.mulf %12, %14 : vector<1x128xf32>
    %16 = arith.mulf %12, %13 : vector<1x128xf32>
    %cst = arith.constant 5.000000e-01 : f32
    %17 = vector.broadcast %cst : f32 to vector<1x128xf32>
    %18 = arith.mulf %17, %6 : vector<1x128xf32>
    %cst_9 = arith.constant 5.000000e-01 : f32
    %19 = vector.broadcast %cst_9 : f32 to vector<1x128xf32>
    %20 = arith.mulf %19, %7 : vector<1x128xf32>
    %cst_10 = arith.constant 5.000000e-01 : f32
    %21 = vector.broadcast %cst_10 : f32 to vector<1x128xf32>
    %22 = arith.mulf %21, %8 : vector<1x128xf32>
    %23 = arith.mulf %9, %11 : vector<1x128xf32>
    %24 = arith.mulf %18, %23 : vector<1x128xf32>
    %25 = arith.mulf %9, %15 : vector<1x128xf32>
    %26 = arith.mulf %10, %13 : vector<1x128xf32>
    %27 = arith.subf %25, %26 : vector<1x128xf32>
    %28 = arith.mulf %18, %27 : vector<1x128xf32>
    %29 = arith.mulf %9, %16 : vector<1x128xf32>
    %30 = arith.mulf %10, %14 : vector<1x128xf32>
    %31 = arith.addf %29, %30 : vector<1x128xf32>
    %32 = arith.mulf %18, %31 : vector<1x128xf32>
    %33 = arith.mulf %10, %11 : vector<1x128xf32>
    %34 = arith.mulf %20, %33 : vector<1x128xf32>
    %35 = arith.mulf %10, %15 : vector<1x128xf32>
    %36 = arith.mulf %9, %13 : vector<1x128xf32>
    %37 = arith.addf %35, %36 : vector<1x128xf32>
    %38 = arith.mulf %20, %37 : vector<1x128xf32>
    %39 = arith.mulf %10, %16 : vector<1x128xf32>
    %40 = arith.mulf %9, %14 : vector<1x128xf32>
    %41 = arith.subf %39, %40 : vector<1x128xf32>
    %42 = arith.mulf %20, %41 : vector<1x128xf32>
    %cst_11 = arith.constant 0.000000e+00 : f32
    %43 = vector.broadcast %cst_11 : f32 to vector<1x128xf32>
    %44 = arith.subf %43, %12 : vector<1x128xf32>
    %45 = arith.mulf %22, %44 : vector<1x128xf32>
    %46 = arith.mulf %11, %14 : vector<1x128xf32>
    %47 = arith.mulf %22, %46 : vector<1x128xf32>
    %48 = arith.mulf %11, %13 : vector<1x128xf32>
    %49 = arith.mulf %22, %48 : vector<1x128xf32>
    %50 = arith.subf %0, %24 : vector<1x128xf32>
    %51 = arith.subf %50, %34 : vector<1x128xf32>
    %52 = arith.subf %51, %45 : vector<1x128xf32>
    %53 = arith.subf %1, %28 : vector<1x128xf32>
    %54 = arith.subf %53, %38 : vector<1x128xf32>
    %55 = arith.subf %54, %47 : vector<1x128xf32>
    %56 = arith.subf %2, %32 : vector<1x128xf32>
    %57 = arith.subf %56, %42 : vector<1x128xf32>
    %58 = arith.subf %57, %49 : vector<1x128xf32>
    %59 = arith.addf %0, %24 : vector<1x128xf32>
    %60 = arith.subf %59, %34 : vector<1x128xf32>
    %61 = arith.subf %60, %45 : vector<1x128xf32>
    %62 = arith.addf %1, %28 : vector<1x128xf32>
    %63 = arith.subf %62, %38 : vector<1x128xf32>
    %64 = arith.subf %63, %47 : vector<1x128xf32>
    %65 = arith.addf %2, %32 : vector<1x128xf32>
    %66 = arith.subf %65, %42 : vector<1x128xf32>
    %67 = arith.subf %66, %49 : vector<1x128xf32>
    %68 = arith.addf %0, %24 : vector<1x128xf32>
    %69 = arith.addf %68, %34 : vector<1x128xf32>
    %70 = arith.subf %69, %45 : vector<1x128xf32>
    %71 = arith.addf %1, %28 : vector<1x128xf32>
    %72 = arith.addf %71, %38 : vector<1x128xf32>
    %73 = arith.subf %72, %47 : vector<1x128xf32>
    %74 = arith.addf %2, %32 : vector<1x128xf32>
    %75 = arith.addf %74, %42 : vector<1x128xf32>
    %76 = arith.subf %75, %49 : vector<1x128xf32>
    %77 = tpu.concatenate %52, %55, %58, %61, %64, %67, %70, %73 in 0 : vector<1x128xf32>, vector<1x128xf32>, vector<1x128xf32>, vector<1x128xf32>, vector<1x128xf32>, vector<1x128xf32>, vector<1x128xf32>, vector<1x128xf32> -> vector<8x128xf32>
    %c0_12 = arith.constant 0 : index
    %c0_13 = arith.constant 0 : index
    %78 = vector.load %arg2[%c0_12, %c0_13] : memref<24x512xf32, #tpu.memory_space<vmem>>, vector<8x128xf32>
    tpu.vector_store %arg2[%c0_12, %c0_13], %77 {strides = array<i32>} : memref<24x512xf32, #tpu.memory_space<vmem>>, vector<8x128xf32>,
    %79 = arith.subf %0, %24 : vector<1x128xf32>
    %80 = arith.addf %79, %34 : vector<1x128xf32>
    %81 = arith.subf %80, %45 : vector<1x128xf32>
    %82 = arith.subf %1, %28 : vector<1x128xf32>
    %83 = arith.addf %82, %38 : vector<1x128xf32>
    %84 = arith.subf %83, %47 : vector<1x128xf32>
    %85 = arith.subf %2, %32 : vector<1x128xf32>
    %86 = arith.addf %85, %42 : vector<1x128xf32>
    %87 = arith.subf %86, %49 : vector<1x128xf32>
    %88 = arith.subf %0, %24 : vector<1x128xf32>
    %89 = arith.subf %88, %34 : vector<1x128xf32>
    %90 = arith.addf %89, %45 : vector<1x128xf32>
    %91 = arith.subf %1, %28 : vector<1x128xf32>
    %92 = arith.subf %91, %38 : vector<1x128xf32>
    %93 = arith.addf %92, %47 : vector<1x128xf32>
    %94 = arith.subf %2, %32 : vector<1x128xf32>
    %95 = arith.subf %94, %42 : vector<1x128xf32>
    %96 = arith.addf %95, %49 : vector<1x128xf32>
    %97 = arith.addf %0, %24 : vector<1x128xf32>
    %98 = arith.subf %97, %34 : vector<1x128xf32>
    %99 = arith.addf %98, %45 : vector<1x128xf32>
    %100 = arith.addf %1, %28 : vector<1x128xf32>
    %101 = arith.subf %100, %38 : vector<1x128xf32>
    %102 = arith.addf %101, %47 : vector<1x128xf32>
    %103 = arith.addf %2, %32 : vector<1x128xf32>
    %104 = arith.subf %103, %42 : vector<1x128xf32>
    %105 = arith.addf %104, %49 : vector<1x128xf32>
    %106 = tpu.concatenate %76, %81, %84, %87, %90, %93, %96, %99 in 0 : vector<1x128xf32>, vector<1x128xf32>, vector<1x128xf32>, vector<1x128xf32>, vector<1x128xf32>, vector<1x128xf32>, vector<1x128xf32>, vector<1x128xf32> -> vector<8x128xf32>
    %c8_14 = arith.constant 8 : index
    %c0_15 = arith.constant 0 : index
    %107 = vector.load %arg2[%c8_14, %c0_15] : memref<24x512xf32, #tpu.memory_space<vmem>>, vector<8x128xf32>
    tpu.vector_store %arg2[%c8_14, %c0_15], %106 {strides = array<i32>} : memref<24x512xf32, #tpu.memory_space<vmem>>, vector<8x128xf32>,
    %108 = arith.addf %0, %24 : vector<1x128xf32>
    %109 = arith.addf %108, %34 : vector<1x128xf32>
    %110 = arith.addf %109, %45 : vector<1x128xf32>
    %111 = arith.addf %1, %28 : vector<1x128xf32>
    %112 = arith.addf %111, %38 : vector<1x128xf32>
    %113 = arith.addf %112, %47 : vector<1x128xf32>
    %114 = arith.addf %2, %32 : vector<1x128xf32>
    %115 = arith.addf %114, %42 : vector<1x128xf32>
    %116 = arith.addf %115, %49 : vector<1x128xf32>
    %117 = arith.subf %0, %24 : vector<1x128xf32>
    %118 = arith.addf %117, %34 : vector<1x128xf32>
    %119 = arith.addf %118, %45 : vector<1x128xf32>
    %120 = arith.subf %1, %28 : vector<1x128xf32>
    %121 = arith.addf %120, %38 : vector<1x128xf32>
    %122 = arith.addf %121, %47 : vector<1x128xf32>
    %123 = arith.subf %2, %32 : vector<1x128xf32>
    %124 = arith.addf %123, %42 : vector<1x128xf32>
    %125 = arith.addf %124, %49 : vector<1x128xf32>
    %126 = tpu.concatenate %102, %105, %110, %113, %116, %119, %122, %125 in 0 : vector<1x128xf32>, vector<1x128xf32>, vector<1x128xf32>, vector<1x128xf32>, vector<1x128xf32>, vector<1x128xf32>, vector<1x128xf32>, vector<1x128xf32> -> vector<8x128xf32>
    %c16 = arith.constant 16 : index
    %c0_16 = arith.constant 0 : index
    %127 = vector.load %arg2[%c16, %c0_16] : memref<24x512xf32, #tpu.memory_space<vmem>>, vector<8x128xf32>
    tpu.vector_store %arg2[%c16, %c0_16], %126 {strides = array<i32>} : memref<24x512xf32, #tpu.memory_space<vmem>>, vector<8x128xf32>,
    %c0_17 = arith.constant 0 : index
    %c128 = arith.constant 128 : index
    %128 = vector.load %arg1[%c0_17, %c128] : memref<9x512xf32, #tpu.memory_space<vmem>>, vector<1x128xf32>
    %c1_18 = arith.constant 1 : index
    %c128_19 = arith.constant 128 : index
    %129 = vector.load %arg1[%c1_18, %c128_19] : memref<9x512xf32, #tpu.memory_space<vmem>>, vector<1x128xf32>
    %c2_20 = arith.constant 2 : index
    %c128_21 = arith.constant 128 : index
    %130 = vector.load %arg1[%c2_20, %c128_21] : memref<9x512xf32, #tpu.memory_space<vmem>>, vector<1x128xf32>
    %c3_22 = arith.constant 3 : index
    %c128_23 = arith.constant 128 : index
    %131 = vector.load %arg1[%c3_22, %c128_23] : memref<9x512xf32, #tpu.memory_space<vmem>>, vector<1x128xf32>
    %c4_24 = arith.constant 4 : index
    %c128_25 = arith.constant 128 : index
    %132 = vector.load %arg1[%c4_24, %c128_25] : memref<9x512xf32, #tpu.memory_space<vmem>>, vector<1x128xf32>
    %c5_26 = arith.constant 5 : index
    %c128_27 = arith.constant 128 : index
    %133 = vector.load %arg1[%c5_26, %c128_27] : memref<9x512xf32, #tpu.memory_space<vmem>>, vector<1x128xf32>
    %c6_28 = arith.constant 6 : index
    %c128_29 = arith.constant 128 : index
    %134 = vector.load %arg1[%c6_28, %c128_29] : memref<9x512xf32, #tpu.memory_space<vmem>>, vector<1x128xf32>
    %c7_30 = arith.constant 7 : index
    %c128_31 = arith.constant 128 : index
    %135 = vector.load %arg1[%c7_30, %c128_31] : memref<9x512xf32, #tpu.memory_space<vmem>>, vector<1x128xf32>
    %c8_32 = arith.constant 8 : index
    %c128_33 = arith.constant 128 : index
    %136 = vector.load %arg1[%c8_32, %c128_33] : memref<9x512xf32, #tpu.memory_space<vmem>>, vector<1x128xf32>
    %137 = math.cos %131 : vector<1x128xf32>
    %138 = math.sin %131 : vector<1x128xf32>
    %139 = math.cos %132 : vector<1x128xf32>
    %140 = math.sin %132 : vector<1x128xf32>
    %141 = math.cos %133 : vector<1x128xf32>
    %142 = math.sin %133 : vector<1x128xf32>
    %143 = arith.mulf %140, %142 : vector<1x128xf32>
    %144 = arith.mulf %140, %141 : vector<1x128xf32>
    %cst_34 = arith.constant 5.000000e-01 : f32
    %145 = vector.broadcast %cst_34 : f32 to vector<1x128xf32>
    %146 = arith.mulf %145, %134 : vector<1x128xf32>
    %cst_35 = arith.constant 5.000000e-01 : f32
    %147 = vector.broadcast %cst_35 : f32 to vector<1x128xf32>
    %148 = arith.mulf %147, %135 : vector<1x128xf32>
    %cst_36 = arith.constant 5.000000e-01 : f32
    %149 = vector.broadcast %cst_36 : f32 to vector<1x128xf32>
    %150 = arith.mulf %149, %136 : vector<1x128xf32>
    %151 = arith.mulf %137, %139 : vector<1x128xf32>
    %152 = arith.mulf %146, %151 : vector<1x128xf32>
    %153 = arith.mulf %137, %143 : vector<1x128xf32>
    %154 = arith.mulf %138, %141 : vector<1x128xf32>
    %155 = arith.subf %153, %154 : vector<1x128xf32>
    %156 = arith.mulf %146, %155 : vector<1x128xf32>
    %157 = arith.mulf %137, %144 : vector<1x128xf32>
    %158 = arith.mulf %138, %142 : vector<1x128xf32>
    %159 = arith.addf %157, %158 : vector<1x128xf32>
    %160 = arith.mulf %146, %159 : vector<1x128xf32>
    %161 = arith.mulf %138, %139 : vector<1x128xf32>
    %162 = arith.mulf %148, %161 : vector<1x128xf32>
    %163 = arith.mulf %138, %143 : vector<1x128xf32>
    %164 = arith.mulf %137, %141 : vector<1x128xf32>
    %165 = arith.addf %163, %164 : vector<1x128xf32>
    %166 = arith.mulf %148, %165 : vector<1x128xf32>
    %167 = arith.mulf %138, %144 : vector<1x128xf32>
    %168 = arith.mulf %137, %142 : vector<1x128xf32>
    %169 = arith.subf %167, %168 : vector<1x128xf32>
    %170 = arith.mulf %148, %169 : vector<1x128xf32>
    %cst_37 = arith.constant 0.000000e+00 : f32
    %171 = vector.broadcast %cst_37 : f32 to vector<1x128xf32>
    %172 = arith.subf %171, %140 : vector<1x128xf32>
    %173 = arith.mulf %150, %172 : vector<1x128xf32>
    %174 = arith.mulf %139, %142 : vector<1x128xf32>
    %175 = arith.mulf %150, %174 : vector<1x128xf32>
    %176 = arith.mulf %139, %141 : vector<1x128xf32>
    %177 = arith.mulf %150, %176 : vector<1x128xf32>
    %178 = arith.subf %128, %152 : vector<1x128xf32>
    %179 = arith.subf %178, %162 : vector<1x128xf32>
    %180 = arith.subf %179, %173 : vector<1x128xf32>
    %181 = arith.subf %129, %156 : vector<1x128xf32>
    %182 = arith.subf %181, %166 : vector<1x128xf32>
    %183 = arith.subf %182, %175 : vector<1x128xf32>
    %184 = arith.subf %130, %160 : vector<1x128xf32>
    %185 = arith.subf %184, %170 : vector<1x128xf32>
    %186 = arith.subf %185, %177 : vector<1x128xf32>
    %187 = arith.addf %128, %152 : vector<1x128xf32>
    %188 = arith.subf %187, %162 : vector<1x128xf32>
    %189 = arith.subf %188, %173 : vector<1x128xf32>
    %190 = arith.addf %129, %156 : vector<1x128xf32>
    %191 = arith.subf %190, %166 : vector<1x128xf32>
    %192 = arith.subf %191, %175 : vector<1x128xf32>
    %193 = arith.addf %130, %160 : vector<1x128xf32>
    %194 = arith.subf %193, %170 : vector<1x128xf32>
    %195 = arith.subf %194, %177 : vector<1x128xf32>
    %196 = arith.addf %128, %152 : vector<1x128xf32>
    %197 = arith.addf %196, %162 : vector<1x128xf32>
    %198 = arith.subf %197, %173 : vector<1x128xf32>
    %199 = arith.addf %129, %156 : vector<1x128xf32>
    %200 = arith.addf %199, %166 : vector<1x128xf32>
    %201 = arith.subf %200, %175 : vector<1x128xf32>
    %202 = arith.addf %130, %160 : vector<1x128xf32>
    %203 = arith.addf %202, %170 : vector<1x128xf32>
    %204 = arith.subf %203, %177 : vector<1x128xf32>
    %205 = tpu.concatenate %180, %183, %186, %189, %192, %195, %198, %201 in 0 : vector<1x128xf32>, vector<1x128xf32>, vector<1x128xf32>, vector<1x128xf32>, vector<1x128xf32>, vector<1x128xf32>, vector<1x128xf32>, vector<1x128xf32> -> vector<8x128xf32>
    %c0_38 = arith.constant 0 : index
    %c128_39 = arith.constant 128 : index
    %206 = vector.load %arg2[%c0_38, %c128_39] : memref<24x512xf32, #tpu.memory_space<vmem>>, vector<8x128xf32>
    tpu.vector_store %arg2[%c0_38, %c128_39], %205 {strides = array<i32>} : memref<24x512xf32, #tpu.memory_space<vmem>>, vector<8x128xf32>,
    %207 = arith.subf %128, %152 : vector<1x128xf32>
    %208 = arith.addf %207, %162 : vector<1x128xf32>
    %209 = arith.subf %208, %173 : vector<1x128xf32>
    %210 = arith.subf %129, %156 : vector<1x128xf32>
    %211 = arith.addf %210, %166 : vector<1x128xf32>
    %212 = arith.subf %211, %175 : vector<1x128xf32>
    %213 = arith.subf %130, %160 : vector<1x128xf32>
    %214 = arith.addf %213, %170 : vector<1x128xf32>
    %215 = arith.subf %214, %177 : vector<1x128xf32>
    %216 = arith.subf %128, %152 : vector<1x128xf32>
    %217 = arith.subf %216, %162 : vector<1x128xf32>
    %218 = arith.addf %217, %173 : vector<1x128xf32>
    %219 = arith.subf %129, %156 : vector<1x128xf32>
    %220 = arith.subf %219, %166 : vector<1x128xf32>
    %221 = arith.addf %220, %175 : vector<1x128xf32>
    %222 = arith.subf %130, %160 : vector<1x128xf32>
    %223 = arith.subf %222, %170 : vector<1x128xf32>
    %224 = arith.addf %223, %177 : vector<1x128xf32>
    %225 = arith.addf %128, %152 : vector<1x128xf32>
    %226 = arith.subf %225, %162 : vector<1x128xf32>
    %227 = arith.addf %226, %173 : vector<1x128xf32>
    %228 = arith.addf %129, %156 : vector<1x128xf32>
    %229 = arith.subf %228, %166 : vector<1x128xf32>
    %230 = arith.addf %229, %175 : vector<1x128xf32>
    %231 = arith.addf %130, %160 : vector<1x128xf32>
    %232 = arith.subf %231, %170 : vector<1x128xf32>
    %233 = arith.addf %232, %177 : vector<1x128xf32>
    %234 = tpu.concatenate %204, %209, %212, %215, %218, %221, %224, %227 in 0 : vector<1x128xf32>, vector<1x128xf32>, vector<1x128xf32>, vector<1x128xf32>, vector<1x128xf32>, vector<1x128xf32>, vector<1x128xf32>, vector<1x128xf32> -> vector<8x128xf32>
    %c8_40 = arith.constant 8 : index
    %c128_41 = arith.constant 128 : index
    %235 = vector.load %arg2[%c8_40, %c128_41] : memref<24x512xf32, #tpu.memory_space<vmem>>, vector<8x128xf32>
    tpu.vector_store %arg2[%c8_40, %c128_41], %234 {strides = array<i32>} : memref<24x512xf32, #tpu.memory_space<vmem>>, vector<8x128xf32>,
    %236 = arith.addf %128, %152 : vector<1x128xf32>
    %237 = arith.addf %236, %162 : vector<1x128xf32>
    %238 = arith.addf %237, %173 : vector<1x128xf32>
    %239 = arith.addf %129, %156 : vector<1x128xf32>
    %240 = arith.addf %239, %166 : vector<1x128xf32>
    %241 = arith.addf %240, %175 : vector<1x128xf32>
    %242 = arith.addf %130, %160 : vector<1x128xf32>
    %243 = arith.addf %242, %170 : vector<1x128xf32>
    %244 = arith.addf %243, %177 : vector<1x128xf32>
    %245 = arith.subf %128, %152 : vector<1x128xf32>
    %246 = arith.addf %245, %162 : vector<1x128xf32>
    %247 = arith.addf %246, %173 : vector<1x128xf32>
    %248 = arith.subf %129, %156 : vector<1x128xf32>
    %249 = arith.addf %248, %166 : vector<1x128xf32>
    %250 = arith.addf %249, %175 : vector<1x128xf32>
    %251 = arith.subf %130, %160 : vector<1x128xf32>
    %252 = arith.addf %251, %170 : vector<1x128xf32>
    %253 = arith.addf %252, %177 : vector<1x128xf32>
    %254 = tpu.concatenate %230, %233, %238, %241, %244, %247, %250, %253 in 0 : vector<1x128xf32>, vector<1x128xf32>, vector<1x128xf32>, vector<1x128xf32>, vector<1x128xf32>, vector<1x128xf32>, vector<1x128xf32>, vector<1x128xf32> -> vector<8x128xf32>
    %c16_42 = arith.constant 16 : index
    %c128_43 = arith.constant 128 : index
    %255 = vector.load %arg2[%c16_42, %c128_43] : memref<24x512xf32, #tpu.memory_space<vmem>>, vector<8x128xf32>
    tpu.vector_store %arg2[%c16_42, %c128_43], %254 {strides = array<i32>} : memref<24x512xf32, #tpu.memory_space<vmem>>, vector<8x128xf32>,
    %c0_44 = arith.constant 0 : index
    %c256 = arith.constant 256 : index
    %256 = vector.load %arg1[%c0_44, %c256] : memref<9x512xf32, #tpu.memory_space<vmem>>, vector<1x128xf32>
    %c1_45 = arith.constant 1 : index
    %c256_46 = arith.constant 256 : index
    %257 = vector.load %arg1[%c1_45, %c256_46] : memref<9x512xf32, #tpu.memory_space<vmem>>, vector<1x128xf32>
    %c2_47 = arith.constant 2 : index
    %c256_48 = arith.constant 256 : index
    %258 = vector.load %arg1[%c2_47, %c256_48] : memref<9x512xf32, #tpu.memory_space<vmem>>, vector<1x128xf32>
    %c3_49 = arith.constant 3 : index
    %c256_50 = arith.constant 256 : index
    %259 = vector.load %arg1[%c3_49, %c256_50] : memref<9x512xf32, #tpu.memory_space<vmem>>, vector<1x128xf32>
    %c4_51 = arith.constant 4 : index
    %c256_52 = arith.constant 256 : index
    %260 = vector.load %arg1[%c4_51, %c256_52] : memref<9x512xf32, #tpu.memory_space<vmem>>, vector<1x128xf32>
    %c5_53 = arith.constant 5 : index
    %c256_54 = arith.constant 256 : index
    %261 = vector.load %arg1[%c5_53, %c256_54] : memref<9x512xf32, #tpu.memory_space<vmem>>, vector<1x128xf32>
    %c6_55 = arith.constant 6 : index
    %c256_56 = arith.constant 256 : index
    %262 = vector.load %arg1[%c6_55, %c256_56] : memref<9x512xf32, #tpu.memory_space<vmem>>, vector<1x128xf32>
    %c7_57 = arith.constant 7 : index
    %c256_58 = arith.constant 256 : index
    %263 = vector.load %arg1[%c7_57, %c256_58] : memref<9x512xf32, #tpu.memory_space<vmem>>, vector<1x128xf32>
    %c8_59 = arith.constant 8 : index
    %c256_60 = arith.constant 256 : index
    %264 = vector.load %arg1[%c8_59, %c256_60] : memref<9x512xf32, #tpu.memory_space<vmem>>, vector<1x128xf32>
    %265 = math.cos %259 : vector<1x128xf32>
    %266 = math.sin %259 : vector<1x128xf32>
    %267 = math.cos %260 : vector<1x128xf32>
    %268 = math.sin %260 : vector<1x128xf32>
    %269 = math.cos %261 : vector<1x128xf32>
    %270 = math.sin %261 : vector<1x128xf32>
    %271 = arith.mulf %268, %270 : vector<1x128xf32>
    %272 = arith.mulf %268, %269 : vector<1x128xf32>
    %cst_61 = arith.constant 5.000000e-01 : f32
    %273 = vector.broadcast %cst_61 : f32 to vector<1x128xf32>
    %274 = arith.mulf %273, %262 : vector<1x128xf32>
    %cst_62 = arith.constant 5.000000e-01 : f32
    %275 = vector.broadcast %cst_62 : f32 to vector<1x128xf32>
    %276 = arith.mulf %275, %263 : vector<1x128xf32>
    %cst_63 = arith.constant 5.000000e-01 : f32
    %277 = vector.broadcast %cst_63 : f32 to vector<1x128xf32>
    %278 = arith.mulf %277, %264 : vector<1x128xf32>
    %279 = arith.mulf %265, %267 : vector<1x128xf32>
    %280 = arith.mulf %274, %279 : vector<1x128xf32>
    %281 = arith.mulf %265, %271 : vector<1x128xf32>
    %282 = arith.mulf %266, %269 : vector<1x128xf32>
    %283 = arith.subf %281, %282 : vector<1x128xf32>
    %284 = arith.mulf %274, %283 : vector<1x128xf32>
    %285 = arith.mulf %265, %272 : vector<1x128xf32>
    %286 = arith.mulf %266, %270 : vector<1x128xf32>
    %287 = arith.addf %285, %286 : vector<1x128xf32>
    %288 = arith.mulf %274, %287 : vector<1x128xf32>
    %289 = arith.mulf %266, %267 : vector<1x128xf32>
    %290 = arith.mulf %276, %289 : vector<1x128xf32>
    %291 = arith.mulf %266, %271 : vector<1x128xf32>
    %292 = arith.mulf %265, %269 : vector<1x128xf32>
    %293 = arith.addf %291, %292 : vector<1x128xf32>
    %294 = arith.mulf %276, %293 : vector<1x128xf32>
    %295 = arith.mulf %266, %272 : vector<1x128xf32>
    %296 = arith.mulf %265, %270 : vector<1x128xf32>
    %297 = arith.subf %295, %296 : vector<1x128xf32>
    %298 = arith.mulf %276, %297 : vector<1x128xf32>
    %cst_64 = arith.constant 0.000000e+00 : f32
    %299 = vector.broadcast %cst_64 : f32 to vector<1x128xf32>
    %300 = arith.subf %299, %268 : vector<1x128xf32>
    %301 = arith.mulf %278, %300 : vector<1x128xf32>
    %302 = arith.mulf %267, %270 : vector<1x128xf32>
    %303 = arith.mulf %278, %302 : vector<1x128xf32>
    %304 = arith.mulf %267, %269 : vector<1x128xf32>
    %305 = arith.mulf %278, %304 : vector<1x128xf32>
    %306 = arith.subf %256, %280 : vector<1x128xf32>
    %307 = arith.subf %306, %290 : vector<1x128xf32>
    %308 = arith.subf %307, %301 : vector<1x128xf32>
    %309 = arith.subf %257, %284 : vector<1x128xf32>
    %310 = arith.subf %309, %294 : vector<1x128xf32>
    %311 = arith.subf %310, %303 : vector<1x128xf32>
    %312 = arith.subf %258, %288 : vector<1x128xf32>
    %313 = arith.subf %312, %298 : vector<1x128xf32>
    %314 = arith.subf %313, %305 : vector<1x128xf32>
    %315 = arith.addf %256, %280 : vector<1x128xf32>
    %316 = arith.subf %315, %290 : vector<1x128xf32>
    %317 = arith.subf %316, %301 : vector<1x128xf32>
    %318 = arith.addf %257, %284 : vector<1x128xf32>
    %319 = arith.subf %318, %294 : vector<1x128xf32>
    %320 = arith.subf %319, %303 : vector<1x128xf32>
    %321 = arith.addf %258, %288 : vector<1x128xf32>
    %322 = arith.subf %321, %298 : vector<1x128xf32>
    %323 = arith.subf %322, %305 : vector<1x128xf32>
    %324 = arith.addf %256, %280 : vector<1x128xf32>
    %325 = arith.addf %324, %290 : vector<1x128xf32>
    %326 = arith.subf %325, %301 : vector<1x128xf32>
    %327 = arith.addf %257, %284 : vector<1x128xf32>
    %328 = arith.addf %327, %294 : vector<1x128xf32>
    %329 = arith.subf %328, %303 : vector<1x128xf32>
    %330 = arith.addf %258, %288 : vector<1x128xf32>
    %331 = arith.addf %330, %298 : vector<1x128xf32>
    %332 = arith.subf %331, %305 : vector<1x128xf32>
    %333 = tpu.concatenate %308, %311, %314, %317, %320, %323, %326, %329 in 0 : vector<1x128xf32>, vector<1x128xf32>, vector<1x128xf32>, vector<1x128xf32>, vector<1x128xf32>, vector<1x128xf32>, vector<1x128xf32>, vector<1x128xf32> -> vector<8x128xf32>
    %c0_65 = arith.constant 0 : index
    %c256_66 = arith.constant 256 : index
    %334 = vector.load %arg2[%c0_65, %c256_66] : memref<24x512xf32, #tpu.memory_space<vmem>>, vector<8x128xf32>
    tpu.vector_store %arg2[%c0_65, %c256_66], %333 {strides = array<i32>} : memref<24x512xf32, #tpu.memory_space<vmem>>, vector<8x128xf32>,
    %335 = arith.subf %256, %280 : vector<1x128xf32>
    %336 = arith.addf %335, %290 : vector<1x128xf32>
    %337 = arith.subf %336, %301 : vector<1x128xf32>
    %338 = arith.subf %257, %284 : vector<1x128xf32>
    %339 = arith.addf %338, %294 : vector<1x128xf32>
    %340 = arith.subf %339, %303 : vector<1x128xf32>
    %341 = arith.subf %258, %288 : vector<1x128xf32>
    %342 = arith.addf %341, %298 : vector<1x128xf32>
    %343 = arith.subf %342, %305 : vector<1x128xf32>
    %344 = arith.subf %256, %280 : vector<1x128xf32>
    %345 = arith.subf %344, %290 : vector<1x128xf32>
    %346 = arith.addf %345, %301 : vector<1x128xf32>
    %347 = arith.subf %257, %284 : vector<1x128xf32>
    %348 = arith.subf %347, %294 : vector<1x128xf32>
    %349 = arith.addf %348, %303 : vector<1x128xf32>
    %350 = arith.subf %258, %288 : vector<1x128xf32>
    %351 = arith.subf %350, %298 : vector<1x128xf32>
    %352 = arith.addf %351, %305 : vector<1x128xf32>
    %353 = arith.addf %256, %280 : vector<1x128xf32>
    %354 = arith.subf %353, %290 : vector<1x128xf32>
    %355 = arith.addf %354, %301 : vector<1x128xf32>
    %356 = arith.addf %257, %284 : vector<1x128xf32>
    %357 = arith.subf %356, %294 : vector<1x128xf32>
    %358 = arith.addf %357, %303 : vector<1x128xf32>
    %359 = arith.addf %258, %288 : vector<1x128xf32>
    %360 = arith.subf %359, %298 : vector<1x128xf32>
    %361 = arith.addf %360, %305 : vector<1x128xf32>
    %362 = tpu.concatenate %332, %337, %340, %343, %346, %349, %352, %355 in 0 : vector<1x128xf32>, vector<1x128xf32>, vector<1x128xf32>, vector<1x128xf32>, vector<1x128xf32>, vector<1x128xf32>, vector<1x128xf32>, vector<1x128xf32> -> vector<8x128xf32>
    %c8_67 = arith.constant 8 : index
    %c256_68 = arith.constant 256 : index
    %363 = vector.load %arg2[%c8_67, %c256_68] : memref<24x512xf32, #tpu.memory_space<vmem>>, vector<8x128xf32>
    tpu.vector_store %arg2[%c8_67, %c256_68], %362 {strides = array<i32>} : memref<24x512xf32, #tpu.memory_space<vmem>>, vector<8x128xf32>,
    %364 = arith.addf %256, %280 : vector<1x128xf32>
    %365 = arith.addf %364, %290 : vector<1x128xf32>
    %366 = arith.addf %365, %301 : vector<1x128xf32>
    %367 = arith.addf %257, %284 : vector<1x128xf32>
    %368 = arith.addf %367, %294 : vector<1x128xf32>
    %369 = arith.addf %368, %303 : vector<1x128xf32>
    %370 = arith.addf %258, %288 : vector<1x128xf32>
    %371 = arith.addf %370, %298 : vector<1x128xf32>
    %372 = arith.addf %371, %305 : vector<1x128xf32>
    %373 = arith.subf %256, %280 : vector<1x128xf32>
    %374 = arith.addf %373, %290 : vector<1x128xf32>
    %375 = arith.addf %374, %301 : vector<1x128xf32>
    %376 = arith.subf %257, %284 : vector<1x128xf32>
    %377 = arith.addf %376, %294 : vector<1x128xf32>
    %378 = arith.addf %377, %303 : vector<1x128xf32>
    %379 = arith.subf %258, %288 : vector<1x128xf32>
    %380 = arith.addf %379, %298 : vector<1x128xf32>
    %381 = arith.addf %380, %305 : vector<1x128xf32>
    %382 = tpu.concatenate %358, %361, %366, %369, %372, %375, %378, %381 in 0 : vector<1x128xf32>, vector<1x128xf32>, vector<1x128xf32>, vector<1x128xf32>, vector<1x128xf32>, vector<1x128xf32>, vector<1x128xf32>, vector<1x128xf32> -> vector<8x128xf32>
    %c16_69 = arith.constant 16 : index
    %c256_70 = arith.constant 256 : index
    %383 = vector.load %arg2[%c16_69, %c256_70] : memref<24x512xf32, #tpu.memory_space<vmem>>, vector<8x128xf32>
    tpu.vector_store %arg2[%c16_69, %c256_70], %382 {strides = array<i32>} : memref<24x512xf32, #tpu.memory_space<vmem>>, vector<8x128xf32>,
    %c0_71 = arith.constant 0 : index
    %c384 = arith.constant 384 : index
    %384 = vector.load %arg1[%c0_71, %c384] : memref<9x512xf32, #tpu.memory_space<vmem>>, vector<1x128xf32>
    %c1_72 = arith.constant 1 : index
    %c384_73 = arith.constant 384 : index
    %385 = vector.load %arg1[%c1_72, %c384_73] : memref<9x512xf32, #tpu.memory_space<vmem>>, vector<1x128xf32>
    %c2_74 = arith.constant 2 : index
    %c384_75 = arith.constant 384 : index
    %386 = vector.load %arg1[%c2_74, %c384_75] : memref<9x512xf32, #tpu.memory_space<vmem>>, vector<1x128xf32>
    %c3_76 = arith.constant 3 : index
    %c384_77 = arith.constant 384 : index
    %387 = vector.load %arg1[%c3_76, %c384_77] : memref<9x512xf32, #tpu.memory_space<vmem>>, vector<1x128xf32>
    %c4_78 = arith.constant 4 : index
    %c384_79 = arith.constant 384 : index
    %388 = vector.load %arg1[%c4_78, %c384_79] : memref<9x512xf32, #tpu.memory_space<vmem>>, vector<1x128xf32>
    %c5_80 = arith.constant 5 : index
    %c384_81 = arith.constant 384 : index
    %389 = vector.load %arg1[%c5_80, %c384_81] : memref<9x512xf32, #tpu.memory_space<vmem>>, vector<1x128xf32>
    %c6_82 = arith.constant 6 : index
    %c384_83 = arith.constant 384 : index
    %390 = vector.load %arg1[%c6_82, %c384_83] : memref<9x512xf32, #tpu.memory_space<vmem>>, vector<1x128xf32>
    %c7_84 = arith.constant 7 : index
    %c384_85 = arith.constant 384 : index
    %391 = vector.load %arg1[%c7_84, %c384_85] : memref<9x512xf32, #tpu.memory_space<vmem>>, vector<1x128xf32>
    %c8_86 = arith.constant 8 : index
    %c384_87 = arith.constant 384 : index
    %392 = vector.load %arg1[%c8_86, %c384_87] : memref<9x512xf32, #tpu.memory_space<vmem>>, vector<1x128xf32>
    %393 = math.cos %387 : vector<1x128xf32>
    %394 = math.sin %387 : vector<1x128xf32>
    %395 = math.cos %388 : vector<1x128xf32>
    %396 = math.sin %388 : vector<1x128xf32>
    %397 = math.cos %389 : vector<1x128xf32>
    %398 = math.sin %389 : vector<1x128xf32>
    %399 = arith.mulf %396, %398 : vector<1x128xf32>
    %400 = arith.mulf %396, %397 : vector<1x128xf32>
    %cst_88 = arith.constant 5.000000e-01 : f32
    %401 = vector.broadcast %cst_88 : f32 to vector<1x128xf32>
    %402 = arith.mulf %401, %390 : vector<1x128xf32>
    %cst_89 = arith.constant 5.000000e-01 : f32
    %403 = vector.broadcast %cst_89 : f32 to vector<1x128xf32>
    %404 = arith.mulf %403, %391 : vector<1x128xf32>
    %cst_90 = arith.constant 5.000000e-01 : f32
    %405 = vector.broadcast %cst_90 : f32 to vector<1x128xf32>
    %406 = arith.mulf %405, %392 : vector<1x128xf32>
    %407 = arith.mulf %393, %395 : vector<1x128xf32>
    %408 = arith.mulf %402, %407 : vector<1x128xf32>
    %409 = arith.mulf %393, %399 : vector<1x128xf32>
    %410 = arith.mulf %394, %397 : vector<1x128xf32>
    %411 = arith.subf %409, %410 : vector<1x128xf32>
    %412 = arith.mulf %402, %411 : vector<1x128xf32>
    %413 = arith.mulf %393, %400 : vector<1x128xf32>
    %414 = arith.mulf %394, %398 : vector<1x128xf32>
    %415 = arith.addf %413, %414 : vector<1x128xf32>
    %416 = arith.mulf %402, %415 : vector<1x128xf32>
    %417 = arith.mulf %394, %395 : vector<1x128xf32>
    %418 = arith.mulf %404, %417 : vector<1x128xf32>
    %419 = arith.mulf %394, %399 : vector<1x128xf32>
    %420 = arith.mulf %393, %397 : vector<1x128xf32>
    %421 = arith.addf %419, %420 : vector<1x128xf32>
    %422 = arith.mulf %404, %421 : vector<1x128xf32>
    %423 = arith.mulf %394, %400 : vector<1x128xf32>
    %424 = arith.mulf %393, %398 : vector<1x128xf32>
    %425 = arith.subf %423, %424 : vector<1x128xf32>
    %426 = arith.mulf %404, %425 : vector<1x128xf32>
    %cst_91 = arith.constant 0.000000e+00 : f32
    %427 = vector.broadcast %cst_91 : f32 to vector<1x128xf32>
    %428 = arith.subf %427, %396 : vector<1x128xf32>
    %429 = arith.mulf %406, %428 : vector<1x128xf32>
    %430 = arith.mulf %395, %398 : vector<1x128xf32>
    %431 = arith.mulf %406, %430 : vector<1x128xf32>
    %432 = arith.mulf %395, %397 : vector<1x128xf32>
    %433 = arith.mulf %406, %432 : vector<1x128xf32>
    %434 = arith.subf %384, %408 : vector<1x128xf32>
    %435 = arith.subf %434, %418 : vector<1x128xf32>
    %436 = arith.subf %435, %429 : vector<1x128xf32>
    %437 = arith.subf %385, %412 : vector<1x128xf32>
    %438 = arith.subf %437, %422 : vector<1x128xf32>
    %439 = arith.subf %438, %431 : vector<1x128xf32>
    %440 = arith.subf %386, %416 : vector<1x128xf32>
    %441 = arith.subf %440, %426 : vector<1x128xf32>
    %442 = arith.subf %441, %433 : vector<1x128xf32>
    %443 = arith.addf %384, %408 : vector<1x128xf32>
    %444 = arith.subf %443, %418 : vector<1x128xf32>
    %445 = arith.subf %444, %429 : vector<1x128xf32>
    %446 = arith.addf %385, %412 : vector<1x128xf32>
    %447 = arith.subf %446, %422 : vector<1x128xf32>
    %448 = arith.subf %447, %431 : vector<1x128xf32>
    %449 = arith.addf %386, %416 : vector<1x128xf32>
    %450 = arith.subf %449, %426 : vector<1x128xf32>
    %451 = arith.subf %450, %433 : vector<1x128xf32>
    %452 = arith.addf %384, %408 : vector<1x128xf32>
    %453 = arith.addf %452, %418 : vector<1x128xf32>
    %454 = arith.subf %453, %429 : vector<1x128xf32>
    %455 = arith.addf %385, %412 : vector<1x128xf32>
    %456 = arith.addf %455, %422 : vector<1x128xf32>
    %457 = arith.subf %456, %431 : vector<1x128xf32>
    %458 = arith.addf %386, %416 : vector<1x128xf32>
    %459 = arith.addf %458, %426 : vector<1x128xf32>
    %460 = arith.subf %459, %433 : vector<1x128xf32>
    %461 = tpu.concatenate %436, %439, %442, %445, %448, %451, %454, %457 in 0 : vector<1x128xf32>, vector<1x128xf32>, vector<1x128xf32>, vector<1x128xf32>, vector<1x128xf32>, vector<1x128xf32>, vector<1x128xf32>, vector<1x128xf32> -> vector<8x128xf32>
    %c0_92 = arith.constant 0 : index
    %c384_93 = arith.constant 384 : index
    %462 = vector.load %arg2[%c0_92, %c384_93] : memref<24x512xf32, #tpu.memory_space<vmem>>, vector<8x128xf32>
    tpu.vector_store %arg2[%c0_92, %c384_93], %461 {strides = array<i32>} : memref<24x512xf32, #tpu.memory_space<vmem>>, vector<8x128xf32>,
    %463 = arith.subf %384, %408 : vector<1x128xf32>
    %464 = arith.addf %463, %418 : vector<1x128xf32>
    %465 = arith.subf %464, %429 : vector<1x128xf32>
    %466 = arith.subf %385, %412 : vector<1x128xf32>
    %467 = arith.addf %466, %422 : vector<1x128xf32>
    %468 = arith.subf %467, %431 : vector<1x128xf32>
    %469 = arith.subf %386, %416 : vector<1x128xf32>
    %470 = arith.addf %469, %426 : vector<1x128xf32>
    %471 = arith.subf %470, %433 : vector<1x128xf32>
    %472 = arith.subf %384, %408 : vector<1x128xf32>
    %473 = arith.subf %472, %418 : vector<1x128xf32>
    %474 = arith.addf %473, %429 : vector<1x128xf32>
    %475 = arith.subf %385, %412 : vector<1x128xf32>
    %476 = arith.subf %475, %422 : vector<1x128xf32>
    %477 = arith.addf %476, %431 : vector<1x128xf32>
    %478 = arith.subf %386, %416 : vector<1x128xf32>
    %479 = arith.subf %478, %426 : vector<1x128xf32>
    %480 = arith.addf %479, %433 : vector<1x128xf32>
    %481 = arith.addf %384, %408 : vector<1x128xf32>
    %482 = arith.subf %481, %418 : vector<1x128xf32>
    %483 = arith.addf %482, %429 : vector<1x128xf32>
    %484 = arith.addf %385, %412 : vector<1x128xf32>
    %485 = arith.subf %484, %422 : vector<1x128xf32>
    %486 = arith.addf %485, %431 : vector<1x128xf32>
    %487 = arith.addf %386, %416 : vector<1x128xf32>
    %488 = arith.subf %487, %426 : vector<1x128xf32>
    %489 = arith.addf %488, %433 : vector<1x128xf32>
    %490 = tpu.concatenate %460, %465, %468, %471, %474, %477, %480, %483 in 0 : vector<1x128xf32>, vector<1x128xf32>, vector<1x128xf32>, vector<1x128xf32>, vector<1x128xf32>, vector<1x128xf32>, vector<1x128xf32>, vector<1x128xf32> -> vector<8x128xf32>
    %c8_94 = arith.constant 8 : index
    %c384_95 = arith.constant 384 : index
    %491 = vector.load %arg2[%c8_94, %c384_95] : memref<24x512xf32, #tpu.memory_space<vmem>>, vector<8x128xf32>
    tpu.vector_store %arg2[%c8_94, %c384_95], %490 {strides = array<i32>} : memref<24x512xf32, #tpu.memory_space<vmem>>, vector<8x128xf32>,
    %492 = arith.addf %384, %408 : vector<1x128xf32>
    %493 = arith.addf %492, %418 : vector<1x128xf32>
    %494 = arith.addf %493, %429 : vector<1x128xf32>
    %495 = arith.addf %385, %412 : vector<1x128xf32>
    %496 = arith.addf %495, %422 : vector<1x128xf32>
    %497 = arith.addf %496, %431 : vector<1x128xf32>
    %498 = arith.addf %386, %416 : vector<1x128xf32>
    %499 = arith.addf %498, %426 : vector<1x128xf32>
    %500 = arith.addf %499, %433 : vector<1x128xf32>
    %501 = arith.subf %384, %408 : vector<1x128xf32>
    %502 = arith.addf %501, %418 : vector<1x128xf32>
    %503 = arith.addf %502, %429 : vector<1x128xf32>
    %504 = arith.subf %385, %412 : vector<1x128xf32>
    %505 = arith.addf %504, %422 : vector<1x128xf32>
    %506 = arith.addf %505, %431 : vector<1x128xf32>
    %507 = arith.subf %386, %416 : vector<1x128xf32>
    %508 = arith.addf %507, %426 : vector<1x128xf32>
    %509 = arith.addf %508, %433 : vector<1x128xf32>
    %510 = tpu.concatenate %486, %489, %494, %497, %500, %503, %506, %509 in 0 : vector<1x128xf32>, vector<1x128xf32>, vector<1x128xf32>, vector<1x128xf32>, vector<1x128xf32>, vector<1x128xf32>, vector<1x128xf32>, vector<1x128xf32> -> vector<8x128xf32>
    %c16_96 = arith.constant 16 : index
    %c384_97 = arith.constant 384 : index
    %511 = vector.load %arg2[%c16_96, %c384_97] : memref<24x512xf32, #tpu.memory_space<vmem>>, vector<8x128xf32>
    tpu.vector_store %arg2[%c16_96, %c384_97], %510 {strides = array<i32>} : memref<24x512xf32, #tpu.memory_space<vmem>>, vector<8x128xf32>,
    return
  }
  func.func @transform_0(%arg0: i32) -> (i32, i32) {
    %c0_i32 = arith.constant 0 : i32
    %c0_i32_0 = arith.constant 0 : i32
    return %c0_i32, %arg0 : i32, i32
  }
  func.func @transform_1(%arg0: i32) -> (i32, i32) {
    %c0_i32 = arith.constant 0 : i32
    %c0_i32_0 = arith.constant 0 : i32
    return %c0_i32, %arg0 : i32, i32
  }
}

</mosaic_0001>

<bundles_post_ra>
// kernel: fridge_forward_batched.1
= control target key start
LH: loop header
LB: loop body
LE: loop exit
PB: predicated region body
PF: predicated region fallthrough
CT: control target
= control target key end

     0   :  { %v3129_v26 = vmov 683565275   ;;  %v3130_v28 = vmov 2475754826   ;;  %v3131_v30 = vmov 2131351028   ;;  %s4880_s0 = inlined_call_operand.vmem [shape: f32[9,512], index: 0, kind: input, shape index: {}]   ;;  %s4881_s1 = inlined_call_operand.vmem [shape: f32[24,512], index: 1, kind: output, shape index: {}]  }
   0x1   :  { %v3148_v0 = vld [vmem:[%s4880_s0 + $0x3] ss:$0 sm:$0xff]  ;;  %v3153_v1 = vld [vmem:[%s4880_s0 + $0x4] ss:$0 sm:$0xff]  ;;  %v3160_v4 = vld [vmem:[%s4880_s0 + $0x5] ss:$0 sm:$0xff] }
   0x2   :  { %v17_v2 = vand.u32 2147483647, %v3148_v0  ;;  %v20_v3 = vand.u32 2139095040, %v3148_v0  ;;  %v224_v5 = vand.u32 2147483647, %v3153_v1  ;;  %v227_v8 = vand.u32 2139095040, %v3153_v1 }
   0x3   :  { %v434_v11 = vand.u32 2139095040, %v3160_v4  ;;  %v3132_v32 = vmov 2102212464   ;;  %v3133_v34 = vmov 920167782   ;;  %vm19_vm13 = vcmp.lt.s32.totalorder %v3148_v0, 0 }
   0x4   :  { %v21_v6 = vshrl.u32 %v20_v3, 23  ;;  %v24_v7 = vand.u32 8388607, %v17_v2  ;;  %v231_v9 = vand.u32 8388607, %v224_v5  ;;  %v228_v12 = vshrl.u32 %v227_v8, 23 }
   0x5   :  { %v435_v17 = vshrl.u32 %v434_v11, 23  ;;  %v3134_v41 = vmov 1326507024  }
   0x6   :  { %v2927_v10 = vadd.s32 4294967169, %v21_v6  ;;  %v25_v14 = vor.u32 8388608, %v24_v7  ;;  %v2935_v15 = vadd.s32 4294967169, %v228_v12  ;;  %v232_v16 = vor.u32 8388608, %v231_v9 }
   0x7   :  { %v3173_v24 = vadd.s32 4294967169, %v435_v17 }
   0x8   :  { %v27_v13 = vadd.s32 1, %v2927_v10  ;;  %v234_v19 = vadd.s32 1, %v2935_v15  ;;  %v3169_v22 = vshll.u32 %v25_v14, 8  ;;  %v3171_v23 = vshll.u32 %v232_v16, 8 }
   0xa   :  { %vm28_vm0 = vcmp.gt.s32.totalorder %v27_v13, 0  ;;  %vm235_vm1 = vcmp.gt.s32.totalorder %v234_v19, 0 }
   0xb   :  { %v29_v18 = vsel %vm28_vm0, %v27_v13, 0  ;;  %v236_v46 = vsel %vm235_vm1, %v234_v19, 0  ;;  %vm3277_vm0 = vcmp.le.f32.partialorder %v17_v2, 0.7853982 }
   0xc   :  { %v30_v20 = vshrl.u32 %v29_v18, 5  ;;  %v31_v21 = vand.u32 31, %v29_v18  ;;  %v237_v49 = vshrl.u32 %v236_v46, 5  ;;  %v238_v50 = vand.u32 31, %v236_v46 }
   0xe   :  { %v32_v25 = vsub.s32 32, %v31_v21  ;;  %v34_v27 = vshll.u32 %v3129_v26, %v31_v21  ;;  %v37_v29 = vshll.u32 %v3130_v28, %v31_v21  ;;  %v40_v31 = vshll.u32 %v3131_v30, %v31_v21 }
   0xf   :  { %v43_v33 = vshll.u32 %v3132_v32, %v31_v21  ;;  %v46_v35 = vshll.u32 %v3133_v34, %v31_v21  ;;  %vm49_vm2 = vcmp.lt.s32.totalorder %v30_v20, 1  ;;  %vm50_vm3 = vcmp.lt.s32.totalorder %v30_v20, 2 }
  0x10   :  { %v33_v36 = vshrl.u32 %v3129_v26, %v32_v25  ;;  %v35_v37 = vshrl.u32 %v3130_v28, %v32_v25  ;;  %v38_v38 = vshrl.u32 %v3131_v30, %v32_v25  ;;  %v41_v39 = vshrl.u32 %v3132_v32, %v32_v25 }
  0x11   :  { %v44_v40 = vshrl.u32 %v3133_v34, %v32_v25  ;;  %v47_v42 = vshrl.u32 %v3134_v41, %v32_v25  ;;  %vm51_vm4 = vcmp.lt.s32.totalorder %v30_v20, 3  ;;  %vm52_vm5 = vcmp.lt.s32.totalorder %v30_v20, 4 }
  0x12   :  { %v36_v43 = vor.u32 %v35_v37, %v34_v27  ;;  %v39_v44 = vor.u32 %v38_v38, %v37_v29  ;;  %v42_v45 = vor.u32 %v41_v39, %v40_v31  ;;  %v239_v58 = vsub.s32 32, %v238_v50 }
  0x13   :  { %v45_v47 = vor.u32 %v44_v40, %v43_v33  ;;  %v48_v48 = vor.u32 %v47_v42, %v46_v35  ;;  %v241_v62 = vshll.u32 %v3129_v26, %v238_v50  ;;  %v244_v13 = vshll.u32 %v3130_v28, %v238_v50 }
  0x14   :  { %v53_v51 = vsel %vm49_vm2, %v33_v36, %v36_v43  ;;  %v54_v52 = vsel %vm52_vm5, %v42_v45, 2102212464  ;;  %v57_v53 = vsel %vm49_vm2, %v36_v43, %v39_v44  ;;  %v61_v54 = vsel %vm49_vm2, %v39_v44, %v42_v45 }
  0x15   :  { %v55_v55 = vsel %vm51_vm4, %v39_v44, %v54_v52  ;;  %v58_v56 = vsel %vm52_vm5, %v45_v47, 920167782  ;;  %v62_v57 = vsel %vm52_vm5, %v48_v48, 1326507024  ;;  %v240_v7 = vshrl.u32 %v3129_v26, %v239_v58 }
  0x16   :  { %v56_v59 = vsel %vm50_vm3, %v53_v51, %v55_v55  ;;  %v59_v60 = vsel %vm51_vm4, %v42_v45, %v58_v56  ;;  %v63_v61 = vsel %vm51_vm4, %v45_v47, %v62_v57  ;;  %v242_v12 = vshrl.u32 %v3130_v28, %v239_v58 }
  0x17   :  { %v60_v63 = vsel %vm50_vm3, %v57_v53, %v59_v60  ;;  %v64_v3 = vsel %vm50_vm3, %v61_v54, %v63_v61  ;;  %v72_v6 = vmul.u32 %v3169_v22, %v56_v59  ;;  %v245_v14 = vshrl.u32 %v3131_v30, %v239_v58 }
  0x18   :  { %v3200_v8 = vmul.u32.u64.low %v3169_v22, %v64_v3  ;;  %v3201_v9 = vmul.u32.u64.high %v3169_v22, %v64_v3, %v3200_v8  ;;  %v3204_v10 = vmul.u32.u64.low %v3169_v22, %v60_v63  ;;  %v3205_v11 = vmul.u32.u64.high %v3169_v22, %v60_v63, %v3204_v10 }
  0x19   :  { %v247_v15 = vshll.u32 %v3131_v30, %v238_v50  ;;  %v248_v16 = vshrl.u32 %v3132_v32, %v239_v58  ;;  %v250_v17 = vshll.u32 %v3132_v32, %v238_v50  ;;  %v251_v18 = vshrl.u32 %v3133_v34, %v239_v58 }
  0x1a   :  { %v253_v19 = vshll.u32 %v3133_v34, %v238_v50  ;;  %v243_v20 = vor.u32 %v242_v12, %v241_v62  ;;  %v246_v21 = vor.u32 %v245_v14, %v244_v13  ;;  %v254_v22 = vshrl.u32 %v3134_v41, %v239_v58 }
  0x1b   :  { %vm256_vm6 = vcmp.lt.s32.totalorder %v237_v49, 1  ;;  %vm74_vm7 = vc.u32 %v3201_v9, %v3204_v10  ;;  %v75_v25 = vadd.s32 1, %v3205_v11  ;;  %v249_v27 = vor.u32 %v248_v16, %v247_v15 }
  0x1c   :  { %v441_v29 = vadd.s32 1, %v3173_v24  ;;  %v252_v31 = vor.u32 %v251_v18, %v250_v17  ;;  %v255_v33 = vor.u32 %v254_v22, %v253_v19  ;;  %vm257_vm8 = vcmp.lt.s32.totalorder %v237_v49, 2 }
  0x1d   :  { %vm258_vm9 = vcmp.lt.s32.totalorder %v237_v49, 3  ;;  %v76_v35 = vsel %vm74_vm7, %v75_v25, %v3205_v11  ;;  %vm259_vm10 = vcmp.lt.s32.totalorder %v237_v49, 4  ;;  %v260_v36 = vsel %vm256_vm6, %v240_v7, %v243_v20 }
  0x1e   :  { %v264_v37 = vsel %vm256_vm6, %v243_v20, %v246_v21  ;;  %v77_v38 = vadd.s32 %v76_v35, %v72_v6  ;;  %v261_v39 = vsel %vm259_vm10, %v249_v27, 2102212464  ;;  %v265_v40 = vsel %vm259_vm10, %v252_v31, 920167782 }
  0x1f   :  { %v268_v42 = vsel %vm256_vm6, %v246_v21, %v249_v27  ;;  %v262_v43 = vsel %vm258_vm9, %v246_v21, %v261_v39  ;;  %v266_v44 = vsel %vm258_vm9, %v249_v27, %v265_v40  ;;  %v269_v45 = vsel %vm259_vm10, %v255_v33, 1326507024 }
  0x20   :  { %vm442_vm11 = vcmp.gt.s32.totalorder %v441_v29, 0  ;;  %v78_v24 = vadd.s32 536870912, %v77_v38  ;;  %v267_v46 = vsel %vm257_vm8, %v264_v37, %v266_v44  ;;  %v270_v47 = vsel %vm258_vm9, %v252_v31, %v269_v45 }
  0x21   :  { %v431_v48 = vand.u32 2147483647, %v3160_v4  ;;  %v263_v50 = vsel %vm257_vm8, %v260_v36, %v262_v43  ;;  %v271_v51 = vsel %vm257_vm8, %v268_v42, %v270_v47  ;;  %v443_v57 = vsel %vm442_vm11, %v441_v29, 0 }
  0x22   :  { %v3230_v52 = vmul.u32.u64.low %v3171_v23, %v267_v46  ;;  %v3231_v53 = vmul.u32.u64.high %v3171_v23, %v267_v46, %v3230_v52  ;;  %v3234_v54 = vshrl.u32 %v78_v24, 30  ;;  %v445_v58 = vand.u32 31, %v443_v57  ;;  %v15_v46 = vld [vmem:[%s4880_s0 + $0x7] ss:$0 sm:$0xff] }
  0x23   :  { %v3237_v55 = vmul.u32.u64.low %v3171_v23, %v271_v51  ;;  %v3238_v56 = vmul.u32.u64.high %v3171_v23, %v271_v51, %v3237_v55  ;;  %v279_v60 = vmul.u32 %v3171_v23, %v263_v50  ;;  %v438_v62 = vand.u32 8388607, %v431_v48 }
  0x24   :  { %v80_v59 = vshll.u32 %v3234_v54, 30  ;;  %v282_v49 = vadd.s32 1, %v3231_v53  ;;  %v446_v3 = vsub.s32 32, %v445_v58  ;;  %v448_v13 = vshll.u32 %v3129_v26, %v445_v58 }
  0x25   :  { %vm281_vm12 = vc.u32 %v3238_v56, %v3230_v52  ;;  %v439_v11 = vor.u32 8388608, %v438_v62  ;;  %v451_v14 = vshll.u32 %v3130_v28, %v445_v58  ;;  %v454_v17 = vshll.u32 %v3131_v30, %v445_v58 }
  0x26   :  { %v81_v61 = vsub.s32 %v77_v38, %v80_v59  ;;  %v283_v63 = vsel %vm281_vm12, %v282_v49, %v3231_v53  ;;  %v449_v23 = vshrl.u32 %v3130_v28, %v446_v3  ;;  %v452_v16 = vshrl.u32 %v3131_v30, %v446_v3 }
  0x27   :  { %v284_v7 = vadd.s32 %v283_v63, %v279_v60  ;;  %v455_v18 = vshrl.u32 %v3132_v32, %v446_v3  ;;  %v444_v20 = vshrl.u32 %v443_v57, 5  ;;  %v457_v21 = vshll.u32 %v3132_v32, %v445_v58 }
  0x28   :  { %v83_v6 = vsub.s32 0, %v81_v61  ;;  %v458_v22 = vshrl.u32 %v3133_v34, %v446_v3  ;;  %v73_v25 = vadd.s32 %v3204_v10, %v3201_v9  ;;  %v3260_v29 = vshll.u32 %v439_v11, 8  ;;  %v3272_v10 = vld [vmem:[%s4880_s0 + $0xb] ss:$0 sm:$0xff] }
  0x29   :  { %v285_v12 = vadd.s32 536870912, %v284_v7  ;;  %v447_v33 = vshrl.u32 %v3129_v26, %v446_v3  ;;  %v460_v35 = vshll.u32 %v3133_v34, %v445_v58  ;;  %v461_v36 = vshrl.u32 %v3134_v41, %v446_v3 }
  0x2a   :  { %v2928_v8 = vmin.u32 %v83_v6, %v81_v61  ;;  %v450_v37 = vor.u32 %v449_v23, %v448_v13  ;;  %v453_v38 = vor.u32 %v452_v16, %v451_v14  ;;  %v456_v39 = vor.u32 %v455_v18, %v454_v17 }
  0x2b   :  { %v3254_v19 = vshrl.u32 %v285_v12, 30  ;;  %v459_v9 = vor.u32 %v458_v22, %v457_v21  ;;  %vm466_vm15 = vcmp.lt.s32.totalorder %v444_v20, 4  ;;  %v103_v47 = vsub.s32 4, %v3234_v54 }
  0x2c   :  { %v85_v15 = vclz %v2928_v8  ;;  %v468_v24 = vsel %vm466_vm15, %v456_v39, 2102212464  ;;  %v462_v51 = vor.u32 %v461_v36, %v460_v35  ;;  %vm463_vm1 = vcmp.lt.s32.totalorder %v444_v20, 1 }
  0x2d   :  { %v287_v31 = vshll.u32 %v3254_v19, 30  ;;  %vm465_vm2 = vcmp.lt.s32.totalorder %v444_v20, 3  ;;  %v754_v57 = vand.u32 2139095040, %v3272_v10  ;;  %vm464_vm3 = vcmp.lt.s32.totalorder %v444_v20, 2 }
  0x2e   :  { %v2929_v27 = vadd.s32 4294967294, %v85_v15  ;;  %v467_v59 = vsel %vm463_vm1, %v447_v33, %v450_v37  ;;  %v469_v2 = vsel %vm465_vm2, %v453_v38, %v468_v24  ;;  %vm226_vm4 = vcmp.lt.s32.totalorder %v3153_v1, 0 }
  0x2f   :  { %v3267_v42 = vsub.s32 %v284_v7, %v287_v31  ;;  %v472_v62 = vsel %vm466_vm15, %v459_v9, 920167782  ;;  %v475_v6 = vsel %vm463_vm1, %v453_v38, %v456_v39  ;;  %v476_v7 = vsel %vm466_vm15, %v462_v51, 1326507024 }
  0x30   :  { %vm2930_vm14 = vcmp.lt.s32.totalorder %v2929_v27, 0  ;;  %v473_v3 = vsel %vm465_vm2, %v456_v39, %v472_v62  ;;  %v104_v12 = vsel %vm19_vm13, %v103_v47, %v3234_v54  ;;  %v280_v13 = vadd.s32 %v3230_v52, %v3238_v56 }
  0x31   :  { %v88_v40 = vsel %vm2930_vm14, 0, %v2929_v27  ;;  %v290_v50 = vsub.s32 0, %v3267_v42  ;;  %v470_v14 = vsel %vm464_vm3, %v467_v59, %v469_v2  ;;  %v477_v16 = vsel %vm465_vm2, %v459_v9, %v476_v7  ;;  %v14_v2 = vld [vmem:[%s4880_s0 + $0x6] ss:$0 sm:$0xff] }
  0x32   :  { %v89_v43 = vsub.s32 32, %v88_v40  ;;  %v90_v44 = vshll.u32 %v81_v61, %v88_v40  ;;  %v93_v45 = vsub.s32 4294967266, %v88_v40  ;;  %v471_v61 = vsel %vm463_vm1, %v450_v37, %v453_v38 }
  0x33   :  { %v2936_v58 = vmin.u32 %v290_v50, %v3267_v42  ;;  %v474_v15 = vsel %vm464_vm3, %v471_v61, %v473_v3  ;;  %v478_v18 = vsel %vm464_vm3, %v475_v6, %v477_v16  ;;  %v310_v54 = vsub.s32 4, %v3254_v19 }
  0x34   :  { %v91_v53 = vshrl.u32 %v73_v25, %v89_v43  ;;  %v94_v55 = vadd.s32 127, %v93_v45  ;;  %v3303_v21 = vmul.u32.u64.low %v3260_v29, %v474_v15  ;;  %v3304_v22 = vmul.u32.u64.high %v3260_v29, %v474_v15, %v3303_v21 }
  0x35   :  { %v292_v63 = vclz %v2936_v58  ;;  %v3309_v52 = vmul.u32.u64.low %v3260_v29, %v478_v18  ;;  %v3310_v56 = vmul.u32.u64.high %v3260_v29, %v478_v18, %v3309_v52  ;;  %v106_v27 = vsel %vm3277_vm0, 0, %v104_v12  ;;  %v3352_v12 = vld [vmem:[%s4880_s0 + $0xc] ss:$0 sm:$0xff] }
  0x36   :  { %v92_v60 = vor.u32 %v91_v53, %v90_v44  ;;  %v95_v49 = vshll.u32 %v94_v55, 23  ;;  %v755_v33 = vshrl.u32 %v754_v57, 23  ;;  %v486_v37 = vmul.u32 %v3260_v29, %v470_v14 }
  0x37   :  { %v2937_v23 = vadd.s32 4294967294, %v292_v63  ;;  %vm3318_vm6 = vcmp.le.f32.partialorder %v224_v5, 0.7853982  ;;  %v489_v40 = vadd.s32 1, %v3304_v22  ;;  %v311_v45 = vsel %vm226_vm4, %v310_v54, %v3254_v19 }
  0x38   :  { %v96_v8 = vor.u32 4788187, %v95_v49  ;;  %v99_v11 = vcvt.s32.f32 %v92_v60  ;;  %v2951_v9 = vadd.s32 4294967169, %v755_v33  ;;  %vm488_vm7 = vc.u32 %v3310_v56, %v3303_v21 }
  0x39   :  { %vm2938_vm5 = vcmp.lt.s32.totalorder %v2937_v23, 0  ;;  %v490_v5 = vsel %vm488_vm7, %v489_v40, %v3304_v22  ;;  %v313_v19 = vsel %vm3318_vm6, 0, %v311_v45  ;;  %v751_v55 = vand.u32 2147483647, %v3272_v10 }
  0x3a   :  { %v97_v17 = vand.u32 2147483647, %v96_v8  ;;  %v295_v31 = vsel %vm2938_vm5, 0, %v2937_v23  ;;  %v761_v24 = vadd.s32 1, %v2951_v9  ;;  %v491_v53 = vadd.s32 %v490_v5, %v486_v37 }
  0x3b   :  { %v296_v20 = vsub.s32 32, %v295_v31  ;;  %v297_v35 = vshll.u32 %v3267_v42, %v295_v31  ;;  %v300_v36 = vsub.s32 4294967266, %v295_v31  ;;  %v213_v42 = vadd.s32 3, %v106_v27 }
  0x3c   :  { %v100_v25 = vmul.f32 %v99_v11, %v97_v17  ;;  %vm762_vm8 = vcmp.gt.s32.totalorder %v761_v24, 0  ;;  %v492_v59 = vadd.s32 536870912, %v491_v53  ;;  %v3343_v60 = vand.u32 3, %v106_v27 }
  0x3d   :  { %v298_v43 = vshrl.u32 %v280_v13, %v296_v20  ;;  %v301_v44 = vadd.s32 127, %v300_v36  ;;  %v763_v49 = vsel %vm762_vm8, %v761_v24, 0  ;;  %v3345_v61 = vand.u32 3, %v213_v42  ;;  %v3538_v13 = vld [vmem:[%s4880_s0 + $0xd] ss:$0 sm:$0xff] }
  0x3e   :  { %v101_v38 = vxor.u32 2147483648, %v100_v25  ;;  %v493_v63 = vshrl.u32 %v492_v59, 30  ;;  %v765_v3 = vand.u32 31, %v763_v49  ;;  %v420_v6 = vadd.s32 3, %v313_v19 }
  0x3f   :  { %v299_v50 = vor.u32 %v298_v43, %v297_v35  ;;  %v302_v51 = vshll.u32 %v301_v44, 23  ;;  %v758_v7 = vand.u32 8388607, %v751_v55  ;;  %vm3356_vm9 = vcmp.le.f32.partialorder %v431_v48, 0.7853982 }
  0x40   :  { %v102_v29 = vsel %vm19_vm13, %v101_v38, %v100_v25  ;;  %v494_v11 = vshll.u32 %v493_v63, 30  ;;  %vm4882_vm10 = vcmp.lt.s32.totalorder %v3160_v4, 0  ;;  %v3361_v23 = vmul.f32 0.5, %v14_v2 }
  0x41   :  { %v105_v47 = vsel %vm3277_vm0, %v3148_v0, %v102_v29  ;;  %v303_v57 = vor.u32 4788187, %v302_v51  ;;  %v306_v58 = vcvt.s32.f32 %v299_v50  ;;  %v3363_v14 = vmul.f32 0.5, %v15_v46 }
  0x42   :  { %3077 = vcosq.f32 %v105_v47  ;;  %vm115_vm11 = vcmp.eq.s32.totalorder %v3343_v60, 2  ;;  %vm219_vm12 = vcmp.eq.s32.totalorder %v3345_v61, 2  ;;  %v3367_v16 = vsub.s32 %v491_v53, %v494_v11 }
  0x43   :  { %3079 = vsinq.f32 %v105_v47  ;;  %v304_v62 = vand.u32 2147483647, %v303_v57  ;;  %v517_v17 = vsub.s32 4, %v493_v63  ;;  %v766_v18 = vsub.s32 32, %v765_v3 }
  0x44   :  { %v3369_v22 = vand.u32 3, %v313_v19  ;;  %v3371_v48 = vand.u32 3, %v420_v6  ;;  %v759_v54 = vor.u32 8388608, %v758_v7  ;;  %v961_v52 = vand.u32 2139095040, %v3352_v12 }
  0x45   :  { %v307_v8 = vmul.f32 %v306_v58, %v304_v62  ;;  %v497_v27 = vsub.s32 0, %v3367_v16  ;;  %v3377_v31 = vshrl.u32 %v763_v49, 5  ;;  %v768_v33 = vshll.u32 %v3129_v26, %v765_v3 }
  0x46   :  { %v771_v35 = vshll.u32 %v3130_v28, %v765_v3  ;;  %v774_v36 = vshll.u32 %v3131_v30, %v765_v3  ;;  %v777_v37 = vshll.u32 %v3132_v32, %v765_v3  ;;  %vm112_vm13 = vcmp.eq.s32.totalorder %v3343_v60, 0 }
  0x47   :  { %v308_v15 = vxor.u32 2147483648, %v307_v8  ;;  %v2944_v38 = vmin.u32 %v497_v27, %v3367_v16  ;;  %v518_v40 = vsel %vm4882_vm10, %v517_v17, %v493_v63  ;;  %v769_v9 = vshrl.u32 %v3130_v28, %v766_v18 }
  0x48   :  { %v772_v39 = vshrl.u32 %v3131_v30, %v766_v18  ;;  %v775_v43 = vshrl.u32 %v3132_v32, %v766_v18  ;;  %v778_v44 = vshrl.u32 %v3133_v34, %v766_v18  ;;  %v487_v29 = vadd.s32 %v3303_v21, %v3310_v56 }
  0x49   :  { %v309_v25 = vsel %vm226_vm4, %v308_v15, %v307_v8  ;;  %v499_v42 = vclz %v2944_v38  ;;  %v780_v5 = vshll.u32 %v3133_v34, %v765_v3  ;;  %v781_v24 = vshrl.u32 %v3134_v41, %v766_v18 }
  0x4a   :  { %v312_v20 = vsel %vm3318_vm6, %v3153_v1, %v309_v25  ;;  %vm216_vm14 = vcmp.eq.s32.totalorder %v3345_v61, 0  ;;  %v3402_v51 = vshll.u32 %v759_v54, 8  ;;  %v958_v53 = vand.u32 2147483647, %v3352_v12 }
  0x4b   :  { %3081 = vcosq.f32 %v312_v20  ;;  %v962_v19 = vshrl.u32 %v961_v52, 23  ;;  %v2945_v57 = vadd.s32 4294967294, %v499_v42  ;;  %v3407_v58 = vsel %vm3356_vm9, 0, %v518_v40 }
  0x4c   :  { %3083 = vsinq.f32 %v312_v20  ;;  %v767_v21 = vshrl.u32 %v3129_v26, %v766_v18  ;;  %v770_v56 = vor.u32 %v769_v9, %v768_v33  ;;  %vm111_vm15 = vcmp.lt.s32.totalorder %v3343_v60, 2 }
  0x4d   :  { %vm322_vm0 = vcmp.eq.s32.totalorder %v3369_v22, 2  ;;  %v773_v59 = vor.u32 %v772_v39, %v771_v35  ;;  %v776_v2 = vor.u32 %v775_v43, %v774_v36  ;;  %v779_v46 = vor.u32 %v778_v44, %v777_v37 }
  0x4e   :  { %vm783_vm1 = vcmp.lt.s32.totalorder %v3377_v31, 1  ;;  %vm215_vm2 = vcmp.lt.s32.totalorder %v3345_v61, 2  ;;  %vm2946_vm5 = vcmp.lt.s32.totalorder %v2945_v57, 0  ;;  %v782_v62 = vor.u32 %v781_v24, %v780_v5 }
  0x4f   :  { %v3394_v45 = vpop.eup %3077  ;;  %vm786_vm6 = vcmp.lt.s32.totalorder %v3377_v31, 4  ;;  %vm318_vm7 = vcmp.lt.s32.totalorder %v3369_v22, 2  ;;  %vm423_vm8 = vcmp.eq.s32.totalorder %v3371_v48, 0  ;;  %v502_v6 = vsel %vm2946_vm5, 0, %v2945_v57 }
  0x50   :  { %v3080_v47 = vpop.eup %3079  ;;  %v116_v50 = vxor.u32 2147483648, %v3394_v45  ;;  %vm785_vm10 = vcmp.lt.s32.totalorder %v3377_v31, 3  ;;  %vm109_vm3 = vweird.f32 %v3148_v0  ;;  %v503_v7 = vsub.s32 32, %v502_v6  ;;  %v8_v0 = vld [vmem:[%s4880_s0] ss:$0 sm:$0xff] }
  0x51   :  { %v113_v49 = vxor.u32 2147483648, %v3080_v47  ;;  %v504_v8 = vshll.u32 %v3367_v16, %v502_v6  ;;  %vm784_vm4 = vcmp.lt.s32.totalorder %v3377_v31, 2  ;;  %v787_v11 = vsel %vm783_vm1, %v767_v21, %v770_v56 }
  0x52   :  { %v117_v63 = vsel %vm115_vm11, %v116_v50, %v3080_v47  ;;  %v221_v3 = vsel %vm219_vm12, %v116_v50, %v3080_v47  ;;  %v507_v15 = vsub.s32 4294967266, %v502_v6  ;;  %v788_v17 = vsel %vm786_vm6, %v776_v2, 2102212464 }
  0x53   :  { %v791_v18 = vsel %vm783_vm1, %v770_v56, %v773_v59  ;;  %v792_v54 = vsel %vm786_vm6, %v779_v46, 920167782  ;;  %vm316_vm11 = vweird.f32 %v3153_v1  ;;  %vm422_vm12 = vcmp.lt.s32.totalorder %v3371_v48, 2 }
  0x54   :  { %v505_v16 = vshrl.u32 %v487_v29, %v503_v7  ;;  %v789_v52 = vsel %vm785_vm10, %v773_v59, %v788_v17  ;;  %v793_v25 = vsel %vm785_vm10, %v776_v2, %v792_v54  ;;  %v795_v27 = vsel %vm783_vm1, %v773_v59, %v776_v2 }
  0x55   :  { %v114_v33 = vsel %vm112_vm13, %v3394_v45, %v113_v49  ;;  %v508_v20 = vadd.s32 127, %v507_v15  ;;  %v794_v35 = vsel %vm784_vm4, %v791_v18, %v793_v25  ;;  %v796_v36 = vsel %vm786_vm6, %v782_v62, 1326507024 }
  0x56   :  { %v506_v37 = vor.u32 %v505_v16, %v504_v8  ;;  %v797_v38 = vsel %vm785_vm10, %v779_v46, %v796_v36  ;;  %v3453_v40 = vmul.u32.u64.low %v3402_v51, %v794_v35  ;;  %v3454_v9 = vmul.u32.u64.high %v3402_v51, %v794_v35, %v3453_v40 }
  0x57   :  { %v509_v43 = vshll.u32 %v508_v20, 23  ;;  %v790_v44 = vsel %vm784_vm4, %v787_v11, %v789_v52  ;;  %v798_v29 = vsel %vm784_vm4, %v795_v27, %v797_v38  ;;  %v2959_v42 = vadd.s32 4294967169, %v962_v19 }
  0x58   :  { %v3082_v39 = vpop.eup %3081  ;;  %v218_v24 = vsel %vm216_vm14, %v3394_v45, %v113_v49  ;;  %v3465_v50 = vmul.u32.u64.low %v3402_v51, %v798_v29  ;;  %v3466_v57 = vmul.u32.u64.high %v3402_v51, %v798_v29, %v3465_v50  ;;  %v513_v59 = vcvt.s32.f32 %v506_v37 }
  0x59   :  { %v3084_v5 = vpop.eup %3083  ;;  %v323_v47 = vxor.u32 2147483648, %v3082_v39  ;;  %v510_v56 = vor.u32 4788187, %v509_v43  ;;  %v968_v2 = vadd.s32 1, %v2959_v42  ;;  %v118_v46 = vsel %vm111_vm15, %v114_v33, %v117_v63 }
  0x5a   :  { %v320_v21 = vxor.u32 2147483648, %v3084_v5  ;;  %v806_v19 = vmul.u32 %v3402_v51, %v790_v44  ;;  %v809_v62 = vadd.s32 1, %v3454_v9  ;;  %v222_v45 = vsel %vm215_vm2, %v218_v24, %v221_v3 }
  0x5b   :  { %v324_v31 = vsel %vm322_vm0, %v323_v47, %v3084_v5  ;;  %vm4896_vm10 = vcmp.eq.s32.totalorder %v3369_v22, 0  ;;  %vm4897_vm13 = vcmp.eq.s32.totalorder %v3371_v48, 2  ;;  %v511_v7 = vand.u32 2147483647, %v510_v56  ;;  %v16_v22 = vld [vmem:[%s4880_s0 + $0x20] ss:$0 sm:$0xff] }
  0x5c   :  { %v321_v49 = vsel %vm4896_vm10, %v3082_v39, %v320_v21  ;;  %v428_v6 = vsel %vm4897_vm13, %v323_v47, %v3084_v5  ;;  %v425_v63 = vsel %vm423_vm8, %v3082_v39, %v320_v21  ;;  %vm808_vm14 = vc.u32 %v3466_v57, %v3453_v40 }
  0x5d   :  { %v325_v60 = vsel %vm318_vm7, %v321_v49, %v324_v31  ;;  %vm969_vm15 = vcmp.gt.s32.totalorder %v968_v2, 0  ;;  %v3488_v61 = vsel %vm109_vm3, nan, %v118_v46  ;;  %v514_v3 = vmul.f32 %v513_v59, %v511_v7 }
  0x5e   :  { %v3492_v51 = vsel %vm316_vm11, nan, %v325_v60  ;;  %v810_v8 = vsel %vm808_vm14, %v809_v62, %v3454_v9  ;;  %v3500_v11 = vsel %vm109_vm3, nan, %v222_v45  ;;  %v965_v18 = vand.u32 8388607, %v958_v53 }
  0x5f   :  { %v643_v15 = vmul.f32 %v3492_v51, %v3488_v61  ;;  %v811_v17 = vadd.s32 %v810_v8, %v806_v19  ;;  %v429_v54 = vsel %vm422_vm12, %v425_v63, %v428_v6  ;;  %v515_v16 = vxor.u32 2147483648, %v514_v3 }
  0x60   :  { %v653_v52 = vmul.f32 %v3492_v51, %v3500_v11  ;;  %v970_v25 = vsel %vm969_vm15, %v968_v2, 0  ;;  %v627_v27 = vadd.s32 3, %v3407_v58  ;;  %vm4898_vm0 = vcmp.lt.s32.totalorder %v3160_v4, 0 }
  0x61   :  { %v644_v33 = vmul.f32 %v643_v15, %v3361_v23  ;;  %v812_v20 = vadd.s32 536870912, %v811_v17  ;;  %v516_v35 = vsel %vm4898_vm0, %v515_v16, %v514_v3  ;;  %v3517_v36 = vmul.f32 0.5, %v16_v22 }
  0x62   :  { %v972_v48 = vand.u32 31, %v970_v25  ;;  %v3521_v37 = vsel %vm316_vm11, nan, %v429_v54  ;;  %v519_v38 = vsel %vm3356_vm9, %v3160_v4, %v516_v35  ;;  %v966_v39 = vor.u32 8388608, %v965_v18 }
  0x63   :  { %v3526_v9 = vshrl.u32 %v812_v20, 30  ;;  %3085 = vcosq.f32 %v519_v38  ;;  %v654_v43 = vmul.f32 %v653_v52, %v3363_v14  ;;  %v663_v44 = vsub.f32 0.0, %v3521_v37 }
  0x64   :  { %v669_v29 = vsub.f32 %v8_v0, %v644_v33  ;;  %3087 = vsinq.f32 %v519_v38  ;;  %v3531_v42 = vand.u32 3, %v3407_v58  ;;  %v3533_v1 = vand.u32 3, %v627_v27 }
  0x65   :  { %v678_v5 = vadd.f32 %v644_v33, %v8_v0  ;;  %v814_v24 = vshll.u32 %v3526_v9, 30  ;;  %v973_v47 = vsub.s32 32, %v972_v48  ;;  %v3543_v50 = vadd.s32 %v3453_v40, %v3466_v57 }
  0x66   :  { %v3546_v21 = vmul.f32 %v663_v44, %v3517_v36  ;;  %v3548_v58 = vsub.f32 %v669_v29, %v654_v43  ;;  %v3550_v56 = vshrl.u32 %v970_v25, 5  ;;  %v3552_v59 = vshll.u32 %v966_v39, 8 }
  0x67   :  { %vm529_vm9 = vcmp.eq.s32.totalorder %v3531_v42, 2  ;;  %vm633_vm1 = vcmp.eq.s32.totalorder %v3533_v1, 2  ;;  %v3556_v2 = vsub.f32 %v678_v5, %v654_v43  ;;  %v3558_v46 = vsub.s32 %v811_v17, %v814_v24 }
  0x68   :  { %v975_v40 = vshll.u32 %v3129_v26, %v972_v48  ;;  %v1168_v57 = vand.u32 2139095040, %v3538_v13  ;;  %vm526_vm2 = vcmp.eq.s32.totalorder %v3531_v42, 0  ;;  %vm630_vm3 = vcmp.eq.s32.totalorder %v3533_v1, 0 }
  0x69   :  { %v3564_v31 = vadd.f32 %v678_v5, %v654_v43  ;;  %v976_v19 = vshrl.u32 %v3130_v28, %v973_v47  ;;  %v978_v62 = vshll.u32 %v3130_v28, %v972_v48  ;;  %v984_v45 = vshll.u32 %v3132_v32, %v972_v48 }
  0x6a   :  { %vm525_vm4 = vcmp.lt.s32.totalorder %v3531_v42, 2  ;;  %vm629_vm5 = vcmp.lt.s32.totalorder %v3533_v1, 2  ;;  %v817_v49 = vsub.s32 0, %v3558_v46  ;;  %v979_v6 = vshrl.u32 %v3131_v30, %v973_v47 }
  0x6b   :  { %v981_v7 = vshll.u32 %v3131_v30, %v972_v48  ;;  %v982_v60 = vshrl.u32 %v3132_v32, %v973_v47  ;;  %vm523_vm6 = vweird.f32 %v3160_v4  ;;  %v671_v63 = vsub.f32 %v3548_v58, %v3546_v21 }
  0x6c   :  { %v3578_v3 = vadd.f32 %v669_v29, %v654_v43  ;;  %v974_v8 = vshrl.u32 %v3129_v26, %v973_v47  ;;  %v985_v22 = vshrl.u32 %v3133_v34, %v973_v47  ;;  %v680_v15 = vsub.f32 %v3556_v2, %v3546_v21 }
  0x6d   :  { %v688_v17 = vsub.f32 %v3564_v31, %v3546_v21  ;;  %v3588_v18 = vadd.f32 %v3548_v58, %v3546_v21  ;;  %v2952_v54 = vmin.u32 %v817_v49, %v3558_v46  ;;  %v977_v16 = vor.u32 %v976_v19, %v975_v40 }
  0x6e   :  { %v986_v52 = vor.u32 %v985_v22, %v984_v45  ;;  %v987_v25 = vshll.u32 %v3133_v34, %v972_v48  ;;  %v988_v0 = vshrl.u32 %v3134_v41, %v973_v47  ;;  %v980_v33 = vor.u32 %v979_v6, %v978_v62 }
  0x6f   :  { %v819_v27 = vclz %v2952_v54  ;;  %v983_v20 = vor.u32 %v982_v60, %v981_v7  ;;  %vm993_vm7 = vcmp.lt.s32.totalorder %v3550_v56, 4  ;;  %v709_v35 = vsub.f32 %v3578_v3, %v3546_v21 }
  0x70   :  { %v3598_v38 = vadd.f32 %v3556_v2, %v3546_v21  ;;  %v3602_v39 = vadd.f32 %v3564_v31, %v3546_v21  ;;  %vm990_vm8 = vcmp.lt.s32.totalorder %v3550_v56, 1  ;;  %v3086_v48 = vpop.eup %3085  ;;  %v3607_v43 = vadd.f32 %v3578_v3, %v3546_v21 }
  0x71   :  { %v2953_v44 = vadd.s32 4294967294, %v819_v27  ;;  %vm992_vm11 = vcmp.lt.s32.totalorder %v3550_v56, 3  ;;  %v995_v29 = vsel %vm993_vm7, %v983_v20, 2102212464  ;;  %v3088_v5 = vpop.eup %3087  ;;  %v530_v24 = vxor.u32 2147483648, %v3086_v48 }
  0x72   :  { %v989_v47 = vor.u32 %v988_v0, %v987_v25  ;;  %vm991_vm12 = vcmp.lt.s32.totalorder %v3550_v56, 2  ;;  %v994_v40 = vsel %vm990_vm8, %v974_v8, %v977_v16  ;;  %v999_v19 = vsel %vm993_vm7, %v986_v52, 920167782 }
  0x73   :  { %v527_v62 = vxor.u32 2147483648, %v3088_v5  ;;  %vm2954_vm10 = vcmp.lt.s32.totalorder %v2953_v44, 0  ;;  %v996_v45 = vsel %vm992_vm11, %v980_v33, %v995_v29  ;;  %v998_v49 = vsel %vm990_vm8, %v977_v16, %v980_v33 }
  0x74   :  { %v531_v6 = vsel %vm529_vm9, %v530_v24, %v3088_v5  ;;  %v635_v7 = vsel %vm633_vm1, %v530_v24, %v3088_v5  ;;  %v822_v60 = vsel %vm2954_vm10, 0, %v2953_v44  ;;  %v1002_v8 = vsel %vm990_vm8, %v980_v33, %v983_v20 }
  0x75   :  { %v528_v22 = vsel %vm526_vm2, %v3086_v48, %v527_v62  ;;  %v632_v54 = vsel %vm630_vm3, %v3086_v48, %v527_v62  ;;  %v823_v25 = vsub.s32 32, %v822_v60  ;;  %v1000_v16 = vsel %vm992_vm11, %v983_v20, %v999_v19 }
  0x76   :  { %v532_v0 = vsel %vm525_vm4, %v528_v22, %v531_v6  ;;  %v636_v27 = vsel %vm629_vm5, %v632_v54, %v635_v7  ;;  %v824_v44 = vshll.u32 %v3558_v46, %v822_v60  ;;  %v1003_v33 = vsel %vm993_vm7, %v989_v47, 1326507024 }
  0x77   :  { %v533_v29 = vsel %vm523_vm6, nan, %v532_v0  ;;  %v637_v48 = vsel %vm523_vm6, nan, %v636_v27  ;;  %v825_v5 = vshrl.u32 %v3543_v50, %v823_v25  ;;  %v827_v20 = vsub.s32 4294967266, %v822_v60 }
  0x78   :  { %v638_v42 = vmul.f32 %v637_v48, %v3521_v37  ;;  %v639_v24 = vmul.f32 %v533_v29, %v3521_v37  ;;  %v646_v1 = vmul.f32 %v533_v29, %v3500_v11  ;;  %v650_v46 = vmul.f32 %v637_v48, %v3500_v11 }
  0x79   :  { %v656_v19 = vmul.f32 %v533_v29, %v3488_v61  ;;  %v660_v47 = vmul.f32 %v637_v48, %v3488_v61  ;;  %v665_v62 = vmul.f32 %v637_v48, %v3492_v51  ;;  %v1004_v4 = vsel %vm992_vm11, %v986_v52, %v1003_v33 }
  0x7a   :  { %v645_v50 = vmul.f32 %v638_v42, %v3488_v61  ;;  %v649_v6 = vmul.f32 %v639_v24, %v3488_v61  ;;  %v655_v7 = vmul.f32 %v638_v42, %v3500_v11  ;;  %v659_v37 = vmul.f32 %v639_v24, %v3500_v11  ;;  %v9_v61 = vld [vmem:[%s4880_s0 + $0x1] ss:$0 sm:$0xff] }
  0x7b   :  { %v667_v60 = vmul.f32 %v533_v29, %v3492_v51  ;;  %vm4889_vm13 = vcmask 1040384   ;;  %v3659_v22 = vor.u32 %v825_v5, %v824_v44  ;;  %v828_v54 = vadd.s32 127, %v827_v20  ;;  %v10_v51 = vld [vmem:[%s4880_s0 + $0x2] ss:$0 sm:$0xff] }
  0x7c   :  { %v3663_v25 = vsel %vm991_vm12, %v994_v40, %v996_v45  ;;  %v647_v0 = vsub.f32 %v645_v50, %v646_v1  ;;  %v651_v52 = vadd.f32 %v650_v46, %v649_v6  ;;  %v657_v27 = vadd.f32 %v656_v19, %v655_v7 }
  0x7d   :  { %v661_v33 = vsub.f32 %v659_v37, %v660_v47  ;;  %vm4888_vm14 = vcmask 1041408   ;;  %v3672_v11 = vmul.f32 %v665_v62, %v3517_v36  ;;  %vm4887_vm15 = vcmask 1042432  }
  0x7e   :  { %v829_v44 = vshll.u32 %v828_v54, 23  ;;  %v1001_v40 = vsel %vm991_vm12, %v998_v49, %v1000_v16  ;;  %v1005_v45 = vsel %vm991_vm12, %v1002_v8, %v1004_v4  ;;  %v648_v29 = vmul.f32 %v647_v0, %v3361_v23 }
  0x7f   :  { %v652_v48 = vmul.f32 %v651_v52, %v3361_v23  ;;  %v658_v5 = vmul.f32 %v657_v27, %v3363_v14  ;;  %v662_v20 = vmul.f32 %v661_v33, %v3363_v14  ;;  %vm4886_vm0 = vcmask 1043456  }
  0x80   :  { %v668_v42 = vmul.f32 %v667_v60, %v3517_v36  ;;  %vm4885_vm9 = vcmask 1044480   ;;  %v3683_v24 = vor.u32 4788187, %v829_v44  ;;  %v833_v1 = vcvt.s32.f32 %v3659_v22 }
  0x81   :  { %v1013_v56 = vmul.u32 %v3552_v59, %v3663_v25  ;;  %v672_v49 = vsub.f32 %v9_v61, %v648_v29  ;;  %v675_v8 = vsub.f32 %v10_v51, %v652_v48  ;;  %v681_v16 = vadd.f32 %v648_v29, %v9_v61 }
  0x82   :  { %v684_v46 = vadd.f32 %v652_v48, %v10_v51  ;;  %vm4884_vm1 = vcmask 1045504   ;;  %vm4883_vm2 = vcmask 1046528   ;;  %v1169_v27 = vshrl.u32 %v1168_v57, 23 }
  0x83   :  { %v3689_v23 = vmul.u32.u64.low %v3552_v59, %v1005_v45  ;;  %v3690_v14 = vmul.u32.u64.high %v3552_v59, %v1005_v45, %v3689_v23  ;;  %v3693_v36 = vmul.u32.u64.low %v3552_v59, %v1001_v40  ;;  %v3694_v19 = vmul.u32.u64.high %v3552_v59, %v1001_v40, %v3693_v36 }
  0x84   :  { %v673_v47 = vsub.f32 %v672_v49, %v658_v5  ;;  %v676_v62 = vsub.f32 %v675_v8, %v662_v20  ;;  %v682_v4 = vsub.f32 %v681_v16, %v658_v5  ;;  %v685_v50 = vsub.f32 %v684_v46, %v662_v20 }
  0x85   :  { %v689_v6 = vadd.f32 %v681_v16, %v658_v5  ;;  %v691_v7 = vadd.f32 %v684_v46, %v662_v20  ;;  %v710_v37 = vadd.f32 %v672_v49, %v658_v5  ;;  %v712_v60 = vadd.f32 %v675_v8, %v662_v20 }
  0x86   :  { %v674_v54 = vsub.f32 %v673_v47, %v3672_v11  ;;  %v677_v0 = vsub.f32 %v676_v62, %v668_v42  ;;  %v683_v52 = vsub.f32 %v682_v4, %v3672_v11  ;;  %v686_v33 = vsub.f32 %v685_v50, %v668_v42 }
  0x87   :  { %v692_v61 = vsub.f32 %v691_v7, %v668_v42  ;;  %v711_v51 = vsub.f32 %v710_v37, %v3672_v11  ;;  %v713_v44 = vsub.f32 %v712_v60, %v668_v42  ;;  %v690_v40 = vsub.f32 %v689_v6, %v3672_v11 }
  0x88   :  { %v694_v45 = vsel %vm4889_vm13, %v671_v63, %v674_v54  ;;  %v715_v29 = vadd.f32 %v673_v47, %v3672_v11  ;;  %v718_v48 = vadd.f32 %v682_v4, %v3672_v11  ;;  %v719_v20 = vadd.f32 %v685_v50, %v668_v42 }
  0x89   :  { %v696_v5 = vsel %vm4888_vm14, %v694_v45, %v677_v0  ;;  %v720_v57 = vsel %vm4889_vm13, %v692_v61, %v709_v35  ;;  %v729_v49 = vadd.f32 %v689_v6, %v3672_v11  ;;  %v716_v63 = vadd.f32 %v676_v62, %v668_v42 }
  0x8a   :  { %v698_v58 = vsel %vm4887_vm15, %v696_v5, %v680_v15  ;;  %v721_v8 = vsel %vm4888_vm14, %v720_v57, %v711_v51  ;;  %v730_v16 = vadd.f32 %v691_v7, %v668_v42  ;;  %v734_v47 = vsel %vm4889_vm13, %v718_v48, %v719_v20 }
  0x8b   :  { %v700_v46 = vsel %vm4886_vm0, %v698_v58, %v683_v52  ;;  %v722_v23 = vsel %vm4887_vm15, %v721_v8, %v713_v44  ;;  %v2967_v3 = vadd.s32 4294967169, %v1169_v27  ;;  %v732_v2 = vadd.f32 %v710_v37, %v3672_v11 }
  0x8c   :  { %v702_v35 = vsel %vm4885_vm9, %v700_v46, %v686_v33  ;;  %v723_v4 = vsel %vm4886_vm0, %v722_v23, %v3588_v18  ;;  %v735_v15 = vsel %vm4888_vm14, %v734_v47, %v3602_v39  ;;  %v733_v6 = vadd.f32 %v712_v60, %v668_v42 }
  0x8d   :  { %v704_v62 = vsel %vm4884_vm1, %v702_v35, %v688_v17  ;;  %v724_v50 = vsel %vm4885_vm9, %v723_v4, %v715_v29  ;;  %v736_v7 = vsel %vm4887_vm15, %v735_v15, %v729_v49  ;;  %v831_v11 = vand.u32 2147483647, %v3683_v24 }
  0x8e   :  { %v706_v54 = vsel %vm4883_vm2, %v704_v62, %v690_v40  ;;  %v725_v0 = vsel %vm4884_vm1, %v724_v50, %v716_v63  ;;  %v737_v18 = vsel %vm4886_vm0, %v736_v7, %v730_v16  ;;  %vm1015_vm3 = vc.u32 %v3690_v14, %v3693_v36 }
  0x8f   :  { %707 = vst [vmem:[%s4881_s1] sm:$0xff] %v706_v54  ;;  %v726_v21 = vsel %vm4883_vm2, %v725_v0, %v3598_v38  ;;  %v738_v31 = vsel %vm4885_vm9, %v737_v18, %v3607_v43  ;;  %v1016_v17 = vadd.s32 1, %v3694_v19  ;;  %v1175_v42 = vadd.s32 1, %v2967_v3  ;;  %v3803_v18 = vld [vmem:[%s4880_s0 + $0x13] ss:$0 sm:$0xff] }
  0x90   :  { %727 = vst [vmem:[%s4881_s1 + $0x20] sm:$0xff] %v726_v21  ;;  %v739_v39 = vsel %vm4884_vm1, %v738_v31, %v732_v2  ;;  %v834_v38 = vmul.f32 %v833_v1, %v831_v11  ;;  %vm753_vm5 = vcmp.lt.s32.totalorder %v3272_v10, 0  ;;  %vm3778_vm6 = vcmp.le.f32.partialorder %v751_v55, 0.7853982 }
  0x91   :  { %v740_v24 = vsel %vm4883_vm2, %v739_v39, %v733_v6  ;;  %v1017_v37 = vsel %vm1015_vm3, %v1016_v17, %v3694_v19  ;;  %vm1176_vm4 = vcmp.gt.s32.totalorder %v1175_v42, 0  ;;  %v1165_v19 = vand.u32 2147483647, %v3538_v13 }
  0x92   :  { %741 = vst [vmem:[%s4881_s1 + $0x40] sm:$0xff] %v740_v24  ;;  %v1018_v43 = vadd.s32 %v1017_v37, %v1013_v56  ;;  %v1177_v60 = vsel %vm1176_vm4, %v1175_v42, 0  ;;  %v835_v33 = vxor.u32 2147483648, %v834_v38  ;;  %v837_v16 = vsub.s32 4, %v3526_v9 }
  0x93   :  { %v1179_v27 = vand.u32 31, %v1177_v60  ;;  %v1178_v44 = vshrl.u32 %v1177_v60, 5  ;;  %v1172_v49 = vand.u32 8388607, %v1165_v19  ;;  %v1014_v11 = vadd.s32 %v3693_v36, %v3690_v14 }
  0x94   :  { %v1019_v52 = vadd.s32 536870912, %v1018_v43  ;;  %v836_v20 = vsel %vm753_vm5, %v835_v33, %v834_v38  ;;  %v838_v7 = vsel %vm753_vm5, %v837_v16, %v3526_v9  ;;  %v1481_v37 = vand.u32 2139095040, %v3803_v18 }
  0x95   :  { %v1180_v51 = vsub.s32 32, %v1179_v27  ;;  %v1191_v22 = vshll.u32 %v3132_v32, %v1179_v27  ;;  %v1182_v59 = vshll.u32 %v3129_v26, %v1179_v27  ;;  %v1185_v25 = vshll.u32 %v3130_v28, %v1179_v27 }
  0x96   :  { %v3763_v61 = vshrl.u32 %v1019_v52, 30  ;;  %v1188_v56 = vshll.u32 %v3131_v30, %v1179_v27  ;;  %v1194_v63 = vshll.u32 %v3133_v34, %v1179_v27  ;;  %vm1200_vm7 = vcmp.lt.s32.totalorder %v1178_v44, 4 }
  0x97   :  { %v1183_v40 = vshrl.u32 %v3130_v28, %v1180_v51  ;;  %v1186_v45 = vshrl.u32 %v3131_v30, %v1180_v51  ;;  %v1189_v29 = vshrl.u32 %v3132_v32, %v1180_v51  ;;  %v1192_v48 = vshrl.u32 %v3133_v34, %v1180_v51 }
  0x98   :  { %v1021_v1 = vshll.u32 %v3763_v61, 30  ;;  %v1195_v8 = vshrl.u32 %v3134_v41, %v1180_v51  ;;  %v839_v3 = vsel %vm3778_vm6, %v3272_v10, %v836_v20  ;;  %vm1197_vm8 = vcmp.lt.s32.totalorder %v1178_v44, 1 }
  0x99   :  { %v1193_v58 = vor.u32 %v1192_v48, %v1191_v22  ;;  %v1184_v23 = vor.u32 %v1183_v40, %v1182_v59  ;;  %v1187_v55 = vor.u32 %v1186_v45, %v1185_v25  ;;  %v1190_v47 = vor.u32 %v1189_v29, %v1188_v56 }
  0x9a   :  { %v1022_v57 = vsub.s32 %v1018_v43, %v1021_v1  ;;  %vm1199_vm11 = vcmp.lt.s32.totalorder %v1178_v44, 3  ;;  %v1173_v4 = vor.u32 8388608, %v1172_v49  ;;  %v1181_v2 = vshrl.u32 %v3129_v26, %v1180_v51 }
  0x9b   :  { %v1196_v15 = vor.u32 %v1195_v8, %v1194_v63  ;;  %v1206_v62 = vsel %vm1200_vm7, %v1193_v58, 920167782  ;;  %v1202_v6 = vsel %vm1200_vm7, %v1190_v47, 2102212464  ;;  %vm1198_vm12 = vcmp.lt.s32.totalorder %v1178_v44, 2 }
  0x9c   :  { %v1024_v46 = vsub.s32 0, %v1022_v57  ;;  %v1205_v54 = vsel %vm1197_vm8, %v1184_v23, %v1187_v55  ;;  %v1207_v0 = vsel %vm1199_vm11, %v1190_v47, %v1206_v62  ;;  %3089 = vcosq.f32 %v839_v3  ;;  %v3838_v8 = vld [vmem:[%s4880_s0 + $0x14] ss:$0 sm:$0xff] }
  0x9d   :  { %v1209_v31 = vsel %vm1197_vm8, %v1187_v55, %v1190_v47  ;;  %v1201_v10 = vsel %vm1197_vm8, %v1181_v2, %v1184_v23  ;;  %v1203_v9 = vsel %vm1199_vm11, %v1187_v55, %v1202_v6  ;;  %v1210_v17 = vsel %vm1200_vm7, %v1196_v15, 1326507024  ;;  %v749_v47 = vld [vmem:[%s4880_s0 + $0xf] ss:$0 sm:$0xff] }
  0x9e   :  { %v2960_v35 = vmin.u32 %v1024_v46, %v1022_v57  ;;  %v1213_v39 = vshll.u32 %v1173_v4, 8  ;;  %v1208_v42 = vsel %vm1198_vm12, %v1205_v54, %v1207_v0  ;;  %v1211_v24 = vsel %vm1199_vm11, %v1193_v58, %v1210_v17  ;;  %v748_v46 = vld [vmem:[%s4880_s0 + $0xe] ss:$0 sm:$0xff] }
  0x9f   :  { %v840_v14 = vsel %vm3778_vm6, 0, %v838_v7  ;;  %v1044_v38 = vsub.s32 4, %v3763_v61  ;;  %v1212_v43 = vsel %vm1198_vm12, %v1209_v31, %v1211_v24  ;;  %v1204_v33 = vsel %vm1198_vm12, %v1201_v10, %v1203_v9 }
  0xa0   :  { %v1026_v50 = vclz %v2960_v35  ;;  %v3819_v51 = vmul.u32.u64.low %v1213_v39, %v1212_v43  ;;  %v3820_v22 = vmul.u32.u64.high %v1213_v39, %v1212_v43, %v3819_v51  ;;  %3091 = vsinq.f32 %v839_v3 }
  0xa1   :  { %v3822_v1 = vmul.u32.u64.low %v1213_v39, %v1208_v42  ;;  %v3823_v59 = vmul.u32.u64.high %v1213_v39, %v1208_v42, %v3822_v1  ;;  %v1482_v40 = vshrl.u32 %v1481_v37, 23  ;;  %v947_v45 = vadd.s32 3, %v840_v14 }
  0xa2   :  { %v2961_v21 = vadd.s32 4294967294, %v1026_v50  ;;  %vm960_vm3 = vcmp.lt.s32.totalorder %v3352_v12, 0  ;;  %v1220_v5 = vmul.u32 %v1213_v39, %v1204_v33  ;;  %v3833_v49 = vand.u32 3, %v840_v14 }
  0xa3   :  { %v2975_v20 = vadd.s32 4294967169, %v1482_v40  ;;  %v1045_v44 = vsel %vm960_vm3, %v1044_v38, %v3763_v61  ;;  %vm1222_vm4 = vc.u32 %v3820_v22, %v3822_v1  ;;  %v3843_v61 = vand.u32 3, %v947_v45 }
  0xa4   :  { %vm2962_vm10 = vcmp.lt.s32.totalorder %v2961_v21, 0  ;;  %vm3847_vm5 = vcmp.le.f32.partialorder %v958_v53, 0.7853982  ;;  %v1478_v15 = vand.u32 2147483647, %v3803_v18  ;;  %v1688_v62 = vand.u32 2139095040, %v3838_v8 }
  0xa5   :  { %v1029_v36 = vsel %vm2962_vm10, 0, %v2961_v21  ;;  %v1488_v16 = vadd.s32 1, %v2975_v20  ;;  %v1047_v35 = vsel %vm3847_vm5, 0, %v1045_v44  ;;  %vm849_vm7 = vcmp.eq.s32.totalorder %v3833_v49, 2 }
  0xa6   :  { %v1030_v60 = vsub.s32 32, %v1029_v36  ;;  %v1031_v52 = vshll.u32 %v1022_v57, %v1029_v36  ;;  %v1034_v27 = vsub.s32 4294967266, %v1029_v36  ;;  %v1223_v57 = vadd.s32 1, %v3823_v59 }
  0xa7   :  { %vm1489_vm6 = vcmp.gt.s32.totalorder %v1488_v16, 0  ;;  %vm953_vm8 = vcmp.eq.s32.totalorder %v3843_v61, 2  ;;  %v1154_v54 = vadd.s32 3, %v1047_v35  ;;  %v3863_v0 = vmul.f32 0.5, %v748_v46 }
  0xa8   :  { %v1032_v25 = vshrl.u32 %v1014_v11, %v1030_v60  ;;  %v1035_v56 = vadd.s32 127, %v1034_v27  ;;  %v1224_v55 = vsel %vm1222_vm4, %v1223_v57, %v3823_v59  ;;  %v1490_v53 = vsel %vm1489_vm6, %v1488_v16, 0 }
  0xa9   :  { %v1225_v4 = vadd.s32 %v1224_v55, %v1220_v5  ;;  %v3857_v2 = vpop.eup %3089  ;;  %v1492_v7 = vand.u32 31, %v1490_v53  ;;  %v3865_v11 = vmul.f32 0.5, %v749_v47  ;;  %v1485_v17 = vand.u32 8388607, %v1478_v15 }
  0xaa   :  { %v1033_v29 = vor.u32 %v1032_v25, %v1031_v52  ;;  %v1036_v48 = vshll.u32 %v1035_v56, 23  ;;  %v850_v21 = vxor.u32 2147483648, %v3857_v2  ;;  %v3872_v39 = vshrl.u32 %v1490_v53, 5 }
  0xab   :  { %v1226_v6 = vadd.s32 536870912, %v1225_v4  ;;  %v1493_v9 = vsub.s32 32, %v1492_v7  ;;  %v1495_v42 = vshll.u32 %v3129_v26, %v1492_v7  ;;  %v1689_v24 = vshrl.u32 %v1688_v62, 23 }
  0xac   :  { %v1037_v58 = vor.u32 4788187, %v1036_v48  ;;  %v1040_v63 = vcvt.s32.f32 %v1033_v29  ;;  %v1498_v36 = vshll.u32 %v3130_v28, %v1492_v7  ;;  %v1501_v38 = vshll.u32 %v3131_v30, %v1492_v7 }
  0xad   :  { %v3868_v10 = vshrl.u32 %v1226_v6, 30  ;;  %v3880_v43 = vpop.eup %3091  ;;  %v1496_v52 = vshrl.u32 %v3130_v28, %v1493_v9  ;;  %v1499_v27 = vshrl.u32 %v3131_v30, %v1493_v9  ;;  %v1504_v33 = vshll.u32 %v3132_v32, %v1492_v7 }
  0xae   :  { %v1038_v3 = vand.u32 2147483647, %v1037_v58  ;;  %v1502_v59 = vshrl.u32 %v3132_v32, %v1493_v9  ;;  %v1505_v25 = vshrl.u32 %v3133_v34, %v1493_v9  ;;  %vm846_vm11 = vcmp.eq.s32.totalorder %v3833_v49, 0 }
  0xaf   :  { %v1228_v14 = vshll.u32 %v3868_v10, 30  ;;  %v3893_v56 = vand.u32 3, %v1047_v35  ;;  %v3895_v40 = vand.u32 3, %v1154_v54  ;;  %v1507_v45 = vshll.u32 %v3133_v34, %v1492_v7 }
  0xb0   :  { %v1041_v50 = vmul.f32 %v1040_v63, %v1038_v3  ;;  %v847_v29 = vxor.u32 2147483648, %v3880_v43  ;;  %v3902_v48 = vsel %vm849_vm7, %v850_v21, %v3880_v43  ;;  %v2983_v20 = vadd.s32 4294967169, %v1689_v24 }
  0xb1   :  { %v3888_v51 = vsub.s32 %v1225_v4, %v1228_v14  ;;  %v1486_v44 = vor.u32 8388608, %v1485_v17  ;;  %v1497_v57 = vor.u32 %v1496_v52, %v1495_v42  ;;  %v1500_v58 = vor.u32 %v1499_v27, %v1498_v36  ;;  %v3125_v42 = vld [vmem:[%s4880_s0 + $0xb] ss:$0 sm:$0xff] }
  0xb2   :  { %v1042_v31 = vxor.u32 2147483648, %v1041_v50  ;;  %v1508_v63 = vshrl.u32 %v3134_v41, %v1493_v9  ;;  %vm950_vm12 = vcmp.eq.s32.totalorder %v3843_v61, 0  ;;  %v1503_v46 = vor.u32 %v1502_v59, %v1501_v38 }
  0xb3   :  { %v1231_v5 = vsub.s32 0, %v3888_v51  ;;  %v1506_v23 = vor.u32 %v1505_v25, %v1504_v33  ;;  %vm1510_vm10 = vcmp.lt.s32.totalorder %v3872_v39, 1  ;;  %v3913_v55 = vsel %vm953_vm8, %v850_v21, %v3880_v43  ;;  %v750_v43 = vld [vmem:[%s4880_s0 + $0x28] ss:$0 sm:$0xff] }
  0xb4   :  { %v1043_v37 = vsel %vm960_vm3, %v1042_v31, %v1041_v50  ;;  %vm845_vm3 = vcmp.lt.s32.totalorder %v3833_v49, 2  ;;  %vm1056_vm4 = vcmp.eq.s32.totalorder %v3893_v56, 2  ;;  %v1494_v47 = vshrl.u32 %v3129_v26, %v1493_v9 }
  0xb5   :  { %v1046_v60 = vsel %vm3847_vm5, %v3352_v12, %v1043_v37  ;;  %v2968_v16 = vmin.u32 %v1231_v5, %v3888_v51  ;;  %v1509_v3 = vor.u32 %v1508_v63, %v1507_v45  ;;  %vm1513_vm5 = vcmp.lt.s32.totalorder %v3872_v39, 4 }
  0xb6   :  { %3093 = vcosq.f32 %v1046_v60  ;;  %vm1053_vm6 = vcmp.eq.s32.totalorder %v3893_v56, 0  ;;  %vm1512_vm7 = vcmp.lt.s32.totalorder %v3872_v39, 3  ;;  %v1515_v4 = vsel %vm1513_vm5, %v1503_v46, 2102212464 }
  0xb7   :  { %3095 = vsinq.f32 %v1046_v60  ;;  %v1233_v35 = vclz %v2968_v16  ;;  %v1695_v53 = vadd.s32 1, %v2983_v20  ;;  %vm1052_vm2 = vcmp.lt.s32.totalorder %v3893_v56, 2 }
  0xb8   :  { %vm1511_vm8 = vcmp.lt.s32.totalorder %v3872_v39, 2  ;;  %v1518_v62 = vsel %vm1510_vm10, %v1497_v57, %v1500_v58  ;;  %v3926_v50 = vshll.u32 %v1486_v44, 8  ;;  %v1685_v6 = vand.u32 2147483647, %v3838_v8 }
  0xb9   :  { %v1221_v7 = vadd.s32 %v3822_v1, %v3820_v22  ;;  %v2969_v54 = vadd.s32 4294967294, %v1233_v35  ;;  %v1519_v21 = vsel %vm1513_vm5, %v1506_v23, 920167782  ;;  %v1522_v31 = vsel %vm1510_vm10, %v1500_v58, %v1503_v46 }
  0xba   :  { %vm949_vm1 = vcmp.lt.s32.totalorder %v3843_v61, 2  ;;  %vm1167_vm9 = vcmp.lt.s32.totalorder %v3538_v13, 0  ;;  %v1514_v9 = vsel %vm1510_vm10, %v1494_v47, %v1497_v57  ;;  %v1516_v17 = vsel %vm1512_vm7, %v1500_v58, %v1515_v4 }
  0xbb   :  { %v1520_v22 = vsel %vm1512_vm7, %v1503_v46, %v1519_v21  ;;  %v1523_v1 = vsel %vm1513_vm5, %v1509_v3, 1326507024  ;;  %vm843_vm0 = vweird.f32 %v3125_v42  ;;  %vm1050_vm15 = vweird.f32 %v3352_v12 }
  0xbc   :  { %vm2970_vm14 = vcmp.lt.s32.totalorder %v2969_v54, 0  ;;  %v1521_v24 = vsel %vm1511_vm8, %v1518_v62, %v1520_v22  ;;  %v1524_v37 = vsel %vm1512_vm7, %v1506_v23, %v1523_v1  ;;  %vm1696_vm10 = vcmp.gt.s32.totalorder %v1695_v53, 0 }
  0xbd   :  { %vm1157_vm13 = vcmp.eq.s32.totalorder %v3895_v40, 0  ;;  %v1236_v14 = vsel %vm2970_vm14, 0, %v2969_v54  ;;  %v1525_v36 = vsel %vm1511_vm8, %v1522_v31, %v1524_v37  ;;  %v848_v52 = vsel %vm846_vm11, %v3857_v2, %v847_v29 }
  0xbe   :  { %v3957_v38 = vmul.u32.u64.low %v3926_v50, %v1521_v24  ;;  %v3958_v60 = vmul.u32.u64.high %v3926_v50, %v1521_v24, %v3957_v38  ;;  %vm3968_vm5 = vcmp.le.f32.partialorder %v1165_v19, 0.7853982  ;;  %v1237_v33 = vsub.s32 32, %v1236_v14 }
  0xbf   :  { %v1238_v59 = vshll.u32 %v3888_v51, %v1236_v14  ;;  %v1241_v25 = vsub.s32 4294967266, %v1236_v14  ;;  %v1251_v5 = vsub.s32 4, %v3868_v10  ;;  %v1517_v20 = vsel %vm1511_vm8, %v1514_v9, %v1516_v17 }
  0xc0   :  { %v3977_v44 = vmul.u32.u64.low %v3926_v50, %v1525_v36  ;;  %v3978_v57 = vmul.u32.u64.high %v3926_v50, %v1525_v36, %v3977_v44  ;;  %v1239_v19 = vshrl.u32 %v1221_v7, %v1237_v33  ;;  %v1697_v46 = vsel %vm1696_vm10, %v1695_v53, 0  ;;  %v4033_v36 = vld [vmem:[%s4880_s0 + $0x15] ss:$0 sm:$0xff] }
  0xc1   :  { %v1242_v16 = vadd.s32 127, %v1241_v25  ;;  %v952_v51 = vsel %vm950_vm12, %v3857_v2, %v847_v29  ;;  %v1536_v39 = vadd.s32 1, %v3958_v60  ;;  %v1692_v47 = vand.u32 8388607, %v1685_v6 }
  0xc2   :  { %v852_v3 = vsel %vm845_vm3, %v848_v52, %v3902_v48  ;;  %v1240_v4 = vor.u32 %v1239_v19, %v1238_v59  ;;  %v1533_v29 = vmul.u32 %v3926_v50, %v1517_v20  ;;  %vm1535_vm14 = vc.u32 %v3978_v57, %v3957_v38 }
  0xc3   :  { %v3094_v45 = vpop.eup %3093  ;;  %v1243_v53 = vshll.u32 %v1242_v16, 23  ;;  %v1699_v62 = vand.u32 31, %v1697_v46  ;;  %v1252_v54 = vsel %vm1167_vm9, %v1251_v5, %v3868_v10  ;;  %vm1160_vm11 = vcmp.eq.s32.totalorder %v3895_v40, 2 }
  0xc4   :  { %v3096_v58 = vpop.eup %3095  ;;  %v1057_v63 = vxor.u32 2147483648, %v3094_v45  ;;  %v1247_v7 = vcvt.s32.f32 %v1240_v4  ;;  %v1537_v50 = vsel %vm1535_vm14, %v1536_v39, %v3958_v60  ;;  %v1693_v31 = vor.u32 8388608, %v1692_v47 }
  0xc5   :  { %v1054_v23 = vxor.u32 2147483648, %v3096_v58  ;;  %v1244_v48 = vor.u32 4788187, %v1243_v53  ;;  %v956_v56 = vsel %vm949_vm1, %v952_v51, %v3913_v55  ;;  %v4017_v17 = vmul.f32 0.5, %v750_v43 }
  0xc6   :  { %v1058_v35 = vsel %vm1056_vm4, %v1057_v63, %v3096_v58  ;;  %v4020_v10 = vsel %vm843_vm0, nan, %v852_v3  ;;  %v1254_v22 = vsel %vm3968_vm5, 0, %v1252_v54  ;;  %v1538_v1 = vadd.s32 %v1537_v50, %v1533_v29 }
  0xc7   :  { %v1055_v2 = vsel %vm1053_vm6, %v3094_v45, %v1054_v23  ;;  %v1245_v9 = vand.u32 2147483647, %v1244_v48  ;;  %v4024_v24 = vsub.s32 32, %v1699_v62  ;;  %v1159_v37 = vsel %vm1157_vm13, %v3094_v45, %v1054_v23 }
  0xc8   :  { %v1059_v49 = vsel %vm1052_vm2, %v1055_v2, %v1058_v35  ;;  %vm1156_vm2 = vcmp.lt.s32.totalorder %v3895_v40, 2  ;;  %v1162_v14 = vsel %vm1160_vm11, %v1057_v63, %v3096_v58  ;;  %v4036_v60 = vsel %vm843_vm0, nan, %v956_v56  ;;  %v742_v40 = vld [vmem:[%s4880_s0 + $0x8] ss:$0 sm:$0xff] }
  0xc9   :  { %v4009_v21 = vsel %vm1050_vm15, nan, %v1059_v49  ;;  %v1248_v61 = vmul.f32 %v1247_v7, %v1245_v9  ;;  %v1539_v52 = vadd.s32 536870912, %v1538_v1  ;;  %v4038_v33 = vshll.u32 %v1693_v31, 8 }
  0xca   :  { %v1377_v55 = vmul.f32 %v4009_v21, %v4020_v10  ;;  %v1892_v59 = vand.u32 2147483647, %v4033_v36  ;;  %v1361_v45 = vadd.s32 3, %v1254_v22  ;;  %v4041_v5 = vshrl.u32 %v1697_v46, 5 }
  0xcb   :  { %v1249_v25 = vxor.u32 2147483648, %v1248_v61  ;;  %v1702_v20 = vshll.u32 %v3129_v26, %v1699_v62  ;;  %v1163_v44 = vsel %vm1156_vm2, %v1159_v37, %v1162_v14  ;;  %v1387_v58 = vmul.f32 %v4009_v21, %v4036_v60 }
  0xcc   :  { %v4048_v42 = vshrl.u32 %v1539_v52, 30  ;;  %v1703_v63 = vshrl.u32 %v3130_v28, %v4024_v24  ;;  %v1378_v16 = vmul.f32 %v1377_v55, %v3863_v0  ;;  %v1705_v46 = vshll.u32 %v3130_v28, %v1699_v62 }
  0xcd   :  { %v1250_v19 = vsel %vm1167_vm9, %v1249_v25, %v1248_v61  ;;  %v1706_v51 = vshrl.u32 %v3131_v30, %v4024_v24  ;;  %v1711_v47 = vshll.u32 %v3132_v32, %v1699_v62  ;;  %v1712_v3 = vshrl.u32 %v3133_v34, %v4024_v24 }
  0xce   :  { %v1253_v23 = vsel %vm3968_vm5, %v3538_v13, %v1250_v19  ;;  %v1541_v39 = vshll.u32 %v4048_v42, 30  ;;  %v4070_v35 = vsel %vm1050_vm15, nan, %v1163_v44  ;;  %v1708_v4 = vshll.u32 %v3131_v30, %v1699_v62 }
  0xcf   :  { %3097 = vcosq.f32 %v1253_v23  ;;  %v1709_v53 = vshrl.u32 %v3132_v32, %v4024_v24  ;;  %v4075_v27 = vand.u32 3, %v1254_v22  ;;  %v4077_v43 = vand.u32 3, %v1361_v45 }
  0xd0   :  { %3099 = vsinq.f32 %v1253_v23  ;;  %v1397_v2 = vsub.f32 0.0, %v4070_v35  ;;  %v1388_v29 = vmul.f32 %v1387_v58, %v3865_v11  ;;  %v1403_v49 = vsub.f32 %v742_v40, %v1378_v16 }
  0xd1   :  { %v4081_v48 = vsub.s32 %v1538_v1, %v1541_v39  ;;  %v1714_v12 = vshll.u32 %v3133_v34, %v1699_v62  ;;  %v1704_v7 = vor.u32 %v1703_v63, %v1702_v20  ;;  %v1707_v54 = vor.u32 %v1706_v51, %v1705_v46 }
  0xd2   :  { %v1713_v50 = vor.u32 %v1712_v3, %v1711_v47  ;;  %v1715_v31 = vshrl.u32 %v3134_v41, %v4024_v24  ;;  %v1412_v56 = vadd.f32 %v1378_v16, %v742_v40  ;;  %v1710_v22 = vor.u32 %v1709_v53, %v1708_v4 }
  0xd3   :  { %v1544_v9 = vsub.s32 0, %v4081_v48  ;;  %vm1717_vm13 = vcmp.lt.s32.totalorder %v4041_v5, 1  ;;  %vm1263_vm15 = vcmp.eq.s32.totalorder %v4075_v27, 2  ;;  %vm1367_vm0 = vcmp.eq.s32.totalorder %v4077_v43, 2 }
  0xd4   :  { %vm1719_vm9 = vcmp.lt.s32.totalorder %v4041_v5, 3  ;;  %vm1720_vm1 = vcmp.lt.s32.totalorder %v4041_v5, 4  ;;  %v1895_v62 = vand.u32 2139095040, %v4033_v36  ;;  %vm1260_vm12 = vcmp.eq.s32.totalorder %v4075_v27, 0 }
  0xd5   :  { %vm1364_vm3 = vcmp.eq.s32.totalorder %v4077_v43, 0  ;;  %v4096_v1 = vmul.f32 %v1397_v2, %v4017_v17  ;;  %v4098_v37 = vsub.f32 %v1403_v49, %v1388_v29  ;;  %v2976_v14 = vmin.u32 %v1544_v9, %v4081_v48 }
  0xd6   :  { %v1716_v61 = vor.u32 %v1715_v31, %v1714_v12  ;;  %vm1259_vm4 = vcmp.lt.s32.totalorder %v4075_v27, 2  ;;  %vm1363_vm6 = vcmp.lt.s32.totalorder %v4077_v43, 2  ;;  %v1534_v55 = vadd.s32 %v3957_v38, %v3978_v57 }
  0xd7   :  { %vm1718_vm7 = vcmp.lt.s32.totalorder %v4041_v5, 2  ;;  %v1725_v52 = vsel %vm1717_vm13, %v1704_v7, %v1707_v54  ;;  %v1726_v25 = vsel %vm1720_vm1, %v1713_v50, 920167782  ;;  %vm1257_vm8 = vweird.f32 %v3538_v13 }
  0xd8   :  { %v4111_v45 = vsub.f32 %v1412_v56, %v1388_v29  ;;  %v1546_v20 = vclz %v2976_v14  ;;  %v1701_v44 = vshrl.u32 %v3129_v26, %v4024_v24  ;;  %v1727_v58 = vsel %vm1719_vm9, %v1710_v22, %v1726_v25 }
  0xd9   :  { %v4117_v38 = vadd.f32 %v1412_v56, %v1388_v29  ;;  %v4119_v57 = vadd.f32 %v1403_v49, %v1388_v29  ;;  %v1722_v63 = vsel %vm1720_vm1, %v1710_v22, 2102212464  ;;  %v1729_v19 = vsel %vm1717_vm13, %v1707_v54, %v1710_v22 }
  0xda   :  { %v1405_v16 = vsub.f32 %v4098_v37, %v4096_v1  ;;  %v2977_v46 = vadd.s32 4294967294, %v1546_v20  ;;  %v1728_v24 = vsel %vm1718_vm7, %v1725_v52, %v1727_v58  ;;  %v1730_v51 = vsel %vm1720_vm1, %v1716_v61, 1326507024 }
  0xdb   :  { %v1731_v40 = vsel %vm1719_vm9, %v1713_v50, %v1730_v51  ;;  %v4134_v23 = vmul.u32.u64.low %v4038_v33, %v1728_v24  ;;  %v4135_v39 = vmul.u32.u64.high %v4038_v33, %v1728_v24, %v4134_v23  ;;  %v1896_v47 = vshrl.u32 %v1895_v62, 23 }
  0xdc   :  { %vm2978_vm10 = vcmp.lt.s32.totalorder %v2977_v46, 0  ;;  %v1721_v3 = vsel %vm1717_vm13, %v1701_v44, %v1704_v7  ;;  %v1723_v4 = vsel %vm1719_vm9, %v1707_v54, %v1722_v63  ;;  %v1732_v53 = vsel %vm1718_vm7, %v1729_v19, %v1731_v40  ;;  %v3098_v2 = vpop.eup %3097 }
  0xdd   :  { %v1414_v29 = vsub.f32 %v4111_v45, %v4096_v1  ;;  %v1549_v49 = vsel %vm2978_vm10, 0, %v2977_v46  ;;  %v4147_v12 = vmul.u32.u64.low %v4038_v33, %v1732_v53  ;;  %v4148_v50 = vmul.u32.u64.high %v4038_v33, %v1732_v53, %v4147_v12  ;;  %v3100_v31 = vpop.eup %3099 }
  0xde   :  { %v1264_v56 = vxor.u32 2147483648, %v3098_v2  ;;  %v1422_v7 = vsub.f32 %v4117_v38, %v4096_v1  ;;  %v1550_v9 = vsub.s32 32, %v1549_v49  ;;  %v1554_v22 = vsub.s32 4294967266, %v1549_v49 }
  0xdf   :  { %v1261_v54 = vxor.u32 2147483648, %v3100_v31  ;;  %v1436_v62 = vsub.f32 %v4119_v57, %v4096_v1  ;;  %v1724_v14 = vsel %vm1718_vm7, %v1721_v3, %v1723_v4  ;;  %v2991_v61 = vadd.s32 4294967169, %v1896_v47 }
  0xe0   :  { %v1265_v52 = vsel %vm1263_vm15, %v1264_v56, %v3100_v31  ;;  %v1369_v25 = vsel %vm1367_vm0, %v1264_v56, %v3100_v31  ;;  %v1551_v20 = vshll.u32 %v4081_v48, %v1549_v49  ;;  %v1555_v44 = vadd.s32 127, %v1554_v22 }
  0xe1   :  { %v1262_v58 = vsel %vm1260_vm12, %v3098_v2, %v1261_v54  ;;  %v1366_v63 = vsel %vm1364_vm3, %v3098_v2, %v1261_v54  ;;  %v1552_v19 = vshrl.u32 %v1534_v55, %v1550_v9  ;;  %v1743_v5 = vadd.s32 1, %v4135_v39 }
  0xe2   :  { %v1266_v46 = vsel %vm1259_vm4, %v1262_v58, %v1265_v52  ;;  %v1370_v24 = vsel %vm1363_vm6, %v1366_v63, %v1369_v25  ;;  %v1740_v51 = vmul.u32 %v4038_v33, %v1724_v14  ;;  %vm1742_vm5 = vc.u32 %v4148_v50, %v4134_v23 }
  0xe3   :  { %v1267_v48 = vsel %vm1257_vm8, nan, %v1266_v46  ;;  %v1371_v40 = vsel %vm1257_vm8, nan, %v1370_v24  ;;  %v1556_v55 = vshll.u32 %v1555_v44, 23  ;;  %v1902_v47 = vadd.s32 1, %v2991_v61 }
  0xe4   :  { %v1372_v3 = vmul.f32 %v1371_v40, %v4070_v35  ;;  %v1373_v27 = vmul.f32 %v1267_v48, %v4070_v35  ;;  %v1380_v43 = vmul.f32 %v1267_v48, %v4036_v60  ;;  %v1384_v4 = vmul.f32 %v1371_v40, %v4036_v60 }
  0xe5   :  { %v1390_v33 = vmul.f32 %v1267_v48, %v4020_v10  ;;  %v1394_v53 = vmul.f32 %v1371_v40, %v4020_v10  ;;  %v1553_v2 = vor.u32 %v1552_v19, %v1551_v20  ;;  %v1744_v49 = vsel %vm1742_vm5, %v1743_v5, %v4135_v39  ;;  %v743_v39 = vld [vmem:[%s4880_s0 + $0x9] ss:$0 sm:$0xff] }
  0xe6   :  { %v1379_v13 = vmul.f32 %v1372_v3, %v4020_v10  ;;  %v1383_v12 = vmul.f32 %v1373_v27, %v4020_v10  ;;  %v1389_v31 = vmul.f32 %v1372_v3, %v4036_v60  ;;  %v1393_v56 = vmul.f32 %v1373_v27, %v4036_v60  ;;  %v744_v60 = vld [vmem:[%s4880_s0 + $0xa] ss:$0 sm:$0xff] }
  0xe7   :  { %v1399_v35 = vmul.f32 %v1371_v40, %v4009_v21  ;;  %v1401_v9 = vmul.f32 %v1267_v48, %v4009_v21  ;;  %v1441_v22 = vadd.f32 %v4098_v37, %v4096_v1  ;;  %v1557_v54 = vor.u32 4788187, %v1556_v55 }
  0xe8   :  { %v1381_v14 = vsub.f32 %v1379_v13, %v1380_v43  ;;  %v1385_v61 = vadd.f32 %v1384_v4, %v1383_v12  ;;  %v1391_v52 = vadd.f32 %v1390_v33, %v1389_v31  ;;  %v1395_v10 = vsub.f32 %v1393_v56, %v1394_v53 }
  0xe9   :  { %v1558_v25 = vand.u32 2147483647, %v1557_v54  ;;  %v1560_v20 = vcvt.s32.f32 %v1553_v2  ;;  %v4198_v44 = vadd.s32 %v1744_v49, %v1740_v51  ;;  %vm1903_vm14 = vcmp.gt.s32.totalorder %v1902_v47, 0 }
  0xea   :  { %v1382_v21 = vmul.f32 %v1381_v14, %v3863_v0  ;;  %v1386_v58 = vmul.f32 %v1385_v61, %v3863_v0  ;;  %v1392_v63 = vmul.f32 %v1391_v52, %v3865_v11  ;;  %v1396_v19 = vmul.f32 %v1395_v10, %v3865_v11 }
  0xeb   :  { %v1400_v5 = vmul.f32 %v1399_v35, %v4017_v17  ;;  %v1402_v46 = vmul.f32 %v1401_v9, %v4017_v17  ;;  %v1444_v24 = vadd.f32 %v4111_v45, %v4096_v1  ;;  %v1455_v51 = vadd.f32 %v4117_v38, %v4096_v1 }
  0xec   :  { %v1406_v48 = vsub.f32 %v743_v39, %v1382_v21  ;;  %v1409_v40 = vsub.f32 %v744_v60, %v1386_v58  ;;  %v1415_v55 = vadd.f32 %v1382_v21, %v743_v39  ;;  %v1418_v3 = vadd.f32 %v1386_v58, %v744_v60 }
  0xed   :  { %v1458_v0 = vadd.f32 %v4119_v57, %v4096_v1  ;;  %v4212_v27 = vmul.f32 %v1560_v20, %v1558_v25  ;;  %v1746_v11 = vadd.s32 536870912, %v4198_v44  ;;  %v4216_v43 = vsel %vm1903_vm14, %v1902_v47, 0 }
  0xee   :  { %v1407_v17 = vsub.f32 %v1406_v48, %v1392_v63  ;;  %v1410_v4 = vsub.f32 %v1409_v40, %v1396_v19  ;;  %v1416_v33 = vsub.f32 %v1415_v55, %v1392_v63  ;;  %v1419_v53 = vsub.f32 %v1418_v3, %v1396_v19 }
  0xef   :  { %v1423_v2 = vadd.f32 %v1415_v55, %v1392_v63  ;;  %v1425_v49 = vadd.f32 %v1418_v3, %v1396_v19  ;;  %v1437_v13 = vadd.f32 %v1406_v48, %v1392_v63  ;;  %v1439_v12 = vadd.f32 %v1409_v40, %v1396_v19 }
  0xf0   :  { %v1408_v31 = vsub.f32 %v1407_v17, %v1400_v5  ;;  %v1411_v56 = vsub.f32 %v1410_v4, %v1402_v46  ;;  %v1417_v35 = vsub.f32 %v1416_v33, %v1400_v5  ;;  %v1906_v9 = vand.u32 31, %v4216_v43 }
  0xf1   :  { %v1420_v54 = vsub.f32 %v1419_v53, %v1402_v46  ;;  %v1426_v39 = vsub.f32 %v1425_v49, %v1402_v46  ;;  %v1438_v14 = vsub.f32 %v1437_v13, %v1400_v5  ;;  %v1440_v61 = vsub.f32 %v1439_v12, %v1402_v46 }
  0xf2   :  { %v1424_v52 = vsub.f32 %v1423_v2, %v1400_v5  ;;  %vm4905_vm11 = vcmask 1040384   ;;  %v1442_v10 = vadd.f32 %v1407_v17, %v1400_v5  ;;  %v1445_v60 = vadd.f32 %v1416_v33, %v1400_v5 }
  0xf3   :  { %v1427_v47 = vsel %vm4905_vm11, %v1405_v16, %v1408_v31  ;;  %vm4906_vm2 = vcmask 1041408   ;;  %v1446_v20 = vadd.f32 %v1419_v53, %v1402_v46  ;;  %vm4907_vm13 = vmmov %vm4905_vm11  ;;  %v1456_v58 = vadd.f32 %v1423_v2, %v1400_v5 }
  0xf4   :  { %v1428_v25 = vsel %vm4906_vm2, %v1427_v47, %v1411_v56  ;;  %v1447_v21 = vsel %vm4907_vm13, %v1426_v39, %v1436_v62  ;;  %vm4908_vm15 = vcmask 1042432   ;;  %v1443_v19 = vadd.f32 %v1410_v4, %v1402_v46  ;;  %vm4909_vm0 = vmmov %vm4906_vm2 }
  0xf5   :  { %v1429_v63 = vsel %vm4908_vm15, %v1428_v25, %v1414_v29  ;;  %v1448_v37 = vsel %vm4909_vm0, %v1447_v21, %v1438_v14  ;;  %v1457_v16 = vadd.f32 %v1425_v49, %v1402_v46  ;;  %vm4910_vm9 = vcmask 1043456   ;;  %vm4911_vm1 = vmmov %vm4908_vm15 }
  0xf6   :  { %v1430_v48 = vsel %vm4910_vm9, %v1429_v63, %v1417_v35  ;;  %v1449_v40 = vsel %vm4911_vm1, %v1448_v37, %v1440_v61  ;;  %vm4912_vm12 = vmmov %vm4905_vm11  ;;  %v4236_v3 = vshrl.u32 %v1746_v11, 30  ;;  %vm4913_vm3 = vcmask 1044480  }
  0xf7   :  { %v1461_v55 = vsel %vm4912_vm12, %v1445_v60, %v1446_v20  ;;  %v1431_v57 = vsel %vm4913_vm3, %v1430_v48, %v1420_v54  ;;  %vm4914_vm4 = vmmov %vm4910_vm9  ;;  %v1459_v17 = vadd.f32 %v1437_v13, %v1400_v5  ;;  %vm4916_vm7 = vcmask 1045504  }
  0xf8   :  { %v1450_v62 = vsel %vm4914_vm4, %v1449_v40, %v1441_v22  ;;  %vm4915_vm6 = vmmov %vm4909_vm0  ;;  %v1432_v29 = vsel %vm4916_vm7, %v1431_v57, %v1422_v7  ;;  %v1460_v33 = vadd.f32 %v1439_v12, %v1402_v46  ;;  %vm4919_vm5 = vcmask 1046528  }
  0xf9   :  { %v1462_v45 = vsel %vm4915_vm6, %v1461_v55, %v1455_v51  ;;  %vm4917_vm8 = vmmov %vm4913_vm3  ;;  %v1433_v11 = vsel %vm4919_vm5, %v1432_v29, %v1424_v52  ;;  %v1907_v22 = vsub.s32 32, %v1906_v9  ;;  %v1748_v7 = vshll.u32 %v4236_v3, 30 }
  0xfa   :  { %v1451_v4 = vsel %vm4917_vm8, %v1450_v62, %v1442_v10  ;;  %vm4918_vm10 = vmmov %vm4911_vm1  ;;  %1434 = vst [vmem:[%s4881_s1 + $0x8] sm:$0xff] %v1433_v11  ;;  %v1899_v13 = vand.u32 8388607, %v1892_v59  ;;  %vm1480_vm9 = vcmp.lt.s32.totalorder %v3803_v18, 0  ;;  %v1915_v56 = vshll.u32 %v3131_v30, %v1906_v9 }
  0xfb   :  { %v1463_v53 = vsel %vm4918_vm10, %v1462_v45, %v1456_v58  ;;  %vm4920_vm14 = vmmov %vm4916_vm7  ;;  %v1749_v51 = vsub.s32 %v4198_v44, %v1748_v7  ;;  %v1913_v12 = vshrl.u32 %v3131_v30, %v1907_v22  ;;  %v1916_v44 = vshrl.u32 %v3132_v32, %v1907_v22 }
  0xfc   :  { %v1452_v2 = vsel %vm4920_vm14, %v1451_v4, %v1443_v19  ;;  %vm4921_vm11 = vmmov %vm4914_vm4  ;;  %v1918_v35 = vshll.u32 %v3132_v32, %v1906_v9  ;;  %v1905_v54 = vshrl.u32 %v4216_v43, 5  ;;  %v1909_v39 = vshll.u32 %v3129_v26, %v1906_v9 }
  0xfd   :  { %v1464_v49 = vsel %vm4921_vm11, %v1463_v53, %v1457_v16  ;;  %vm4922_vm2 = vmmov %vm4919_vm5  ;;  %v1751_v31 = vsub.s32 0, %v1749_v51  ;;  %v1910_v14 = vshrl.u32 %v3130_v28, %v1907_v22  ;;  %v1919_v61 = vshrl.u32 %v3133_v34, %v1907_v22 }
  0xfe   :  { %v1453_v1 = vsel %vm4922_vm2, %v1452_v2, %v1444_v24  ;;  %vm4923_vm13 = vmmov %vm4913_vm3  ;;  %v1562_v24 = vxor.u32 2147483648, %v4212_v27  ;;  %v1900_v47 = vor.u32 8388608, %v1899_v13  ;;  %v1921_v10 = vshll.u32 %v3133_v34, %v1906_v9 }
  0xff   :  { %v1465_v38 = vsel %vm4923_vm13, %v1464_v49, %v1458_v0  ;;  %1454 = vst [vmem:[%s4881_s1 + $0x28] sm:$0xff] %v1453_v1  ;;  %vm4924_vm15 = vmmov %vm4916_vm7  ;;  %v1912_v0 = vshll.u32 %v3130_v28, %v1906_v9  ;;  %v2984_v52 = vmin.u32 %v1751_v31, %v1749_v51  ;;  %v1922_v60 = vshrl.u32 %v3134_v41, %v1907_v22 }
 0x100   :  { %v1466_v5 = vsel %vm4924_vm15, %v1465_v38, %v1459_v17  ;;  %vm4925_vm0 = vmmov %vm4922_vm2  ;;  %vm4282_vm1 = vcmp.le.f32.partialorder %v1478_v15, 0.7853982  ;;  %v1563_v43 = vsel %vm1480_vm9, %v1562_v24, %v4212_v27  ;;  %v1917_v58 = vor.u32 %v1916_v44, %v1915_v56  ;;  %v4313_v24 = vld [vmem:[%s4880_s0 + $0x1b] ss:$0 sm:$0xff] }
 0x101   :  { %v1467_v46 = vsel %vm4925_vm0, %v1466_v5, %v1460_v33  ;;  %v1914_v20 = vor.u32 %v1913_v12, %v1912_v0  ;;  %v1753_v21 = vclz %v2984_v52  ;;  %v1920_v63 = vor.u32 %v1919_v61, %v1918_v35 }
 0x102   :  { %1468 = vst [vmem:[%s4881_s1 + $0x48] sm:$0xff] %v1467_v46  ;;  %v1923_v19 = vor.u32 %v1922_v60, %v1921_v10  ;;  %v1564_v37 = vsub.s32 4, %v4048_v42  ;;  %v1911_v9 = vor.u32 %v1910_v14, %v1909_v39  ;;  %vm1924_vm12 = vcmp.lt.s32.totalorder %v1905_v54, 1  ;;  %v4330_v10 = vld [vmem:[%s4880_s0 + $0x1c] ss:$0 sm:$0xff] }
 0x103   :  { %vm1926_vm3 = vcmp.lt.s32.totalorder %v1905_v54, 3  ;;  %v1741_v15 = vadd.s32 %v4134_v23, %v4148_v50  ;;  %v2985_v16 = vadd.s32 4294967294, %v1753_v21  ;;  %vm1927_vm4 = vcmp.lt.s32.totalorder %v1905_v54, 4 }
 0x104   :  { %v1940_v48 = vshll.u32 %v1900_v47, 8  ;;  %v1566_v27 = vsel %vm4282_vm1, %v3803_v18, %v1563_v43  ;;  %v1908_v40 = vshrl.u32 %v3129_v26, %v1907_v22  ;;  %v1933_v55 = vsel %vm1927_vm4, %v1920_v63, 920167782 }
 0x105   :  { %v1937_v57 = vsel %vm1927_vm4, %v1923_v19, 1326507024  ;;  %vm2986_vm6 = vcmp.lt.s32.totalorder %v2985_v16, 0  ;;  %vm1925_vm7 = vcmp.lt.s32.totalorder %v1905_v54, 2  ;;  %v1936_v62 = vsel %vm1924_vm12, %v1914_v20, %v1917_v58 }
 0x106   :  { %v1938_v17 = vsel %vm1926_vm3, %v1920_v63, %v1937_v57  ;;  %v1756_v45 = vsel %vm2986_vm6, 0, %v2985_v16  ;;  %v1929_v29 = vsel %vm1927_vm4, %v1917_v58, 2102212464  ;;  %v1932_v23 = vsel %vm1924_vm12, %v1911_v9, %v1914_v20 }
 0x107   :  { %v1934_v50 = vsel %vm1926_vm3, %v1917_v58, %v1933_v55  ;;  %3101 = vcosq.f32 %v1566_v27  ;;  %v1757_v4 = vsub.s32 32, %v1756_v45  ;;  %v1758_v33 = vshll.u32 %v1749_v51, %v1756_v45 }
 0x108   :  { %v1761_v53 = vsub.s32 4294967266, %v1756_v45  ;;  %v1928_v11 = vsel %vm1924_vm12, %v1908_v40, %v1911_v9  ;;  %v1939_v2 = vsel %vm1925_vm7, %v1936_v62, %v1938_v17  ;;  %v1930_v1 = vsel %vm1926_vm3, %v1914_v20, %v1929_v29 }
 0x109   :  { %v1759_v49 = vshrl.u32 %v1741_v15, %v1757_v4  ;;  %v1935_v38 = vsel %vm1925_vm7, %v1932_v23, %v1934_v50  ;;  %v4304_v7 = vmul.u32.u64.low %v1940_v48, %v1939_v2  ;;  %v4305_v5 = vmul.u32.u64.high %v1940_v48, %v1939_v2, %v4304_v7 }
 0x10a   :  { %v1762_v22 = vadd.s32 127, %v1761_v53  ;;  %v1565_v46 = vsel %vm1480_vm9, %v1564_v37, %v4048_v42  ;;  %3103 = vsinq.f32 %v1566_v27  ;;  %v1931_v0 = vsel %vm1925_vm7, %v1928_v11, %v1930_v1 }
 0x10b   :  { %v1760_v51 = vor.u32 %v1759_v49, %v1758_v33  ;;  %v4316_v12 = vmul.u32.u64.low %v1940_v48, %v1935_v38  ;;  %v4317_v31 = vmul.u32.u64.high %v1940_v48, %v1935_v38, %v4316_v12  ;;  %v1567_v18 = vsel %vm4282_vm1, 0, %v1565_v46 }
 0x10c   :  { %v1763_v13 = vshll.u32 %v1762_v22, 23  ;;  %v2208_v42 = vand.u32 2139095040, %v4313_v24  ;;  %v1771_v39 = vsub.s32 4, %v4236_v3  ;;  %v1947_v14 = vmul.u32 %v1940_v48, %v1931_v0 }
 0x10d   :  { %v1767_v44 = vcvt.s32.f32 %v1760_v51  ;;  %vm1949_vm8 = vc.u32 %v4305_v5, %v4316_v12  ;;  %v1950_v54 = vadd.s32 1, %v4317_v31  ;;  %v1674_v52 = vadd.s32 3, %v1567_v18 }
 0x10e   :  { %v1764_v56 = vor.u32 4788187, %v1763_v13  ;;  %v2209_v61 = vshrl.u32 %v2208_v42, 23  ;;  %v4332_v60 = vand.u32 3, %v1567_v18  ;;  %vm1687_vm10 = vcmp.lt.s32.totalorder %v3838_v8, 0 }
 0x10f   :  { %v1951_v25 = vsel %vm1949_vm8, %v1950_v54, %v4317_v31  ;;  %vm1686_vm5 = vcmp.le.f32.partialorder %v1685_v6, 0.7853982  ;;  %v1772_v21 = vsel %vm1687_vm10, %v1771_v39, %v4236_v3  ;;  %v2415_v37 = vand.u32 2139095040, %v4330_v10 }
 0x110   :  { %v1765_v35 = vand.u32 2147483647, %v1764_v56  ;;  %v2999_v43 = vadd.s32 4294967169, %v2209_v61  ;;  %v1952_v58 = vadd.s32 %v1951_v25, %v1947_v14  ;;  %v4340_v9 = vand.u32 3, %v1674_v52 }
 0x111   :  { %vm1576_vm14 = vcmp.eq.s32.totalorder %v4332_v60, 2  ;;  %v1774_v27 = vsel %vm1686_vm5, 0, %v1772_v21  ;;  %v2205_v57 = vand.u32 2147483647, %v4313_v24  ;;  %v2416_v17 = vshrl.u32 %v2415_v37, 23 }
 0x112   :  { %v1768_v47 = vmul.f32 %v1767_v44, %v1765_v35  ;;  %v2215_v19 = vadd.s32 1, %v2999_v43  ;;  %v1953_v16 = vadd.s32 536870912, %v1952_v58  ;;  %vm1572_vm2 = vcmp.lt.s32.totalorder %v4332_v60, 2 }
 0x113   :  { %vm1573_vm13 = vcmp.eq.s32.totalorder %v4332_v60, 0  ;;  %vm1676_vm15 = vcmp.lt.s32.totalorder %v4340_v9, 2  ;;  %vm1677_vm0 = vcmp.eq.s32.totalorder %v4340_v9, 0  ;;  %vm1680_vm9 = vcmp.eq.s32.totalorder %v4340_v9, 2  ;;  %v3126_v60 = vld [vmem:[%s4880_s0 + $0x13] ss:$0 sm:$0xff] }
 0x114   :  { %v1769_v20 = vxor.u32 2147483648, %v1768_v47  ;;  %v3102_v63 = vpop.eup %3101  ;;  %vm2216_vm11 = vcmp.gt.s32.totalorder %v2215_v19, 0  ;;  %v4344_v6 = vshrl.u32 %v1953_v16, 30  ;;  %v4353_v45 = vand.u32 3, %v1774_v27 }
 0x115   :  { %v1577_v40 = vxor.u32 2147483648, %v3102_v63  ;;  %v2217_v3 = vsel %vm2216_vm11, %v2215_v19, 0  ;;  %v1881_v4 = vadd.s32 3, %v1774_v27  ;;  %v2212_v53 = vand.u32 8388607, %v2205_v57 }
 0x116   :  { %v1770_v15 = vsel %vm1687_vm10, %v1769_v20, %v1768_v47  ;;  %v2219_v62 = vand.u32 31, %v2217_v3  ;;  %v4361_v11 = vshrl.u32 %v2217_v3, 5  ;;  %v3007_v49 = vadd.s32 4294967169, %v2416_v17 }
 0x117   :  { %v1773_v48 = vsel %vm1686_vm5, %v3838_v8, %v1770_v15  ;;  %v3104_v55 = vpop.eup %3103  ;;  %v1955_v8 = vshll.u32 %v4344_v6, 30  ;;  %vm1780_vm1 = vcmp.eq.s32.totalorder %v4353_v45, 0  ;;  %vm1783_vm12 = vcmp.eq.s32.totalorder %v4353_v45, 2 }
 0x118   :  { %3105 = vcosq.f32 %v1773_v48  ;;  %v2220_v29 = vsub.s32 32, %v2219_v62  ;;  %v1574_v23 = vxor.u32 2147483648, %v3104_v55  ;;  %v1578_v50 = vsel %vm1576_vm14, %v1577_v40, %v3104_v55 }
 0x119   :  { %3107 = vsinq.f32 %v1773_v48  ;;  %v4357_v33 = vsub.s32 %v1952_v58, %v1955_v8  ;;  %v2234_v2 = vshll.u32 %v3133_v34, %v2219_v62  ;;  %v2225_v1 = vshll.u32 %v3130_v28, %v2219_v62  ;;  %v4424_v8 = vld [vmem:[%s4880_s0 + $0x14] ss:$0 sm:$0xff] }
 0x11a   :  { %v2228_v38 = vshll.u32 %v3131_v30, %v2219_v62  ;;  %v2231_v7 = vshll.u32 %v3132_v32, %v2219_v62  ;;  %v2226_v46 = vshrl.u32 %v3131_v30, %v2220_v29  ;;  %v2229_v51 = vshrl.u32 %v3132_v32, %v2220_v29 }
 0x11b   :  { %v1958_v22 = vsub.s32 0, %v4357_v33  ;;  %v2232_v13 = vshrl.u32 %v3133_v34, %v2220_v29  ;;  %v2235_v0 = vshrl.u32 %v3134_v41, %v2220_v29  ;;  %v1575_v31 = vsel %vm1573_vm13, %v3102_v63, %v1574_v23 }
 0x11c   :  { %v2222_v44 = vshll.u32 %v3129_v26, %v2219_v62  ;;  %v2223_v18 = vshrl.u32 %v3130_v28, %v2220_v29  ;;  %v1679_v42 = vsel %vm1677_vm0, %v3102_v63, %v1574_v23  ;;  %v1682_v35 = vsel %vm1680_vm9, %v1577_v40, %v3104_v55 }
 0x11d   :  { %v2992_v56 = vmin.u32 %v1958_v22, %v4357_v33  ;;  %v4383_v39 = vand.u32 3, %v1881_v4  ;;  %v2236_v14 = vor.u32 %v2235_v0, %v2234_v2  ;;  %v2213_v61 = vor.u32 8388608, %v2212_v53 }
 0x11e   :  { %v2233_v52 = vor.u32 %v2232_v13, %v2231_v7  ;;  %v2422_v47 = vadd.s32 1, %v3007_v49  ;;  %v4387_v25 = vsel %vm1572_vm2, %v1575_v31, %v1578_v50  ;;  %vm1779_vm3 = vcmp.lt.s32.totalorder %v4353_v45, 2 }
 0x11f   :  { %v1960_v54 = vclz %v2992_v56  ;;  %v2227_v43 = vor.u32 %v2226_v46, %v2225_v1  ;;  %v2230_v20 = vor.u32 %v2229_v51, %v2228_v38  ;;  %vm2240_vm4 = vcmp.lt.s32.totalorder %v4361_v11, 4 }
 0x120   :  { %v2224_v58 = vor.u32 %v2223_v18, %v2222_v44  ;;  %vm2237_vm6 = vcmp.lt.s32.totalorder %v4361_v11, 1  ;;  %vm2239_vm7 = vcmp.lt.s32.totalorder %v4361_v11, 3  ;;  %vm1570_vm8 = vweird.f32 %v3126_v60 }
 0x121   :  { %v2993_v21 = vadd.s32 4294967294, %v1960_v54  ;;  %v1683_v19 = vsel %vm1676_vm15, %v1679_v42, %v1682_v35  ;;  %v1948_v37 = vadd.s32 %v4316_v12, %v4305_v5  ;;  %v2250_v15 = vsel %vm2240_vm4, %v2236_v14, 1326507024  ;;  %v1475_v42 = vld [vmem:[%s4880_s0 + $0x16] ss:$0 sm:$0xff] }
 0x122   :  { %v2412_v16 = vand.u32 2147483647, %v4330_v10  ;;  %v2246_v27 = vsel %vm2240_vm4, %v2233_v52, 920167782  ;;  %v4409_v40 = vshll.u32 %v2213_v61, 8  ;;  %vm2423_vm5 = vcmp.gt.s32.totalorder %v2422_v47, 0 }
 0x123   :  { %vm2994_vm10 = vcmp.lt.s32.totalorder %v2993_v21, 0  ;;  %vm2238_vm14 = vcmp.lt.s32.totalorder %v4361_v11, 2  ;;  %v2249_v5 = vsel %vm2237_vm6, %v2227_v43, %v2230_v20  ;;  %v2251_v12 = vsel %vm2239_vm7, %v2233_v52, %v2250_v15  ;;  %v1476_v35 = vld [vmem:[%s4880_s0 + $0x17] ss:$0 sm:$0xff]  ;;  %v4474_v52 = vld [vmem:[%s4880_s0 + $0x1d] ss:$0 sm:$0xff] }
 0x124   :  { %v1963_v3 = vsel %vm2994_vm10, 0, %v2993_v21  ;;  %vm1894_vm11 = vcmp.lt.s32.totalorder %v4033_v36, 0  ;;  %v2221_v62 = vshrl.u32 %v3129_v26, %v2220_v29  ;;  %v2245_v17 = vsel %vm2237_vm6, %v2224_v58, %v2227_v43 }
 0x125   :  { %v4393_v63 = vpop.eup %3105  ;;  %v1964_v9 = vsub.s32 32, %v1963_v3  ;;  %v1965_v55 = vshll.u32 %v4357_v33, %v1963_v3  ;;  %vm1777_vm2 = vweird.f32 %v4424_v8  ;;  %v1968_v4 = vsub.s32 4294967266, %v1963_v3 }
 0x126   :  { %v4405_v48 = vpop.eup %3107  ;;  %v1784_v50 = vxor.u32 2147483648, %v4393_v63  ;;  %v2247_v33 = vsel %vm2239_vm7, %v2230_v20, %v2246_v27  ;;  %v2242_v29 = vsel %vm2240_vm4, %v2230_v20, 2102212464  ;;  %v2252_v2 = vsel %vm2238_vm14, %v2249_v5, %v2251_v12 }
 0x127   :  { %v1781_v23 = vxor.u32 2147483648, %v4405_v48  ;;  %v1966_v53 = vshrl.u32 %v1948_v37, %v1964_v9  ;;  %v2419_v49 = vand.u32 8388607, %v2412_v16  ;;  %vm4445_vm13 = vcmp.le.f32.partialorder %v1892_v59, 0.7853982 }
 0x128   :  { %v1785_v1 = vsel %vm1783_vm12, %v1784_v50, %v4405_v48  ;;  %v1969_v7 = vadd.s32 127, %v1968_v4  ;;  %v1978_v46 = vsub.s32 4, %v4344_v6  ;;  %v2241_v13 = vsel %vm2237_vm6, %v2221_v62, %v2224_v58 }
 0x129   :  { %v1782_v22 = vsel %vm1780_vm1, %v4393_v63, %v1781_v23  ;;  %v1967_v51 = vor.u32 %v1966_v53, %v1965_v55  ;;  %v2248_v0 = vsel %vm2238_vm14, %v2245_v17, %v2247_v33  ;;  %v2424_v31 = vsel %vm2423_vm5, %v2422_v47, 0 }
 0x12a   :  { %v1970_v56 = vshll.u32 %v1969_v7, 23  ;;  %v2243_v44 = vsel %vm2239_vm7, %v2227_v43, %v2242_v29  ;;  %v4458_v59 = vmul.u32.u64.low %v4409_v40, %v2252_v2  ;;  %v4459_v18 = vmul.u32.u64.high %v4409_v40, %v2252_v2, %v4458_v59 }
 0x12b   :  { %v1786_v14 = vsel %vm1779_vm3, %v1782_v22, %v1785_v1  ;;  %vm1884_vm15 = vcmp.eq.s32.totalorder %v4383_v39, 0  ;;  %vm1887_vm0 = vcmp.eq.s32.totalorder %v4383_v39, 2  ;;  %v1974_v54 = vcvt.s32.f32 %v1967_v51 }
 0x12c   :  { %v1971_v61 = vor.u32 4788187, %v1970_v56  ;;  %v4477_v47 = vmul.u32.u64.low %v4409_v40, %v2248_v0  ;;  %v4478_v43 = vmul.u32.u64.high %v4409_v40, %v2248_v0, %v4477_v47  ;;  %v2426_v20 = vand.u32 31, %v2424_v31 }
 0x12d   :  { %v4483_v45 = vsel %vm1570_vm8, nan, %v4387_v25  ;;  %v4486_v21 = vsel %vm1570_vm8, nan, %v1683_v19  ;;  %v2244_v58 = vsel %vm2238_vm14, %v2241_v13, %v2243_v44  ;;  %v2420_v37 = vor.u32 8388608, %v2419_v49 }
 0x12e   :  { %v1972_v15 = vand.u32 2147483647, %v1971_v61  ;;  %v1979_v27 = vsel %vm1894_vm11, %v1978_v46, %v4344_v6  ;;  %v4493_v3 = vmul.f32 0.5, %v1475_v42  ;;  %v4495_v5 = vshrl.u32 %v2424_v31, 5 }
 0x12f   :  { %v4499_v25 = vsel %vm1777_vm2, nan, %v1786_v14  ;;  %vm1883_vm9 = vcmp.lt.s32.totalorder %v4383_v39, 2  ;;  %v4502_v60 = vmul.f32 0.5, %v1476_v35  ;;  %v2427_v11 = vsub.s32 32, %v2426_v20 }
 0x130   :  { %v2622_v19 = vand.u32 2139095040, %v4474_v52  ;;  %v1975_v12 = vmul.f32 %v1974_v54, %v1972_v15  ;;  %v2260_v9 = vmul.u32 %v4409_v40, %v2244_v58  ;;  %vm2262_vm1 = vc.u32 %v4459_v18, %v4477_v47 }
 0x131   :  { %v2263_v6 = vadd.s32 1, %v4478_v43  ;;  %v1889_v55 = vsel %vm1887_vm0, %v1784_v50, %v4405_v48  ;;  %v1981_v62 = vsel %vm4445_vm13, 0, %v1979_v27  ;;  %v2429_v17 = vshll.u32 %v3129_v26, %v2426_v20 }
 0x132   :  { %v4515_v4 = vshll.u32 %v2420_v37, 8  ;;  %v1886_v40 = vsel %vm1884_vm15, %v4393_v63, %v1781_v23  ;;  %v1976_v33 = vxor.u32 2147483648, %v1975_v12  ;;  %v2104_v53 = vmul.f32 %v4499_v25, %v4483_v45  ;;  %v1477_v37 = vld [vmem:[%s4880_s0 + $0x30] ss:$0 sm:$0xff] }
 0x133   :  { %vm2444_vm12 = vcmp.lt.s32.totalorder %v4495_v5, 1  ;;  %v2264_v29 = vsel %vm2262_vm1, %v2263_v6, %v4478_v43  ;;  %v2428_v48 = vshrl.u32 %v3129_v26, %v2427_v11  ;;  %v2430_v50 = vshrl.u32 %v3130_v28, %v2427_v11 }
 0x134   :  { %v2432_v2 = vshll.u32 %v3130_v28, %v2426_v20  ;;  %v1977_v49 = vsel %vm1894_vm11, %v1976_v33, %v1975_v12  ;;  %v2265_v22 = vadd.s32 %v2264_v29, %v2260_v9  ;;  %v2433_v63 = vshrl.u32 %v3131_v30, %v2427_v11 }
 0x135   :  { %v2435_v23 = vshll.u32 %v3131_v30, %v2426_v20  ;;  %v1980_v1 = vsel %vm4445_vm13, %v4033_v36, %v1977_v49  ;;  %v2431_v7 = vor.u32 %v2430_v50, %v2429_v17  ;;  %v2436_v46 = vshrl.u32 %v3132_v32, %v2427_v11  ;;  %v1469_v17 = vld [vmem:[%s4880_s0 + $0x10] ss:$0 sm:$0xff] }
 0x136   :  { %v2438_v51 = vshll.u32 %v3132_v32, %v2426_v20  ;;  %3109 = vcosq.f32 %v1980_v1  ;;  %v2266_v13 = vadd.s32 536870912, %v2265_v22  ;;  %v2434_v0 = vor.u32 %v2433_v63, %v2432_v2 }
 0x137   :  { %v2439_v31 = vshrl.u32 %v3133_v34, %v2427_v11  ;;  %3111 = vsinq.f32 %v1980_v1  ;;  %v2437_v56 = vor.u32 %v2436_v46, %v2435_v23  ;;  %v2441_v44 = vshll.u32 %v3133_v34, %v2426_v20 }
 0x138   :  { %v2442_v59 = vshrl.u32 %v3134_v41, %v2427_v11  ;;  %v4539_v42 = vshrl.u32 %v2266_v13, 30  ;;  %vm2446_vm3 = vcmp.lt.s32.totalorder %v4495_v5, 3  ;;  %vm2447_vm4 = vcmp.lt.s32.totalorder %v4495_v5, 4 }
 0x139   :  { %v2440_v38 = vor.u32 %v2439_v31, %v2438_v51  ;;  %v2088_v35 = vadd.s32 3, %v1981_v62  ;;  %vm2445_vm6 = vcmp.lt.s32.totalorder %v4495_v5, 2  ;;  %v2452_v54 = vsel %vm2444_vm12, %v2431_v7, %v2434_v0 }
 0x13a   :  { %v2443_v14 = vor.u32 %v2442_v59, %v2441_v44  ;;  %v1890_v61 = vsel %vm1883_vm9, %v1886_v40, %v1889_v55  ;;  %v2114_v43 = vmul.f32 %v4499_v25, %v4486_v21  ;;  %v2449_v20 = vsel %vm2447_vm4, %v2437_v56, 2102212464 }
 0x13b   :  { %v2453_v58 = vsel %vm2447_vm4, %v2440_v38, 920167782  ;;  %v2105_v15 = vmul.f32 %v2104_v53, %v4493_v3  ;;  %v2456_v11 = vsel %vm2444_vm12, %v2434_v0, %v2437_v56  ;;  %v2268_v39 = vshll.u32 %v4539_v42, 30 }
 0x13c   :  { %v2454_v27 = vsel %vm2446_vm3, %v2437_v56, %v2453_v58  ;;  %v2457_v12 = vsel %vm2447_vm4, %v2443_v14, 1326507024  ;;  %v2448_v9 = vsel %vm2444_vm12, %v2428_v48, %v2431_v7  ;;  %v2450_v40 = vsel %vm2446_vm3, %v2434_v0, %v2449_v20 }
 0x13d   :  { %v2455_v6 = vsel %vm2445_vm6, %v2452_v54, %v2454_v27  ;;  %v2458_v55 = vsel %vm2446_vm3, %v2440_v38, %v2457_v12  ;;  %v1985_v48 = vand.u32 3, %v1981_v62  ;;  %v2089_v50 = vand.u32 3, %v2088_v35 }
 0x13e   :  { %v2459_v33 = vsel %vm2445_vm6, %v2456_v11, %v2458_v55  ;;  %v4573_v53 = vmul.u32.u64.low %v4515_v4, %v2455_v6  ;;  %v4574_v29 = vmul.u32.u64.high %v4515_v4, %v2455_v6, %v4573_v53  ;;  %v4577_v2 = vmul.f32 0.5, %v1477_v37 }
 0x13f   :  { %v1891_v49 = vsel %vm1777_vm2, nan, %v1890_v61  ;;  %v4582_v63 = vmul.u32.u64.low %v4515_v4, %v2459_v33  ;;  %v4583_v23 = vmul.u32.u64.high %v4515_v4, %v2459_v33, %v4582_v63  ;;  %v2623_v1 = vshrl.u32 %v2622_v19, 23 }
 0x140   :  { %v2115_v7 = vmul.f32 %v2114_v43, %v4502_v60  ;;  %v2124_v46 = vsub.f32 0.0, %v1891_v49  ;;  %v2130_v51 = vsub.f32 %v1469_v17, %v2105_v15  ;;  %v2451_v62 = vsel %vm2445_vm6, %v2448_v9, %v2450_v40 }
 0x141   :  { %vm1984_vm7 = vweird.f32 %v4033_v36  ;;  %v2139_v13 = vadd.f32 %v2105_v15, %v1469_v17  ;;  %v4591_v0 = vsub.s32 %v2265_v22, %v2268_v39  ;;  %v2470_v8 = vadd.s32 1, %v4574_v29 }
 0x142   :  { %vm1986_vm8 = vcmp.lt.s32.totalorder %v1985_v48, 2  ;;  %vm1987_vm10 = vcmp.eq.s32.totalorder %v1985_v48, 0  ;;  %vm1990_vm5 = vcmp.eq.s32.totalorder %v1985_v48, 2  ;;  %vm2090_vm14 = vcmp.lt.s32.totalorder %v2089_v50, 2 }
 0x143   :  { %v3110_v31 = vpop.eup %3109  ;;  %vm2091_vm11 = vcmp.eq.s32.totalorder %v2089_v50, 0  ;;  %vm2094_vm2 = vcmp.eq.s32.totalorder %v2089_v50, 2  ;;  %v2467_v19 = vmul.u32 %v4515_v4, %v2451_v62  ;;  %v3015_v56 = vadd.s32 4294967169, %v2623_v1 }
 0x144   :  { %v3112_v44 = vpop.eup %3111  ;;  %v1991_v5 = vxor.u32 2147483648, %v3110_v31  ;;  %v4596_v59 = vmul.f32 %v2124_v46, %v4577_v2  ;;  %v4598_v38 = vsub.f32 %v2130_v51, %v2115_v7  ;;  %vm2469_vm13 = vc.u32 %v4583_v23, %v4573_v53 }
 0x145   :  { %v1988_v22 = vxor.u32 2147483648, %v3112_v44  ;;  %v4602_v35 = vsub.f32 %v2139_v13, %v2115_v7  ;;  %v2271_v14 = vsub.s32 0, %v4591_v0  ;;  %v2471_v54 = vsel %vm2469_vm13, %v2470_v8, %v4574_v29 }
 0x146   :  { %v1992_v4 = vsel %vm1990_vm5, %v1991_v5, %v3112_v44  ;;  %v2096_v61 = vsel %vm2094_vm2, %v1991_v5, %v3112_v44  ;;  %v4607_v43 = vadd.f32 %v2139_v13, %v2115_v7  ;;  %v2619_v20 = vand.u32 2147483647, %v4474_v52 }
 0x147   :  { %v1989_v58 = vsel %vm1987_vm10, %v3110_v31, %v1988_v22  ;;  %v2093_v37 = vsel %vm2091_vm11, %v3110_v31, %v1988_v22  ;;  %v4612_v15 = vadd.s32 %v2471_v54, %v2467_v19  ;;  %v2629_v27 = vadd.s32 1, %v3015_v56 }
 0x148   :  { %v1993_v11 = vsel %vm1986_vm8, %v1989_v58, %v1992_v4  ;;  %v2097_v12 = vsel %vm2090_vm14, %v2093_v37, %v2096_v61  ;;  %v2132_v39 = vsub.f32 %v4598_v38, %v4596_v59  ;;  %v4618_v9 = vadd.f32 %v2130_v51, %v2115_v7 }
 0x149   :  { %v1994_v6 = vsel %vm1984_vm7, nan, %v1993_v11  ;;  %v2098_v55 = vsel %vm1984_vm7, nan, %v2097_v12  ;;  %v2141_v17 = vsub.f32 %v4602_v35, %v4596_v59  ;;  %v3000_v40 = vmin.u32 %v2271_v14, %v4591_v0 }
 0x14a   :  { %v2099_v33 = vmul.f32 %v2098_v55, %v1891_v49  ;;  %v2100_v29 = vmul.f32 %v1994_v6, %v1891_v49  ;;  %v2107_v48 = vmul.f32 %v1994_v6, %v4486_v21  ;;  %v2111_v50 = vmul.f32 %v2098_v55, %v4486_v21 }
 0x14b   :  { %v2117_v63 = vmul.f32 %v1994_v6, %v4483_v45  ;;  %v2121_v1 = vmul.f32 %v2098_v55, %v4483_v45  ;;  %v2473_v7 = vadd.s32 536870912, %v4612_v15  ;;  %vm2630_vm15 = vcmp.gt.s32.totalorder %v2629_v27, 0 }
 0x14c   :  { %v2106_v36 = vmul.f32 %v2099_v33, %v4483_v45  ;;  %v2110_v46 = vmul.f32 %v2100_v29, %v4483_v45  ;;  %v2116_v51 = vmul.f32 %v2099_v33, %v4486_v21  ;;  %v2120_v62 = vmul.f32 %v2100_v29, %v4486_v21  ;;  %v1470_v45 = vld [vmem:[%s4880_s0 + $0x11] ss:$0 sm:$0xff]  ;;  %v1471_v21 = vld [vmem:[%s4880_s0 + $0x12] ss:$0 sm:$0xff] }
 0x14d   :  { %v2126_v49 = vmul.f32 %v2098_v55, %v4499_v25  ;;  %v2128_v13 = vmul.f32 %v1994_v6, %v4499_v25  ;;  %v2149_v8 = vsub.f32 %v4607_v43, %v4596_v59  ;;  %v2163_v31 = vsub.f32 %v4618_v9, %v4596_v59 }
 0x14e   :  { %v2108_v19 = vsub.f32 %v2106_v36, %v2107_v48  ;;  %v2112_v56 = vadd.f32 %v2111_v50, %v2110_v46  ;;  %v2118_v44 = vadd.f32 %v2117_v63, %v2116_v51  ;;  %v2122_v5 = vsub.f32 %v2120_v62, %v2121_v1 }
 0x14f   :  { %v2168_v25 = vadd.f32 %v4598_v38, %v4596_v59  ;;  %v2273_v22 = vclz %v3000_v40  ;;  %v4650_v14 = vshrl.u32 %v2473_v7, 30  ;;  %v4653_v54 = vsel %vm2630_vm15, %v2629_v27, 0 }
 0x150   :  { %v2109_v4 = vmul.f32 %v2108_v19, %v4493_v3  ;;  %v2113_v61 = vmul.f32 %v2112_v56, %v4493_v3  ;;  %v2119_v58 = vmul.f32 %v2118_v44, %v4502_v60  ;;  %v2123_v37 = vmul.f32 %v2122_v5, %v4502_v60 }
 0x151   :  { %v2127_v11 = vmul.f32 %v2126_v49, %v4577_v2  ;;  %v2129_v12 = vmul.f32 %v2128_v13, %v4577_v2  ;;  %v2171_v6 = vadd.f32 %v4602_v35, %v4596_v59  ;;  %v2475_v55 = vshll.u32 %v4650_v14, 30 }
 0x152   :  { %v2133_v40 = vsub.f32 %v1470_v45, %v2109_v4  ;;  %v2136_v27 = vsub.f32 %v1471_v21, %v2113_v61  ;;  %v2142_v33 = vadd.f32 %v2109_v4, %v1470_v45  ;;  %v2145_v29 = vadd.f32 %v2113_v61, %v1471_v21 }
 0x153   :  { %v2182_v3 = vadd.f32 %v4607_v43, %v4596_v59  ;;  %v2185_v48 = vadd.f32 %v4618_v9, %v4596_v59  ;;  %v3001_v60 = vadd.s32 4294967294, %v2273_v22  ;;  %v4669_v50 = vand.u32 31, %v4653_v54 }
 0x154   :  { %v2134_v2 = vsub.f32 %v2133_v40, %v2119_v58  ;;  %v2137_v63 = vsub.f32 %v2136_v27, %v2123_v37  ;;  %v2143_v1 = vsub.f32 %v2142_v33, %v2119_v58  ;;  %v2146_v7 = vsub.f32 %v2145_v29, %v2123_v37 }
 0x155   :  { %v2150_v36 = vadd.f32 %v2142_v33, %v2119_v58  ;;  %v2152_v46 = vadd.f32 %v2145_v29, %v2123_v37  ;;  %v2164_v51 = vadd.f32 %v2133_v40, %v2119_v58  ;;  %v2166_v62 = vadd.f32 %v2136_v27, %v2123_v37 }
 0x156   :  { %v2135_v49 = vsub.f32 %v2134_v2, %v2127_v11  ;;  %v2138_v13 = vsub.f32 %v2137_v63, %v2129_v12  ;;  %v2144_v19 = vsub.f32 %v2143_v1, %v2127_v11  ;;  %v4672_v56 = vsub.s32 %v4612_v15, %v2475_v55 }
 0x157   :  { %v2147_v44 = vsub.f32 %v2146_v7, %v2129_v12  ;;  %v2153_v9 = vsub.f32 %v2152_v46, %v2129_v12  ;;  %v2165_v5 = vsub.f32 %v2164_v51, %v2127_v11  ;;  %v2167_v45 = vsub.f32 %v2166_v62, %v2129_v12 }
 0x158   :  { %v2151_v21 = vsub.f32 %v2150_v36, %v2127_v11  ;;  %vm4930_vm0 = vcmask 1040384   ;;  %v2169_v4 = vadd.f32 %v2134_v2, %v2127_v11  ;;  %v2172_v61 = vadd.f32 %v2143_v1, %v2127_v11 }
 0x159   :  { %v2154_v22 = vsel %vm4930_vm0, %v2132_v39, %v2135_v49  ;;  %vm4931_vm9 = vcmask 1041408   ;;  %v2173_v37 = vadd.f32 %v2146_v7, %v2129_v12  ;;  %vm4932_vm1 = vmmov %vm4930_vm0  ;;  %v2183_v27 = vadd.f32 %v2150_v36, %v2127_v11 }
 0x15a   :  { %v2155_v58 = vsel %vm4931_vm9, %v2154_v22, %v2138_v13  ;;  %v2174_v40 = vsel %vm4932_vm1, %v2153_v9, %v2163_v31  ;;  %vm4933_vm12 = vcmask 1042432   ;;  %v2170_v55 = vadd.f32 %v2137_v63, %v2129_v12  ;;  %vm4934_vm3 = vmmov %vm4931_vm9 }
 0x15b   :  { %v2156_v15 = vsel %vm4933_vm12, %v2155_v58, %v2141_v17  ;;  %v2175_v33 = vsel %vm4934_vm3, %v2174_v40, %v2165_v5  ;;  %v2184_v29 = vadd.f32 %v2152_v46, %v2129_v12  ;;  %vm4935_vm4 = vcmask 1043456   ;;  %vm4936_vm6 = vmmov %vm4933_vm12 }
 0x15c   :  { %v2157_v38 = vsel %vm4935_vm4, %v2156_v15, %v2144_v19  ;;  %v2176_v39 = vsel %vm4936_vm6, %v2175_v33, %v2167_v45  ;;  %v2186_v2 = vadd.f32 %v2164_v51, %v2127_v11  ;;  %vm4937_vm7 = vmmov %vm4930_vm0  ;;  %vm4938_vm8 = vcmask 1044480  }
 0x15d   :  { %v2188_v1 = vsel %vm4937_vm7, %v2172_v61, %v2173_v37  ;;  %v2158_v7 = vsel %vm4938_vm8, %v2157_v38, %v2147_v44  ;;  %vm4939_vm10 = vmmov %vm4935_vm4  ;;  %v2187_v36 = vadd.f32 %v2166_v62, %v2129_v12  ;;  %vm4941_vm14 = vcmask 1045504  }
 0x15e   :  { %v2177_v31 = vsel %vm4939_vm10, %v2176_v39, %v2168_v25  ;;  %vm4940_vm5 = vmmov %vm4934_vm3  ;;  %v2159_v17 = vsel %vm4941_vm14, %v2158_v7, %v2149_v8  ;;  %v2478_v11 = vsub.s32 0, %v4672_v56  ;;  %vm4944_vm13 = vcmask 1046528  }
 0x15f   :  { %v2189_v35 = vsel %vm4940_vm5, %v2188_v1, %v2182_v3  ;;  %vm4942_vm11 = vmmov %vm4938_vm8  ;;  %v2160_v51 = vsel %vm4944_vm13, %v2159_v17, %v2151_v21  ;;  %v2626_v12 = vand.u32 8388607, %v2619_v20  ;;  %v2634_v62 = vsub.s32 32, %v4669_v50 }
 0x160   :  { %v2178_v63 = vsel %vm4942_vm11, %v2177_v31, %v2169_v4  ;;  %vm4943_vm2 = vmmov %vm4936_vm6  ;;  %2161 = vst [vmem:[%s4881_s1 + $0x10] sm:$0xff] %v2160_v51  ;;  %v3008_v8 = vmin.u32 %v2478_v11, %v4672_v56  ;;  %v2636_v44 = vshll.u32 %v3129_v26, %v4669_v50  ;;  %v2639_v45 = vshll.u32 %v3130_v28, %v4669_v50 }
 0x161   :  { %v2190_v46 = vsel %vm4943_vm2, %v2189_v35, %v2183_v27  ;;  %vm4945_vm15 = vmmov %vm4941_vm14  ;;  %v2637_v5 = vshrl.u32 %v3130_v28, %v2634_v62  ;;  %v2640_v21 = vshrl.u32 %v3131_v30, %v2634_v62  ;;  %v2632_v22 = vshrl.u32 %v4653_v54, 5 }
 0x162   :  { %v2179_v49 = vsel %vm4945_vm15, %v2178_v63, %v2170_v55  ;;  %vm4946_vm0 = vmmov %vm4935_vm4  ;;  %vm3002_vm4 = vcmp.lt.s32.totalorder %v3001_v60, 0  ;;  %v2480_v19 = vclz %v3008_v8  ;;  %v2642_v4 = vshll.u32 %v3131_v30, %v4669_v50 }
 0x163   :  { %v2191_v25 = vsel %vm4946_vm0, %v2190_v46, %v2184_v29  ;;  %vm4947_vm9 = vmmov %vm4944_vm13  ;;  %v2276_v9 = vsel %vm3002_vm4, 0, %v3001_v60  ;;  %v2261_v61 = vadd.s32 %v4477_v47, %v4459_v18  ;;  %v2643_v37 = vshrl.u32 %v3132_v32, %v2634_v62 }
 0x164   :  { %v2180_v59 = vsel %vm4947_vm9, %v2179_v49, %v2171_v6  ;;  %vm4948_vm1 = vmmov %vm4938_vm8  ;;  %v2627_v6 = vor.u32 8388608, %v2626_v12  ;;  %v2277_v40 = vsub.s32 32, %v2276_v9  ;;  %v2281_v27 = vsub.s32 4294967266, %v2276_v9 }
 0x165   :  { %v2192_v43 = vsel %vm4948_vm1, %v2191_v25, %v2185_v48  ;;  %2181 = vst [vmem:[%s4881_s1 + $0x30] sm:$0xff] %v2180_v59  ;;  %vm4949_vm12 = vmmov %vm4941_vm14  ;;  %v3009_v48 = vadd.s32 4294967294, %v2480_v19  ;;  %v2638_v15 = vor.u32 %v2637_v5, %v2636_v44  ;;  %v2645_v28 = vshll.u32 %v3132_v32, %v4669_v50 }
 0x166   :  { %v2193_v3 = vsel %vm4949_vm12, %v2192_v43, %v2186_v2  ;;  %vm4950_vm3 = vmmov %vm4947_vm9  ;;  %v2667_v60 = vshll.u32 %v2627_v6, 8  ;;  %v2641_v55 = vor.u32 %v2640_v21, %v2639_v45  ;;  %v2646_v33 = vshrl.u32 %v3133_v34, %v2634_v62 }
 0x167   :  { %v2194_v13 = vsel %vm4950_vm3, %v2193_v3, %v2187_v36  ;;  %vm3010_vm6 = vcmp.lt.s32.totalorder %v3009_v48, 0  ;;  %v2648_v54 = vshll.u32 %v3133_v34, %v4669_v50  ;;  %v2649_v30 = vshrl.u32 %v3134_v41, %v2634_v62 }
 0x168   :  { %2195 = vst [vmem:[%s4881_s1 + $0x50] sm:$0xff] %v2194_v13  ;;  %v2483_v58 = vsel %vm3010_vm6, 0, %v3009_v48  ;;  %v2635_v18 = vshrl.u32 %v3129_v26, %v2634_v62  ;;  %v2644_v47 = vor.u32 %v2643_v37, %v2642_v4  ;;  %vm2651_vm7 = vcmp.lt.s32.totalorder %v2632_v22, 1 }
 0x169   :  { %v2488_v29 = vsub.s32 4294967266, %v2483_v58  ;;  %v2647_v38 = vor.u32 %v2646_v33, %v2645_v28  ;;  %v2650_v39 = vor.u32 %v2649_v30, %v2648_v54  ;;  %vm2653_vm8 = vcmp.lt.s32.totalorder %v2632_v22, 3 }
 0x16a   :  { %vm2654_vm10 = vcmp.lt.s32.totalorder %v2632_v22, 4  ;;  %v2282_v2 = vadd.s32 127, %v2281_v27  ;;  %v2468_v32 = vadd.s32 %v4573_v53, %v4583_v23  ;;  %vm2652_vm5 = vcmp.lt.s32.totalorder %v2632_v22, 2 }
 0x16b   :  { %v2656_v1 = vsel %vm2654_vm10, %v2644_v47, 2102212464  ;;  %v2278_v34 = vshll.u32 %v4591_v0, %v2276_v9  ;;  %v2484_v50 = vsub.s32 32, %v2483_v58  ;;  %v2659_v41 = vsel %vm2651_vm7, %v2638_v15, %v2641_v55 }
 0x16c   :  { %v2660_v26 = vsel %vm2654_vm10, %v2647_v38, 920167782  ;;  %v2279_v7 = vshrl.u32 %v2261_v61, %v2277_v40  ;;  %v2489_v31 = vadd.s32 127, %v2488_v29  ;;  %v2663_v35 = vsel %vm2651_vm7, %v2641_v55, %v2644_v47 }
 0x16d   :  { %v2661_v36 = vsel %vm2653_vm8, %v2644_v47, %v2660_v26  ;;  %v2655_v17 = vsel %vm2651_vm7, %v2635_v18, %v2638_v15  ;;  %v2657_v53 = vsel %vm2653_vm8, %v2641_v55, %v2656_v1  ;;  %v2664_v63 = vsel %vm2654_vm10, %v2650_v39, 1326507024 }
 0x16e   :  { %v2662_v23 = vsel %vm2652_vm5, %v2659_v41, %v2661_v36  ;;  %v2283_v0 = vshll.u32 %v2282_v2, 23  ;;  %v2665_v46 = vsel %vm2653_vm8, %v2647_v38, %v2664_v63  ;;  %v2485_v49 = vshll.u32 %v4672_v56, %v2483_v58 }
 0x16f   :  { %v4750_v11 = vmul.u32.u64.low %v2667_v60, %v2662_v23  ;;  %v4751_v51 = vmul.u32.u64.high %v2667_v60, %v2662_v23, %v4750_v11  ;;  %v2486_v25 = vshrl.u32 %v2468_v32, %v2484_v50  ;;  %v2666_v12 = vsel %vm2652_vm5, %v2663_v35, %v2665_v46 }
 0x170   :  { %v2490_v59 = vshll.u32 %v2489_v31, 23  ;;  %v2658_v43 = vsel %vm2652_vm5, %v2655_v17, %v2657_v53  ;;  %v4756_v8 = vmul.u32.u64.low %v2667_v60, %v2666_v12  ;;  %v4757_v3 = vmul.u32.u64.high %v2667_v60, %v2666_v12, %v4756_v8 }
 0x171   :  { %v2280_v62 = vor.u32 %v2279_v7, %v2278_v34  ;;  %v2284_v13 = vor.u32 4788187, %v2283_v0  ;;  %v2677_v19 = vadd.s32 1, %v4751_v51  ;;  %v2674_v6 = vmul.u32 %v2667_v60, %v2658_v43 }
 0x172   :  { %v2487_v48 = vor.u32 %v2486_v25, %v2485_v49  ;;  %v2491_v44 = vor.u32 4788187, %v2490_v59  ;;  %vm2676_vm14 = vc.u32 %v4757_v3, %v4750_v11  ;;  %vm2207_vm11 = vcmp.lt.s32.totalorder %v4313_v24, 0 }
 0x173   :  { %v2285_v9 = vand.u32 2147483647, %v2284_v13  ;;  %v2287_v56 = vcvt.s32.f32 %v2280_v62  ;;  %v2678_v5 = vsel %vm2676_vm14, %v2677_v19, %v4751_v51  ;;  %vm2414_vm2 = vcmp.lt.s32.totalorder %v4330_v10, 0 }
 0x174   :  { %v2679_v45 = vadd.s32 %v2678_v5, %v2674_v6  ;;  %v2492_v21 = vand.u32 2147483647, %v2491_v44  ;;  %v2494_v22 = vcvt.s32.f32 %v2487_v48  ;;  %vm4766_vm13 = vcmp.le.f32.partialorder %v2205_v57, 0.7853982 }
 0x175   :  { %v2288_v61 = vmul.f32 %v2287_v56, %v2285_v9  ;;  %vm4774_vm15 = vcmp.le.f32.partialorder %v2412_v16, 0.7853982  ;;  %v2675_v16 = vadd.s32 %v4750_v11, %v4757_v3  ;;  %v2291_v39 = vsub.s32 4, %v4539_v42 }
 0x176   :  { %v2680_v4 = vadd.s32 536870912, %v2679_v45  ;;  %v2495_v37 = vmul.f32 %v2494_v22, %v2492_v21  ;;  %v2498_v50 = vsub.s32 4, %v4650_v14  ;;  %vm2621_vm9 = vcmp.lt.s32.totalorder %v4474_v52, 0 }
 0x177   :  { %v2289_v27 = vxor.u32 2147483648, %v2288_v61  ;;  %v2292_v7 = vsel %vm2207_vm11, %v2291_v39, %v4539_v42  ;;  %vm4802_vm1 = vcmp.le.f32.partialorder %v2619_v20, 0.7853982 }
 0x178   :  { %v2681_v58 = vshrl.u32 %v2680_v4, 30  ;;  %v2496_v15 = vxor.u32 2147483648, %v2495_v37  ;;  %v2499_v35 = vsel %vm2414_vm2, %v2498_v50, %v4650_v14  ;;  %v2294_v23 = vsel %vm4766_vm13, 0, %v2292_v7  ;;  %v2196_v7 = vld [vmem:[%s4880_s0 + $0x18] ss:$0 sm:$0xff] }
 0x179   :  { %v2290_v33 = vsel %vm2207_vm11, %v2289_v27, %v2288_v61  ;;  %v2501_v0 = vsel %vm4774_vm15, 0, %v2499_v35  ;;  %v2401_v11 = vadd.s32 3, %v2294_v23  ;;  %v2298_v43 = vand.u32 3, %v2294_v23 }
 0x17a   :  { %v2682_v40 = vshll.u32 %v2681_v58, 30  ;;  %v2497_v29 = vsel %vm2414_vm2, %v2496_v15, %v2495_v37  ;;  %v2293_v57 = vsel %vm4766_vm13, %v4313_v24, %v2290_v33  ;;  %v2505_v51 = vand.u32 3, %v2501_v0 }
 0x17b   :  { %v2500_v47 = vsel %vm4774_vm15, %v4330_v10, %v2497_v29  ;;  %3113 = vcosq.f32 %v2293_v57  ;;  %v2705_v49 = vsub.s32 4, %v2681_v58  ;;  %v2402_v8 = vand.u32 3, %v2401_v11 }
 0x17c   :  { %v2683_v60 = vsub.s32 %v2679_v45, %v2682_v40  ;;  %3115 = vsinq.f32 %v2293_v57  ;;  %vm2507_vm12 = vcmp.eq.s32.totalorder %v2505_v51, 0  ;;  %v2608_v3 = vadd.s32 3, %v2501_v0 }
 0x17d   :  { %3117 = vcosq.f32 %v2500_v47  ;;  %vm2510_vm3 = vcmp.eq.s32.totalorder %v2505_v51, 2  ;;  %v2706_v19 = vsel %vm2621_vm9, %v2705_v49, %v2681_v58  ;;  %vm2300_vm4 = vcmp.eq.s32.totalorder %v2298_v43, 0  ;;  %v3128_v58 = vld [vmem:[%s4880_s0 + $0x1b] ss:$0 sm:$0xff] }
 0x17e   :  { %v2685_v28 = vsub.s32 0, %v2683_v60  ;;  %3119 = vsinq.f32 %v2500_v47  ;;  %vm2303_vm6 = vcmp.eq.s32.totalorder %v2298_v43, 2  ;;  %vm2506_vm7 = vcmp.lt.s32.totalorder %v2505_v51, 2 }
 0x17f   :  { %v2609_v5 = vand.u32 3, %v2608_v3  ;;  %v2708_v45 = vsel %vm4802_vm1, 0, %v2706_v19  ;;  %vm2299_vm8 = vcmp.lt.s32.totalorder %v2298_v43, 2  ;;  %vm2404_vm10 = vcmp.eq.s32.totalorder %v2402_v8, 0 }
 0x180   :  { %v3016_v54 = vmin.u32 %v2685_v28, %v2683_v60  ;;  %vm2407_vm5 = vcmp.eq.s32.totalorder %v2402_v8, 2  ;;  %v2815_v61 = vadd.s32 3, %v2708_v45  ;;  %vm2297_vm14 = vweird.f32 %v3128_v58  ;;  %v2203_v28 = vld [vmem:[%s4880_s0 + $0x1f] ss:$0 sm:$0xff] }
 0x181   :  { %vm2403_vm11 = vcmp.lt.s32.totalorder %v2402_v8, 2  ;;  %vm2504_vm2 = vweird.f32 %v4330_v10  ;;  %vm2611_vm13 = vcmp.eq.s32.totalorder %v2609_v5, 0  ;;  %vm2614_vm15 = vcmp.eq.s32.totalorder %v2609_v5, 2 }
 0x182   :  { %v2687_v18 = vclz %v3016_v54  ;;  %v2712_v55 = vand.u32 3, %v2708_v45  ;;  %v2816_v33 = vand.u32 3, %v2815_v61  ;;  %v2197_v45 = vld [vmem:[%s4880_s0 + $0x19] ss:$0 sm:$0xff] }
 0x184   :  { %v3017_v38 = vadd.s32 4294967294, %v2687_v18 }
 0x186   :  { %vm3018_vm0 = vcmp.lt.s32.totalorder %v3017_v38, 0 }
 0x187   :  { %v2690_v2 = vsel %vm3018_vm0, 0, %v3017_v38  ;;  %vm2610_vm0 = vcmp.lt.s32.totalorder %v2609_v5, 2  ;;  %v2829_v38 = vmul.f32 0.5, %v2203_v28 }
 0x188   :  { %v2691_v32 = vsub.s32 32, %v2690_v2  ;;  %v2692_v1 = vshll.u32 %v2683_v60, %v2690_v2  ;;  %v2695_v34 = vsub.s32 4294967266, %v2690_v2  ;;  %v3114_v46 = vpop.eup %3113  ;;  %v2202_v60 = vld [vmem:[%s4880_s0 + $0x1e] ss:$0 sm:$0xff] }
 0x189   :  { %v3116_v42 = vpop.eup %3115  ;;  %v2304_v13 = vxor.u32 2147483648, %v3114_v46  ;;  %v2828_v18 = vmul.f32 0.5, %v2202_v60 }
 0x18a   :  { %v2693_v41 = vshrl.u32 %v2675_v16, %v2691_v32  ;;  %v2696_v26 = vadd.s32 127, %v2695_v34  ;;  %v3118_v25 = vpop.eup %3117  ;;  %v2301_v48 = vxor.u32 2147483648, %v3116_v42 }
 0x18b   :  { %v3120_v59 = vpop.eup %3119  ;;  %v2511_v20 = vxor.u32 2147483648, %v3118_v25  ;;  %v2305_v22 = vsel %vm2303_vm6, %v2304_v13, %v3116_v42  ;;  %v2409_v27 = vsel %vm2407_vm5, %v2304_v13, %v3116_v42  ;;  %vm2817_vm6 = vcmp.lt.s32.totalorder %v2816_v33, 2 }
 0x18c   :  { %v2694_v31 = vor.u32 %v2693_v41, %v2692_v1  ;;  %v2697_v36 = vshll.u32 %v2696_v26, 23  ;;  %v2508_v44 = vxor.u32 2147483648, %v3120_v59  ;;  %v2302_v21 = vsel %vm2300_vm4, %v3114_v46, %v2301_v48  ;;  %v2204_v1 = vld [vmem:[%s4880_s0 + $0x38] ss:$0 sm:$0xff] }
 0x18d   :  { %v2512_v56 = vsel %vm2510_vm3, %v2511_v20, %v3120_v59  ;;  %v2306_v37 = vsel %vm2299_vm8, %v2302_v21, %v2305_v22  ;;  %v2406_v40 = vsel %vm2404_vm10, %v3114_v46, %v2301_v48  ;;  %v2616_v57 = vsel %vm2614_vm15, %v2511_v20, %v3120_v59  ;;  %v2198_v21 = vld [vmem:[%s4880_s0 + $0x1a] ss:$0 sm:$0xff] }
 0x18e   :  { %v2698_v17 = vor.u32 4788187, %v2697_v36  ;;  %v2701_v53 = vcvt.s32.f32 %v2694_v31  ;;  %v2509_v9 = vsel %vm2507_vm12, %v3118_v25, %v2508_v44  ;;  %v2307_v54 = vsel %vm2297_vm14, nan, %v2306_v37 }
 0x18f   :  { %v2513_v4 = vsel %vm2506_vm7, %v2509_v9, %v2512_v56  ;;  %v2410_v30 = vsel %vm2403_vm11, %v2406_v40, %v2409_v27  ;;  %v2613_v29 = vsel %vm2611_vm13, %v3118_v25, %v2508_v44  ;;  %vm2714_vm12 = vcmp.eq.s32.totalorder %v2712_v55, 0 }
 0x190   :  { %v2699_v63 = vand.u32 2147483647, %v2698_v17  ;;  %v2514_v15 = vsel %vm2504_vm2, nan, %v2513_v4  ;;  %v2411_v39 = vsel %vm2297_vm14, nan, %v2410_v30  ;;  %v2617_v2 = vsel %vm2610_vm0, %v2613_v29, %v2616_v57 }
 0x191   :  { %v2831_v47 = vmul.f32 %v2514_v15, %v2307_v54  ;;  %vm2818_vm3 = vcmp.eq.s32.totalorder %v2816_v33, 0  ;;  %v2841_v50 = vmul.f32 %v2514_v15, %v2411_v39  ;;  %vm2713_vm4 = vcmp.lt.s32.totalorder %v2712_v55, 2 }
 0x192   :  { %v2702_v24 = vmul.f32 %v2701_v53, %v2699_v63  ;;  %v2618_v31 = vsel %vm2504_vm2, nan, %v2617_v2  ;;  %vm2711_vm7 = vweird.f32 %v4474_v52  ;;  %v2830_v23 = vmul.f32 0.5, %v2204_v1 }
 0x193   :  { %v2832_v26 = vmul.f32 %v2831_v47, %v2828_v18  ;;  %v2851_v63 = vsub.f32 0.0, %v2618_v31  ;;  %v2842_v11 = vmul.f32 %v2841_v50, %v2829_v38  ;;  %vm4957_vm8 = vcmask 1040384  }
 0x194   :  { %v2703_v12 = vxor.u32 2147483648, %v2702_v24  ;;  %vm4958_vm10 = vcmask 1041408   ;;  %vm4959_vm5 = vmmov %vm4957_vm8  ;;  %vm4960_vm14 = vcmask 1042432   ;;  %vm4962_vm2 = vcmask 1043456  }
 0x195   :  { %v2857_v42 = vsub.f32 %v2196_v7, %v2832_v26  ;;  %v2866_v49 = vadd.f32 %v2832_v26, %v2196_v7  ;;  %vm4961_vm11 = vmmov %vm4958_vm10  ;;  %vm4965_vm0 = vcmask 1044480  }
 0x196   :  { %v2704_v62 = vsel %vm2621_vm9, %v2703_v12, %v2702_v24  ;;  %vm2717_vm9 = vcmp.eq.s32.totalorder %v2712_v55, 2  ;;  %vm4963_vm13 = vmmov %vm4960_vm14 }
 0x197   :  { %v2707_v6 = vsel %vm4802_vm1, %v4474_v52, %v2704_v62  ;;  %vm2821_vm1 = vcmp.eq.s32.totalorder %v2816_v33, 2  ;;  %v4834_v52 = vmul.f32 %v2851_v63, %v2830_v23  ;;  %v2858_v48 = vsub.f32 %v2857_v42, %v2842_v11  ;;  %vm4964_vm15 = vmmov %vm4959_vm5 }
 0x198   :  { %3121 = vcosq.f32 %v2707_v6  ;;  %v2867_v44 = vsub.f32 %v2866_v49, %v2842_v11  ;;  %v2875_v22 = vadd.f32 %v2866_v49, %v2842_v11  ;;  %v2889_v4 = vadd.f32 %v2857_v42, %v2842_v11 }
 0x199   :  { %3123 = vsinq.f32 %v2707_v6  ;;  %v2895_v47 = vadd.f32 %v2858_v48, %v4834_v52 }
 0x19a   :  { %v2868_v28 = vsub.f32 %v2867_v44, %v4834_v52  ;;  %v2876_v29 = vsub.f32 %v2875_v22, %v4834_v52  ;;  %v2890_v57 = vsub.f32 %v2889_v4, %v4834_v52 }
 0x1a5   :  { %v3122_v16 = vpop.eup %3121 }
 0x1a6   :  { %v3124_v32 = vpop.eup %3123  ;;  %v2718_v34 = vxor.u32 2147483648, %v3122_v16 }
 0x1a7   :  { %v2715_v41 = vxor.u32 2147483648, %v3124_v32 }
 0x1a8   :  { %v2719_v36 = vsel %vm2717_vm9, %v2718_v34, %v3124_v32  ;;  %v2823_v35 = vsel %vm2821_vm1, %v2718_v34, %v3124_v32  ;;  %vm4966_vm9 = vmmov %vm4962_vm2 }
 0x1a9   :  { %v2716_v17 = vsel %vm2714_vm12, %v3122_v16, %v2715_v41  ;;  %v2820_v53 = vsel %vm2818_vm3, %v3122_v16, %v2715_v41  ;;  %vm4967_vm1 = vmmov %vm4958_vm10  ;;  %vm4968_vm12 = vcmask 1045504  }
 0x1aa   :  { %v2720_v0 = vsel %vm2713_vm4, %v2716_v17, %v2719_v36  ;;  %v2824_v46 = vsel %vm2817_vm6, %v2820_v53, %v2823_v35  ;;  %vm4969_vm3 = vmmov %vm4965_vm0  ;;  %vm4971_vm6 = vcmask 1046528  }
 0x1ab   :  { %v2721_v51 = vsel %vm2711_vm7, nan, %v2720_v0  ;;  %v2825_v24 = vsel %vm2711_vm7, nan, %v2824_v46  ;;  %vm4970_vm4 = vmmov %vm4963_vm13 }
 0x1ac   :  { %v2826_v25 = vmul.f32 %v2825_v24, %v2618_v31  ;;  %v2827_v14 = vmul.f32 %v2721_v51, %v2618_v31  ;;  %v2834_v12 = vmul.f32 %v2721_v51, %v2411_v39  ;;  %v2838_v10 = vmul.f32 %v2825_v24, %v2411_v39  ;;  %vm4972_vm7 = vmmov %vm4968_vm12 }
 0x1ad   :  { %v2844_v59 = vmul.f32 %v2721_v51, %v2307_v54  ;;  %v2848_v43 = vmul.f32 %v2825_v24, %v2307_v54  ;;  %v2853_v19 = vmul.f32 %v2825_v24, %v2514_v15  ;;  %v2855_v6 = vmul.f32 %v2721_v51, %v2514_v15 }
 0x1ae   :  { %v2833_v8 = vmul.f32 %v2826_v25, %v2307_v54  ;;  %v2837_v3 = vmul.f32 %v2827_v14, %v2307_v54  ;;  %v2843_v62 = vmul.f32 %v2826_v25, %v2411_v39  ;;  %v2847_v13 = vmul.f32 %v2827_v14, %v2411_v39 }
 0x1af   :  { %v2854_v27 = vmul.f32 %v2853_v19, %v2830_v23  ;;  %v2856_v60 = vmul.f32 %v2855_v6, %v2830_v23  ;;  %v2859_v15 = vsub.f32 %v2858_v48, %v4834_v52  ;;  %v2909_v31 = vadd.f32 %v2875_v22, %v4834_v52 }
 0x1b0   :  { %v2835_v20 = vsub.f32 %v2833_v8, %v2834_v12  ;;  %v2839_v9 = vadd.f32 %v2838_v10, %v2837_v3  ;;  %v2845_v56 = vadd.f32 %v2844_v59, %v2843_v62  ;;  %v2849_v5 = vsub.f32 %v2847_v13, %v2848_v43 }
 0x1b1   :  { %v2912_v43 = vadd.f32 %v2889_v4, %v4834_v52 }
 0x1b2   :  { %v2836_v61 = vmul.f32 %v2835_v20, %v2828_v18  ;;  %v2840_v58 = vmul.f32 %v2839_v9, %v2828_v18  ;;  %v2846_v37 = vmul.f32 %v2845_v56, %v2829_v38  ;;  %v2850_v40 = vmul.f32 %v2849_v5, %v2829_v38 }
 0x1b3   :  { %v2898_v18 = vadd.f32 %v2867_v44, %v4834_v52 }
 0x1b4   :  { %v2860_v55 = vsub.f32 %v2197_v45, %v2836_v61  ;;  %v2863_v33 = vsub.f32 %v2198_v21, %v2840_v58  ;;  %v2869_v54 = vadd.f32 %v2836_v61, %v2197_v45  ;;  %v2872_v30 = vadd.f32 %v2840_v58, %v2198_v21 }
 0x1b6   :  { %v2861_v16 = vsub.f32 %v2860_v55, %v2846_v37  ;;  %v2864_v38 = vsub.f32 %v2863_v33, %v2850_v40  ;;  %v2870_v39 = vsub.f32 %v2869_v54, %v2846_v37  ;;  %v2873_v2 = vsub.f32 %v2872_v30, %v2850_v40 }
 0x1b7   :  { %v2877_v32 = vadd.f32 %v2869_v54, %v2846_v37  ;;  %v2879_v1 = vadd.f32 %v2872_v30, %v2850_v40  ;;  %v2891_v34 = vadd.f32 %v2860_v55, %v2846_v37  ;;  %v2893_v50 = vadd.f32 %v2863_v33, %v2850_v40 }
 0x1b8   :  { %v2862_v41 = vsub.f32 %v2861_v16, %v2854_v27  ;;  %v2865_v26 = vsub.f32 %v2864_v38, %v2856_v60  ;;  %v2871_v7 = vsub.f32 %v2870_v39, %v2854_v27  ;;  %v2874_v36 = vsub.f32 %v2873_v2, %v2856_v60 }
 0x1b9   :  { %v2880_v35 = vsub.f32 %v2879_v1, %v2856_v60  ;;  %v2892_v17 = vsub.f32 %v2891_v34, %v2854_v27  ;;  %v2894_v53 = vsub.f32 %v2893_v50, %v2856_v60  ;;  %v2878_v23 = vsub.f32 %v2877_v32, %v2854_v27 }
 0x1ba   :  { %v2881_v63 = vsel %vm4957_vm8, %v2859_v15, %v2862_v41  ;;  %v2896_v0 = vadd.f32 %v2861_v16, %v2854_v27  ;;  %v2899_v46 = vadd.f32 %v2870_v39, %v2854_v27  ;;  %v2900_v51 = vadd.f32 %v2873_v2, %v2856_v60  ;;  %vm4973_vm8 = vmmov %vm4962_vm2 }
 0x1bb   :  { %v2882_v11 = vsel %vm4958_vm10, %v2881_v63, %v2865_v26  ;;  %v2901_v24 = vsel %vm4959_vm5, %v2880_v35, %v2890_v57  ;;  %v2910_v42 = vadd.f32 %v2877_v32, %v2854_v27  ;;  %v2897_v25 = vadd.f32 %v2864_v38, %v2856_v60  ;;  %vm4974_vm10 = vmmov %vm4971_vm6 }
 0x1bc   :  { %v2883_v49 = vsel %vm4960_vm14, %v2882_v11, %v2868_v28  ;;  %v2902_v14 = vsel %vm4961_vm11, %v2901_v24, %v2892_v17  ;;  %v2911_v12 = vadd.f32 %v2879_v1, %v2856_v60  ;;  %v2915_v8 = vsel %vm4964_vm15, %v2899_v46, %v2900_v51  ;;  %vm4975_vm5 = vmmov %vm4965_vm0 }
 0x1bd   :  { %v2884_v10 = vsel %vm4962_vm2, %v2883_v49, %v2871_v7  ;;  %v2903_v59 = vsel %vm4963_vm13, %v2902_v14, %v2894_v53  ;;  %v2913_v13 = vadd.f32 %v2891_v34, %v2854_v27  ;;  %v2916_v19 = vsel %vm4967_vm1, %v2915_v8, %v2909_v31  ;;  %vm4976_vm14 = vmmov %vm4972_vm7 }
 0x1be   :  { %v2885_v3 = vsel %vm4965_vm0, %v2884_v10, %v2874_v36  ;;  %v2904_v62 = vsel %vm4966_vm9, %v2903_v59, %v2895_v47  ;;  %v2914_v44 = vadd.f32 %v2893_v50, %v2856_v60  ;;  %v2917_v20 = vsel %vm4970_vm4, %v2916_v19, %v2910_v42  ;;  %vm4977_vm11 = vmmov %vm4971_vm6 }
 0x1bf   :  { %v2886_v6 = vsel %vm4968_vm12, %v2885_v3, %v2876_v29  ;;  %v2905_v48 = vsel %vm4969_vm3, %v2904_v62, %v2896_v0  ;;  %v2918_v56 = vsel %vm4973_vm8, %v2917_v20, %v2911_v12 }
 0x1c0   :  { %v2887_v9 = vsel %vm4971_vm6, %v2886_v6, %v2878_v23  ;;  %v2906_v52 = vsel %vm4972_vm7, %v2905_v48, %v2897_v25  ;;  %v2919_v45 = vsel %vm4975_vm5, %v2918_v56, %v2912_v43 }
 0x1c1   :  { %2888 = vst [vmem:[%s4881_s1 + $0x18] sm:$0xff] %v2887_v9  ;;  %v2907_v5 = vsel %vm4974_vm10, %v2906_v52, %v2898_v18  ;;  %v2920_v21 = vsel %vm4976_vm14, %v2919_v45, %v2913_v13 }
 0x1c2   :  { %2908 = vst [vmem:[%s4881_s1 + $0x38] sm:$0xff] %v2907_v5  ;;  %v2921_v22 = vsel %vm4977_vm11, %v2920_v21, %v2914_v44 }
 0x1c3   :  { %2922 = vst [vmem:[%s4881_s1 + $0x58] sm:$0xff] %v2921_v22 }

</bundles_post_ra>
